<compile_context>
chip_gen: v7x
topology: tpu7x:2x2x1
jax: 0.10.0
libtpu: 0.0.40
codegen_flags: <defaults>
</compile_context>

<pallas_src>
import numpy as np
import jax
import jax.numpy as jnp
from jax.experimental import pallas as pl
from jax.experimental.pallas import tpu as pltpu


def _round_up(x, m):
    return ((x + m - 1) // m) * m


def _mlp_kernel(t_ref, x_ref, wf_ref,
                w1_ref, b1_ref, w2_ref, b2_ref, w3_ref, b3_ref,
                o_ref):
    t = t_ref[...]                       # (TB, 1)      f32
    xp = x_ref[...]                      # (TB, X_PAD)  f32, zero-padded wrapper-side
    wf = wf_ref[...]                     # (1, E2)      f32

    # Gaussian-Fourier time embedding: t_proj = t * W * 2*pi  -> (TB, E2); f32 transcendentals.
    t_proj = t * wf * jnp.float32(2.0 * np.pi)
    s = jnp.sin(t_proj)
    c = jnp.cos(t_proj)

    # Fused input [sin | cos | x | 0] of width K_PAD; the padded lanes line up with zero
    # rows of w1, so they are inert.
    fused = jnp.concatenate([s, c, xp], axis=1)        # (TB, K_PAD) f32

    def silu(h):
        # x * sigmoid(x) == 0.5 * x * (1 + tanh(x/2)): single EUP transcendental, f32.
        return h * (jnp.float32(0.5) * (jnp.float32(1.0) + jnp.tanh(jnp.float32(0.5) * h)))

    # nn1 + SiLU   (bf16 MXU operands, f32 accumulate / bias / activation)
    h = jnp.dot(fused.astype(jnp.bfloat16), w1_ref[...],
                preferred_element_type=jnp.float32) + b1_ref[...]
    h = silu(h)

    # nn2 + SiLU
    h = jnp.dot(h.astype(jnp.bfloat16), w2_ref[...],
                preferred_element_type=jnp.float32) + b2_ref[...]
    h = silu(h)

    # nn3 (output padded to 128 lanes; padded columns of w3/b3 are zero)
    out = jnp.dot(h.astype(jnp.bfloat16), w3_ref[...],
                  preferred_element_type=jnp.float32) + b3_ref[...]
    o_ref[...] = out.astype(o_ref.dtype)


def bb_mlp_forward(t, x, params, tile_b=2048):
    """t: (B,), x: (B, D). Returns (B, D). Weights in params are the un-padded originals."""
    B, D = x.shape
    E2 = params["W"].shape[0]                  # embed_dim // 2
    U = params["w1"].shape[1]                  # units

    K_IN = 2 * E2 + D                          # fused input width (e.g. 12)
    K_PAD = _round_up(K_IN, 8)                 # sublane-aligned contraction depth (16)
    X_PAD = K_PAD - 2 * E2                     # padded x width (8)
    U_PAD = _round_up(U, 128)                  # lane-aligned hidden width (128)
    D_PAD = _round_up(D, 128)                  # lane-dense output width (128)

    f32, bf16 = jnp.float32, jnp.bfloat16

    # ---- wrapper-side zero padding of the weights (exact; zeros are inert) ----
    w1 = jnp.zeros((K_PAD, U_PAD), f32).at[:K_IN, :U].set(params["w1"].astype(f32)).astype(bf16)
    b1 = jnp.zeros((1, U_PAD), f32).at[:, :U].set(params["b1"].reshape(1, -1).astype(f32))
    w2 = jnp.zeros((U_PAD, U_PAD), f32).at[:U, :U].set(params["w2"].astype(f32)).astype(bf16)
    b2 = jnp.zeros((1, U_PAD), f32).at[:, :U].set(params["b2"].reshape(1, -1).astype(f32))
    w3 = jnp.zeros((U_PAD, D_PAD), f32).at[:U, :D].set(params["w3"].astype(f32)).astype(bf16)
    b3 = jnp.zeros((1, D_PAD), f32).at[:, :D].set(params["b3"].reshape(1, -1).astype(f32))
    wf = params["W"].reshape(1, E2).astype(f32)

    # ---- batch tiling: TILE_B rows per grid step (multiple of 16 for bf16 packing) ----
    tile_b = max(16, min(int(tile_b), _round_up(B, 16)))
    tile_b = _round_up(tile_b, 16)
    # Ensure >= 2 grid steps when possible so the "parallel" axis spans both v7x TensorCores.
    if _round_up(B, tile_b) // tile_b < 2 and B > 16:
        tile_b = _round_up(pl.cdiv(B, 2), 16)
    Bp = _round_up(B, tile_b)
    grid = (Bp // tile_b,)

    t2d = t.reshape(B, 1).astype(f32)
    x_p = jnp.zeros((Bp, X_PAD), f32).at[:B, :D].set(x.astype(f32))
    t_p = jnp.zeros((Bp, 1), f32).at[:B].set(t2d)

    # ---- VMEM budget: double-buffered activation blocks (lane-padded) + resident weights ----
    act_bytes = 2 * tile_b * 128 * 4 * 3                      # t, x, out blocks (f32)
    w_bytes = 2 * (2 * (K_PAD * U_PAD + U_PAD * U_PAD + U_PAD * D_PAD)   # bf16 weights
                   + 4 * (2 * U_PAD + D_PAD + E2))                        # f32 biases / wf
    vmem_limit = int(min(64 * 1024 * 1024, act_bytes + w_bytes + (8 << 20)))

    # ---- cost hint for XLA's scheduler ----
    flops = 2 * Bp * (K_PAD * U_PAD + U_PAD * U_PAD + U_PAD * D_PAD)
    transcendentals = Bp * (2 * E2 + 2 * U_PAD)               # sin, cos, 2x tanh
    bytes_accessed = (4 * Bp * (1 + X_PAD + D_PAD)            # t, x, out (f32)
                      + 2 * (K_PAD * U_PAD + U_PAD * U_PAD + U_PAD * D_PAD)   # bf16 weights
                      + 4 * (2 * U_PAD + D_PAD + E2))
    cost = pl.CostEstimate(flops=int(flops),
                           transcendentals=int(transcendentals),
                           bytes_accessed=int(bytes_accessed))

    batch2 = lambda i: (i, 0)                  # blocks marching over the batch
    const2 = lambda i: (0, 0)                  # VMEM-resident weights/biases

    out = pl.pallas_call(
        _mlp_kernel,
        out_shape=jax.ShapeDtypeStruct((Bp, D_PAD), f32),
        grid_spec=pltpu.PrefetchScalarGridSpec(
            num_scalar_prefetch=0,
            grid=grid,
            in_specs=[
                pl.BlockSpec((tile_b, 1), batch2),           # t
                pl.BlockSpec((tile_b, X_PAD), batch2),       # x (zero-padded)
                pl.BlockSpec((1, E2), const2),               # Fourier W
                pl.BlockSpec((K_PAD, U_PAD), const2),        # w1 (padded, bf16)
                pl.BlockSpec((1, U_PAD), const2),            # b1
                pl.BlockSpec((U_PAD, U_PAD), const2),        # w2 (padded, bf16)
                pl.BlockSpec((1, U_PAD), const2),            # b2
                pl.BlockSpec((U_PAD, D_PAD), const2),        # w3 (padded, bf16)
                pl.BlockSpec((1, D_PAD), const2),            # b3 (padded)
            ],
            out_specs=pl.BlockSpec((tile_b, D_PAD), batch2), # lane-dense output
        ),
        compiler_params=pltpu.CompilerParams(
            dimension_semantics=("parallel",),
            vmem_limit_bytes=vmem_limit,
        ),
        cost_estimate=cost,
    )(t_p, x_p, wf, w1, b1, w2, b2, w3, b3)

    return out[:B, :D]


def init_params(key, dimensions, embed_dim=8, units=100, scale=16.0):
    ks = jax.random.split(key, 7)
    in1 = dimensions + embed_dim

    def linear_init(kw, kb, fan_in, fan_out):
        # torch.nn.Linear default: U(-1/sqrt(fan_in), 1/sqrt(fan_in))
        bound = 1.0 / np.sqrt(fan_in)
        w = jax.random.uniform(kw, (fan_in, fan_out), jnp.float32, -bound, bound)
        b = jax.random.uniform(kb, (fan_out,), jnp.float32, -bound, bound)
        return w, b

    w1, b1 = linear_init(ks[0], ks[1], in1, units)
    w2, b2 = linear_init(ks[2], ks[3], units, units)
    w3, b3 = linear_init(ks[4], ks[5], units, dimensions)
    W = jax.random.normal(ks[6], (embed_dim // 2,), jnp.float32) * scale
    return {"w1": w1, "b1": b1, "w2": w2, "b2": b2,
            "w3": w3, "b3": b3, "W": W}


def reference_forward(t, x, params):
    """Pure-JAX f32 reference mirroring the PyTorch forward."""
    Wf = params["W"]
    t_proj = t[:, None] * Wf[None, :] * 2.0 * np.pi
    temb = jnp.concatenate([jnp.sin(t_proj), jnp.cos(t_proj)], axis=1)
    h = jnp.concatenate([temb, x], axis=1)
    h = h @ params["w1"] + params["b1"]
    h = h * jax.nn.sigmoid(h)
    h = h @ params["w2"] + params["b2"]
    h = h * jax.nn.sigmoid(h)
    return h @ params["w3"] + params["b3"]


if __name__ == "__main__":
    key = jax.random.PRNGKey(0)
    k_t, k_x, k_p = jax.random.split(key, 3)

    B = 200        # batch (not a multiple of the tile -> exercises padding + 2-step grid)
    D = 4          # dimensions
    EMBED = 8      # embed_dim
    UNITS = 100    # units

    t = jax.random.uniform(k_t, (B,), jnp.float32)
    x = jax.random.normal(k_x, (B, D), jnp.float32)
    params = init_params(k_p, D, embed_dim=EMBED, units=UNITS, scale=16.0)

    out = bb_mlp_forward(t, x, params)        # small B -> tile capped so grid has 2 steps
    out = jax.block_until_ready(out)

    ref = reference_forward(t, x, params)
    # bf16 MXU operands with f32 accumulation: relaxed tolerance vs. the f32 reference.
    np.testing.assert_allclose(np.asarray(out), np.asarray(ref), rtol=3e-2, atol=3e-2)

    print("KERNEL_OK")
</pallas_src>

<mosaic_0001>
module attributes {stable_mosaic.version = 11 : i64} {
  func.func @_mlp_kernel(%arg0: i32, %arg1: memref<112x1xf32, #tpu.memory_space<vmem>>, %arg2: memref<112x8xf32, #tpu.memory_space<vmem>>, %arg3: memref<1x4xf32, #tpu.memory_space<vmem>>, %arg4: memref<16x128xbf16, #tpu.memory_space<vmem>>, %arg5: memref<1x128xf32, #tpu.memory_space<vmem>>, %arg6: memref<128x128xbf16, #tpu.memory_space<vmem>>, %arg7: memref<1x128xf32, #tpu.memory_space<vmem>>, %arg8: memref<128x128xbf16, #tpu.memory_space<vmem>>, %arg9: memref<1x128xf32, #tpu.memory_space<vmem>>, %arg10: memref<112x128xf32, #tpu.memory_space<vmem>>) attributes {dimension_semantics = [#tpu.dimension_semantics<parallel>], iteration_bounds = array<i64: 2>, scalar_prefetch = 0 : i64, scratch_operands = 0 : i64, tpu.core_type = #tpu.core_type<tc>, window_params = [{transform_indices = @transform_0, window_bounds = array<i64: 112, 1>}, {transform_indices = @transform_1, window_bounds = array<i64: 112, 8>}, {pipeline_mode = #tpu.pipeline_mode<synchronous>, transform_indices = @transform_2, window_bounds = array<i64: 1, 4>}, {pipeline_mode = #tpu.pipeline_mode<synchronous>, transform_indices = @transform_3, window_bounds = array<i64: 16, 128>}, {pipeline_mode = #tpu.pipeline_mode<synchronous>, transform_indices = @transform_4, window_bounds = array<i64: 1, 128>}, {pipeline_mode = #tpu.pipeline_mode<synchronous>, transform_indices = @transform_5, window_bounds = array<i64: 128, 128>}, {pipeline_mode = #tpu.pipeline_mode<synchronous>, transform_indices = @transform_6, window_bounds = array<i64: 1, 128>}, {pipeline_mode = #tpu.pipeline_mode<synchronous>, transform_indices = @transform_7, window_bounds = array<i64: 128, 128>}, {pipeline_mode = #tpu.pipeline_mode<synchronous>, transform_indices = @transform_8, window_bounds = array<i64: 1, 128>}, {transform_indices = @transform_9, window_bounds = array<i64: 112, 128>}]} {
    %c0 = arith.constant 0 : index
    %c0_0 = arith.constant 0 : index
    %0 = vector.load %arg1[%c0, %c0_0] : memref<112x1xf32, #tpu.memory_space<vmem>>, vector<112x1xf32>
    %c0_1 = arith.constant 0 : index
    %c0_2 = arith.constant 0 : index
    %1 = vector.load %arg2[%c0_1, %c0_2] : memref<112x8xf32, #tpu.memory_space<vmem>>, vector<112x8xf32>
    %c0_3 = arith.constant 0 : index
    %c0_4 = arith.constant 0 : index
    %2 = vector.load %arg3[%c0_3, %c0_4] : memref<1x4xf32, #tpu.memory_space<vmem>>, vector<1x4xf32>
    %3 = vector.broadcast %0 : vector<112x1xf32> to vector<112x4xf32>
    %4 = vector.broadcast %2 : vector<1x4xf32> to vector<112x4xf32>
    %5 = arith.mulf %3, %4 : vector<112x4xf32>
    %cst = arith.constant 6.28318548 : f32
    %6 = vector.broadcast %cst : f32 to vector<112x4xf32>
    %7 = arith.mulf %5, %6 : vector<112x4xf32>
    %8 = math.sin %7 : vector<112x4xf32>
    %9 = math.cos %7 : vector<112x4xf32>
    %10 = tpu.concatenate %8, %9, %1 in 1 : vector<112x4xf32>, vector<112x4xf32>, vector<112x8xf32> -> vector<112x16xf32>
    %11 = arith.truncf %10 : vector<112x16xf32> to vector<112x16xbf16>
    %c0_5 = arith.constant 0 : index
    %c0_6 = arith.constant 0 : index
    %12 = vector.load %arg4[%c0_5, %c0_6] : memref<16x128xbf16, #tpu.memory_space<vmem>>, vector<16x128xbf16>
    %cst_7 = arith.constant dense<0.000000e+00> : vector<112x128xf32>
    %13 = tpu.matmul %11, %12, %cst_7 {dimension_numbers = #tpu.dot_dimension_numbers<[1], [0], [0], [1], [0, 0, 1, 1], [], []>} : vector<112x16xbf16>, vector<16x128xbf16>, vector<112x128xf32> -> vector<112x128xf32>
    %c0_8 = arith.constant 0 : index
    %c0_9 = arith.constant 0 : index
    %14 = vector.load %arg5[%c0_8, %c0_9] : memref<1x128xf32, #tpu.memory_space<vmem>>, vector<1x128xf32>
    %15 = vector.broadcast %14 : vector<1x128xf32> to vector<112x128xf32>
    %16 = arith.addf %13, %15 : vector<112x128xf32>
    %cst_10 = arith.constant 5.000000e-01 : f32
    %17 = vector.broadcast %cst_10 : f32 to vector<112x128xf32>
    %18 = arith.mulf %17, %16 : vector<112x128xf32>
    %19 = math.tanh %18 : vector<112x128xf32>
    %cst_11 = arith.constant 1.000000e+00 : f32
    %20 = vector.broadcast %cst_11 : f32 to vector<112x128xf32>
    %21 = arith.addf %20, %19 : vector<112x128xf32>
    %cst_12 = arith.constant 5.000000e-01 : f32
    %22 = vector.broadcast %cst_12 : f32 to vector<112x128xf32>
    %23 = arith.mulf %22, %21 : vector<112x128xf32>
    %24 = arith.mulf %16, %23 : vector<112x128xf32>
    %25 = arith.truncf %24 : vector<112x128xf32> to vector<112x128xbf16>
    %c0_13 = arith.constant 0 : index
    %c0_14 = arith.constant 0 : index
    %26 = vector.load %arg6[%c0_13, %c0_14] : memref<128x128xbf16, #tpu.memory_space<vmem>>, vector<128x128xbf16>
    %cst_15 = arith.constant dense<0.000000e+00> : vector<112x128xf32>
    %27 = tpu.matmul %25, %26, %cst_15 {dimension_numbers = #tpu.dot_dimension_numbers<[1], [0], [0], [1], [0, 0, 1, 1], [], []>} : vector<112x128xbf16>, vector<128x128xbf16>, vector<112x128xf32> -> vector<112x128xf32>
    %c0_16 = arith.constant 0 : index
    %c0_17 = arith.constant 0 : index
    %28 = vector.load %arg7[%c0_16, %c0_17] : memref<1x128xf32, #tpu.memory_space<vmem>>, vector<1x128xf32>
    %29 = vector.broadcast %28 : vector<1x128xf32> to vector<112x128xf32>
    %30 = arith.addf %27, %29 : vector<112x128xf32>
    %cst_18 = arith.constant 5.000000e-01 : f32
    %31 = vector.broadcast %cst_18 : f32 to vector<112x128xf32>
    %32 = arith.mulf %31, %30 : vector<112x128xf32>
    %33 = math.tanh %32 : vector<112x128xf32>
    %cst_19 = arith.constant 1.000000e+00 : f32
    %34 = vector.broadcast %cst_19 : f32 to vector<112x128xf32>
    %35 = arith.addf %34, %33 : vector<112x128xf32>
    %cst_20 = arith.constant 5.000000e-01 : f32
    %36 = vector.broadcast %cst_20 : f32 to vector<112x128xf32>
    %37 = arith.mulf %36, %35 : vector<112x128xf32>
    %38 = arith.mulf %30, %37 : vector<112x128xf32>
    %39 = arith.truncf %38 : vector<112x128xf32> to vector<112x128xbf16>
    %c0_21 = arith.constant 0 : index
    %c0_22 = arith.constant 0 : index
    %40 = vector.load %arg8[%c0_21, %c0_22] : memref<128x128xbf16, #tpu.memory_space<vmem>>, vector<128x128xbf16>
    %cst_23 = arith.constant dense<0.000000e+00> : vector<112x128xf32>
    %41 = tpu.matmul %39, %40, %cst_23 {dimension_numbers = #tpu.dot_dimension_numbers<[1], [0], [0], [1], [0, 0, 1, 1], [], []>} : vector<112x128xbf16>, vector<128x128xbf16>, vector<112x128xf32> -> vector<112x128xf32>
    %c0_24 = arith.constant 0 : index
    %c0_25 = arith.constant 0 : index
    %42 = vector.load %arg9[%c0_24, %c0_25] : memref<1x128xf32, #tpu.memory_space<vmem>>, vector<1x128xf32>
    %43 = vector.broadcast %42 : vector<1x128xf32> to vector<112x128xf32>
    %44 = arith.addf %41, %43 : vector<112x128xf32>
    %c0_26 = arith.constant 0 : index
    %c0_27 = arith.constant 0 : index
    %45 = vector.load %arg10[%c0_26, %c0_27] : memref<112x128xf32, #tpu.memory_space<vmem>>, vector<112x128xf32>
    tpu.vector_store %arg10[%c0_26, %c0_27], %44 {strides = array<i32>} : memref<112x128xf32, #tpu.memory_space<vmem>>, vector<112x128xf32>,
    return
  }
  func.func @transform_0(%arg0: i32) -> (i32, i32) {
    %c0_i32 = arith.constant 0 : i32
    %c0_i32_0 = arith.constant 0 : i32
    return %arg0, %c0_i32 : i32, i32
  }
  func.func @transform_1(%arg0: i32) -> (i32, i32) {
    %c0_i32 = arith.constant 0 : i32
    %c0_i32_0 = arith.constant 0 : i32
    return %arg0, %c0_i32 : i32, i32
  }
  func.func @transform_2(%arg0: i32) -> (i32, i32) {
    %c0_i32 = arith.constant 0 : i32
    %c0_i32_0 = arith.constant 0 : i32
    %c0_i32_1 = arith.constant 0 : i32
    return %c0_i32, %c0_i32_0 : i32, i32
  }
  func.func @transform_3(%arg0: i32) -> (i32, i32) {
    %c0_i32 = arith.constant 0 : i32
    %c0_i32_0 = arith.constant 0 : i32
    %c0_i32_1 = arith.constant 0 : i32
    return %c0_i32, %c0_i32_0 : i32, i32
  }
  func.func @transform_4(%arg0: i32) -> (i32, i32) {
    %c0_i32 = arith.constant 0 : i32
    %c0_i32_0 = arith.constant 0 : i32
    %c0_i32_1 = arith.constant 0 : i32
    return %c0_i32, %c0_i32_0 : i32, i32
  }
  func.func @transform_5(%arg0: i32) -> (i32, i32) {
    %c0_i32 = arith.constant 0 : i32
    %c0_i32_0 = arith.constant 0 : i32
    %c0_i32_1 = arith.constant 0 : i32
    return %c0_i32, %c0_i32_0 : i32, i32
  }
  func.func @transform_6(%arg0: i32) -> (i32, i32) {
    %c0_i32 = arith.constant 0 : i32
    %c0_i32_0 = arith.constant 0 : i32
    %c0_i32_1 = arith.constant 0 : i32
    return %c0_i32, %c0_i32_0 : i32, i32
  }
  func.func @transform_7(%arg0: i32) -> (i32, i32) {
    %c0_i32 = arith.constant 0 : i32
    %c0_i32_0 = arith.constant 0 : i32
    %c0_i32_1 = arith.constant 0 : i32
    return %c0_i32, %c0_i32_0 : i32, i32
  }
  func.func @transform_8(%arg0: i32) -> (i32, i32) {
    %c0_i32 = arith.constant 0 : i32
    %c0_i32_0 = arith.constant 0 : i32
    %c0_i32_1 = arith.constant 0 : i32
    return %c0_i32, %c0_i32_0 : i32, i32
  }
  func.func @transform_9(%arg0: i32) -> (i32, i32) {
    %c0_i32 = arith.constant 0 : i32
    %c0_i32_0 = arith.constant 0 : i32
    return %arg0, %c0_i32 : i32, i32
  }
}

</mosaic_0001>

<bundles_post_ra>
// kernel: tpu_custom_call.1
= control target key start
LH: loop header
LB: loop body
LE: loop exit
PB: predicated region body
PF: predicated region fallthrough
CT: control target
= control target key end

     0   :  { %14 = vsyncpa [#allocation3], 0  ;;  %s6681_s0 = inlined_call_operand.vmem [shape: f32[224,1], index: 0, kind: input, shape index: {}]   ;;  %s6682_s1 = inlined_call_operand.vmem [shape: f32[224,8], index: 1, kind: input, shape index: {}]   ;;  %s6683_s2 = inlined_call_operand.vmem [shape: f32[1,4], index: 2, kind: input, shape index: {}]   ;;  %s6684_s3 = inlined_call_operand.vmem [shape: bf16[16,128], index: 3, kind: input, shape index: {}]   ;;  %s6685_s4 = inlined_call_operand.vmem [shape: f32[1,128], index: 4, kind: input, shape index: {}]   ;;  %s6686_s5 = inlined_call_operand.vmem [shape: bf16[128,128], index: 5, kind: input, shape index: {}]   ;;  %s6687_s6 = inlined_call_operand.vmem [shape: f32[1,128], index: 6, kind: input, shape index: {}]   ;;  %s6688_s7 = inlined_call_operand.vmem [shape: bf16[128,128], index: 7, kind: input, shape index: {}]   ;;  %s6689_s8 = inlined_call_operand.vmem [shape: f32[1,128], index: 8, kind: input, shape index: {}]   ;;  %s6690_s9 = inlined_call_operand.hbm [shape: f32[224,128], index: 9, kind: output, shape index: {}]  }
   0x1   :  { %16 = vsyncpa [#allocation3 + $0x1], 0  ;;  %s4984_s30 = smov 0   ;;  %s4986_s10 = smov 0  }
   0x2   :  { %s4988_s11 = smov 0   ;;  %s4990_s12 = smov 0  }
   0x3 LB: > { %s5005_s13 = sadd.s32 4294967295, %s4919_s12   ;;  %s4239_s14 = sadd.s32 4294967294, %s4919_s12   ;;  %s4919_s12 = sphi %s4990_s12, %s6905_s12   ;;  %s4915_s11 = sphi %s4988_s11, %s6904_s11   ;;  %s4911_s10 = sphi %s4986_s10, %s6903_s10   ;;  %s4907_s30 = sphi %s4984_s30, %s6902_s30  }
   0x4   : > { %s5009_s15 = sadd.s32 1, %s4919_s12   ;;  %s228_s16 = sadd.s32 1, %s4915_s11 }
   0x5   : > { %s225_s17 = ssub.s32 %s4919_s12, %s5009_s15  ;;  %p238_p0 = scmp.ne.s32.totalorder %s4915_s11, %s4911_s10 }
   0x6   : > { %p226_p1 = scmp.eq.s32.totalorder %s225_s17, 0  ;;  %p239_p2 = scmp.eq.s32.totalorder %s5005_s13, 1 }
   0x7   : > { %p244_p3 = scmp.ne.s32.totalorder %s4911_s10, %s4907_s30  ;;  %p245_p4 = scmp.eq.s32.totalorder %s4239_s14, 1 }
   0x8   : > { %s5020_s18 = scalar_select %p226_p1, %s4915_s11, %s228_s16  }
   0x9   : > { %p5022_p5 = por %p239_p2, %p238_p0  ;;  %p5026_p6 = por %p245_p4, %p244_p3 }
   0xa   : > { %p4242_p7 = scmp.ge.s32.totalorder %s4919_s12, 1  ;;  %p302_p8 = scmp.lt.s32.totalorder %s4919_s12, 3 }
   0xc   : > { %p303_p9 = pnand %p4242_p7, %p302_p8 }
   0xe   : > { %306 = sbr.rel (%p303_p9) target bundleno = 1385 (0x569), region = 56 }
  0x15   : > { %s343_s21 = smul.u32 14, %s5005_s13  ;;  %v4921_v0 = vmov 0   ;;  %v5044_v15 = vld [vmem:[%s6683_s2] ss:$0 sm:$0xff]  ;;  %v6701_v56 = vmov 683565275  }
  0x16   : > { %4656 = vset.pattern.permute.xlu1 %v4921_v0  ;;  %4655 = vset.pattern.permute.xlu0 %v4921_v0  ;;  %v6697_v58 = vmov 2475754826   ;;  %v6699_v60 = vmov 2131351028   ;;  %v6706_v62 = vmov 2102212464  }
  0x17   : > { %p344_p10 = scmp.lt.s32.totalorder %s343_s21, 27  ;;  %v6740_v0 = vmov 920167782   ;;  %s340_s28 = sand.u32 1, %s4911_s10  }
  0x18   : > { %s4547_s29 = smul.u32 112, %s340_s28 }
  0x19   : > { %s6907_s21 = smov (!%p344_p10, %s343_s21), 27 }
  0x1a   : > { %s4243_s22 = sshll.u32 %s6907_s21, 3  ;;  %s4928_s21 = smov 8  }
  0x1b   : > { %s347_s25 = scalar_lea.vmem %s6681_s0, %s4243_s22  ;;  %s6043_s17 = scalar_lea.vmem %s6682_s1, %s4243_s22 }
  0x1c   : > { %v359_v1 = vld [vmem:[%s347_s25 + $0x10] sm:$0xff]  ;;  %v357_v2 = vld [vmem:[%s347_s25] sm:$0xff]  ;;  %v360_v3 = vld [vmem:[%s347_s25 + $0x18] sm:$0xff]  ;;  %s4929_s22 = smov 4  }
  0x1d   : > { %398 = vperm.xlu1 %4656, %v359_v1   ;;  %388 = vperm.xlu0 %4655, %v357_v2   ;;  %v358_v4 = vld [vmem:[%s347_s25 + $0x8] sm:$0xff]  ;;  %v361_v6 = vld [vmem:[%s347_s25 + $0x20] sm:$0xff]  ;;  %v364_v7 = vld [vmem:[%s347_s25 + $0x38] sm:$0xff] }
  0x1e   : > { %v362_v5 = vld [vmem:[%s347_s25 + $0x28] sm:$0xff]  ;;  %v363_v8 = vld [vmem:[%s347_s25 + $0x30] sm:$0xff]  ;;  %v365_v10 = vld [vmem:[%s347_s25 + $0x40] sm:$0xff] }
  0x1f   : > { %v366_v9 = vld [vmem:[%s347_s25 + $0x48] sm:$0xff]  ;;  %v368_v11 = vld [vmem:[%s347_s25 + $0x58] sm:$0xff]  ;;  %v367_v12 = vld [vmem:[%s347_s25 + $0x50] sm:$0xff] }
  0x20   : > { %v370_v13 = vld [vmem:[%s347_s25 + $0x68] sm:$0xff]  ;;  %v369_v14 = vld [vmem:[%s347_s25 + $0x60] sm:$0xff] }
  0x21   : > { %403 = vperm.xlu1 %4656, %v360_v3   ;;  %393 = vperm.xlu0 %4655, %v358_v4  }
  0x25   : > { %413 = vperm.xlu1 %4656, %v362_v5   ;;  %408 = vperm.xlu0 %4655, %v361_v6  }
  0x29   : > { %423 = vperm.xlu1 %4656, %v364_v7   ;;  %418 = vperm.xlu0 %4655, %v363_v8   ;;  %v6693_v8 = vmov 1326507024  }
  0x2d   : > { %433 = vperm.xlu1 %4656, %v366_v9   ;;  %428 = vperm.xlu0 %4655, %v365_v10  }
  0x31   : > { %443 = vperm.xlu1 %4656, %v368_v11   ;;  %438 = vperm.xlu0 %4655, %v367_v12  }
  0x35   : > { %453 = vperm.xlu1 %4656, %v370_v13   ;;  %448 = vperm.xlu0 %4655, %v369_v14  }
  0x9c   : > { %v399_v16 = vpop.permute.xlu1 %398  ;;  %v389_v17 = vpop.permute.xlu0 %388 }
  0x9d   : > { %v464_v18 = vmul.f32 %v5044_v15, %v399_v16  ;;  %v462_v19 = vmul.f32 %v5044_v15, %v389_v17 }
  0x9f   : > { %v5048_v20 = vmul.f32 6.2831855, %v464_v18  ;;  %v5050_v21 = vmul.f32 6.2831855, %v462_v19 }
  0xa0   : > { %v404_v22 = vpop.permute.xlu1 %403  ;;  %v394_v30 = vpop.permute.xlu0 %393 }
  0xa1   : > { %v698_v23 = vand.u32 2147483647, %v5048_v20  ;;  %v701_v24 = vand.u32 2139095040, %v5048_v20  ;;  %v490_v25 = vand.u32 2147483647, %v5050_v21  ;;  %v493_v26 = vand.u32 2139095040, %v5050_v21 }
  0xa2   : > { %v465_v27 = vmul.f32 %v5044_v15, %v404_v22  ;;  %v463_v36 = vmul.f32 %v5044_v15, %v394_v30 }
  0xa3   : > { %v702_v28 = vshrl.u32 %v701_v24, 23  ;;  %v705_v29 = vand.u32 8388607, %v698_v23  ;;  %v494_v31 = vshrl.u32 %v493_v26, 23  ;;  %v497_v32 = vand.u32 8388607, %v490_v25 }
  0xa4   : > { %v5061_v34 = vmul.f32 6.2831855, %v465_v27  ;;  %v5070_v46 = vmul.f32 6.2831855, %v463_v36 }
  0xa5   : > { %v4254_v33 = vadd.s32 4294967169, %v702_v28  ;;  %v4246_v35 = vadd.s32 4294967169, %v494_v31  ;;  %v706_v37 = vor.u32 8388608, %v705_v29  ;;  %v498_v40 = vor.u32 8388608, %v497_v32 }
  0xa6   : > { %v802_v39 = vand.u32 2147483647, %v5061_v34  ;;  %v805_v42 = vand.u32 2139095040, %v5061_v34 }
  0xa7   : > { %v708_v38 = vadd.s32 1, %v4254_v33  ;;  %v500_v41 = vadd.s32 1, %v4246_v35  ;;  %v5072_v49 = vshll.u32 %v706_v37, 8  ;;  %v5076_v53 = vshll.u32 %v498_v40, 8 }
  0xa8   : > { %v5068_v43 = vand.u32 8388607, %v802_v39  ;;  %v806_v45 = vshrl.u32 %v805_v42, 23 }
  0xa9   : > { %vm709_vm0 = vcmp.gt.s32.totalorder %v708_v38, 0  ;;  %vm501_vm1 = vcmp.gt.s32.totalorder %v500_v41, 0 }
  0xaa   : > { %v710_v44 = vsel %vm709_vm0, %v708_v38, 0  ;;  %v502_v50 = vsel %vm501_vm1, %v500_v41, 0  ;;  %v810_v54 = vor.u32 8388608, %v5068_v43  ;;  %v5084_v2 = vadd.s32 4294967169, %v806_v45 }
  0xab   : > { %v711_v47 = vshrl.u32 %v710_v44, 5  ;;  %v712_v48 = vand.u32 31, %v710_v44  ;;  %v5074_v51 = vshrl.u32 %v502_v50, 5  ;;  %v504_v52 = vand.u32 31, %v502_v50 }
  0xad   : > { %v713_v55 = vsub.s32 32, %v712_v48  ;;  %v715_v57 = vshll.u32 %v6701_v56, %v712_v48  ;;  %v718_v59 = vshll.u32 %v6697_v58, %v712_v48  ;;  %v721_v61 = vshll.u32 %v6699_v60, %v712_v48 }
  0xae   : > { %v724_v63 = vshll.u32 %v6706_v62, %v712_v48  ;;  %v727_v1 = vshll.u32 %v6740_v0, %v712_v48  ;;  %vm730_vm2 = vcmp.lt.s32.totalorder %v711_v47, 1  ;;  %vm732_vm3 = vcmp.lt.s32.totalorder %v711_v47, 3 }
  0xaf   : > { %v714_v3 = vshrl.u32 %v6701_v56, %v713_v55  ;;  %v716_v4 = vshrl.u32 %v6697_v58, %v713_v55  ;;  %v719_v5 = vshrl.u32 %v6699_v60, %v713_v55  ;;  %v722_v6 = vshrl.u32 %v6706_v62, %v713_v55 }
  0xb0   : > { %v725_v7 = vshrl.u32 %v6740_v0, %v713_v55  ;;  %v728_v9 = vshrl.u32 %v6693_v8, %v713_v55  ;;  %vm733_vm4 = vcmp.lt.s32.totalorder %v711_v47, 4  ;;  %v505_v13 = vsub.s32 32, %v504_v52 }
  0xb1   : > { %v717_v10 = vor.u32 %v716_v4, %v715_v57  ;;  %v720_v11 = vor.u32 %v719_v5, %v718_v59  ;;  %v723_v12 = vor.u32 %v722_v6, %v721_v61  ;;  %vm731_vm5 = vcmp.lt.s32.totalorder %v711_v47, 2 }
  0xb2   : > { %v726_v14 = vor.u32 %v725_v7, %v724_v63  ;;  %v729_v16 = vor.u32 %v728_v9, %v727_v1  ;;  %v507_v17 = vshll.u32 %v6701_v56, %v504_v52  ;;  %v510_v29 = vshll.u32 %v6697_v58, %v504_v52 }
  0xb3   : > { %v734_v18 = vsel %vm730_vm2, %v714_v3, %v717_v10  ;;  %v735_v19 = vsel %vm733_vm4, %v723_v12, 2102212464  ;;  %v738_v22 = vsel %vm730_vm2, %v717_v10, %v720_v11  ;;  %v742_v24 = vsel %vm730_vm2, %v720_v11, %v723_v12 }
  0xb4   : > { %v736_v26 = vsel %vm732_vm3, %v720_v11, %v735_v19  ;;  %v739_v27 = vsel %vm733_vm4, %v726_v14, 920167782  ;;  %v743_v28 = vsel %vm733_vm4, %v729_v16, 1326507024  ;;  %v506_v32 = vshrl.u32 %v6701_v56, %v505_v13 }
  0xb5   : > { %v740_v30 = vsel %vm732_vm3, %v723_v12, %v739_v27  ;;  %v744_v31 = vsel %vm732_vm3, %v726_v14, %v743_v28  ;;  %v508_v33 = vshrl.u32 %v6697_v58, %v505_v13  ;;  %v737_v35 = vsel %vm731_vm5, %v734_v18, %v736_v26 }
  0xb6   : > { %v741_v36 = vsel %vm731_vm5, %v738_v22, %v740_v30  ;;  %v745_v37 = vsel %vm731_vm5, %v742_v24, %v744_v31  ;;  %v511_v38 = vshrl.u32 %v6699_v60, %v505_v13  ;;  %v513_v50 = vshll.u32 %v6699_v60, %v504_v52 }
  0xb7   : > { %v5107_v40 = vmul.u32.u64.low %v5072_v49, %v745_v37  ;;  %v5108_v41 = vmul.u32.u64.high %v5072_v49, %v745_v37, %v5107_v40  ;;  %v5111_v42 = vmul.u32.u64.low %v5072_v49, %v741_v36  ;;  %v5112_v44 = vmul.u32.u64.high %v5072_v49, %v741_v36, %v5111_v42 }
  0xb8   : > { %v509_v45 = vor.u32 %v508_v33, %v507_v17  ;;  %v512_v48 = vor.u32 %v511_v38, %v510_v29  ;;  %v514_v55 = vshrl.u32 %v6706_v62, %v505_v13  ;;  %v753_v47 = vmul.u32 %v5072_v49, %v737_v35 }
  0xb9   : > { %v516_v57 = vshll.u32 %v6706_v62, %v504_v52  ;;  %v517_v59 = vshrl.u32 %v6740_v0, %v505_v13  ;;  %v520_v61 = vshrl.u32 %v6693_v8, %v505_v13  ;;  %v519_v1 = vshll.u32 %v6740_v0, %v504_v52 }
  0xba   : > { %v515_v63 = vor.u32 %v514_v55, %v513_v50  ;;  %vm522_vm6 = vcmp.lt.s32.totalorder %v5074_v51, 1  ;;  %vm523_vm7 = vcmp.lt.s32.totalorder %v5074_v51, 2  ;;  %vm755_vm8 = vc.u32 %v5108_v41, %v5111_v42 }
  0xbb   : > { %v756_v3 = vadd.s32 1, %v5112_v44  ;;  %v518_v4 = vor.u32 %v517_v59, %v516_v57  ;;  %vm524_vm9 = vcmp.lt.s32.totalorder %v5074_v51, 3  ;;  %v521_v49 = vor.u32 %v520_v61, %v519_v1 }
  0xbc   : > { %vm525_vm10 = vcmp.lt.s32.totalorder %v5074_v51, 4  ;;  %v526_v5 = vsel %vm522_vm6, %v506_v32, %v509_v45  ;;  %v530_v6 = vsel %vm522_vm6, %v509_v45, %v512_v48  ;;  %v534_v10 = vsel %vm522_vm6, %v512_v48, %v515_v63 }
  0xbd   : > { %v757_v7 = vsel %vm755_vm8, %v756_v3, %v5112_v44  ;;  %v527_v52 = vsel %vm525_vm10, %v515_v63, 2102212464  ;;  %v531_v9 = vsel %vm525_vm10, %v518_v4, 920167782  ;;  %v535_v14 = vsel %vm525_vm10, %v521_v49, 1326507024 }
  0xbe   : > { %v758_v11 = vadd.s32 %v757_v7, %v753_v47  ;;  %v528_v12 = vsel %vm524_vm9, %v512_v48, %v527_v52  ;;  %v532_v13 = vsel %vm524_vm9, %v515_v63, %v531_v9  ;;  %v536_v17 = vsel %vm524_vm9, %v518_v4, %v535_v14 }
  0xbf   : > { %v533_v16 = vsel %vm523_vm7, %v530_v6, %v532_v13  ;;  %v812_v18 = vadd.s32 1, %v5084_v2  ;;  %v597_v19 = vand.u32 2139095040, %v5070_v46  ;;  %v537_v24 = vsel %vm523_vm7, %v534_v10, %v536_v17 }
  0xc0   : > { %v759_v22 = vadd.s32 536870912, %v758_v11  ;;  %v5137_v26 = vmul.u32.u64.low %v5076_v53, %v533_v16  ;;  %v5138_v27 = vmul.u32.u64.high %v5076_v53, %v533_v16, %v5137_v26  ;;  %v529_v28 = vsel %vm523_vm7, %v526_v5, %v528_v12 }
  0xc1   : > { %v5144_v29 = vmul.u32.u64.low %v5076_v53, %v537_v24  ;;  %v5145_v30 = vmul.u32.u64.high %v5076_v53, %v537_v24, %v5144_v29  ;;  %vm813_vm11 = vcmp.gt.s32.totalorder %v812_v18, 0  ;;  %v594_v33 = vand.u32 2147483647, %v5070_v46 }
  0xc2   : > { %v5147_v2 = vshrl.u32 %v759_v22, 30  ;;  %v814_v31 = vsel %vm813_vm11, %v812_v18, 0  ;;  %v545_v36 = vmul.u32 %v5076_v53, %v529_v28  ;;  %v548_v37 = vadd.s32 1, %v5138_v27 }
  0xc3   : > { %v816_v32 = vand.u32 31, %v814_v31  ;;  %v5155_v51 = vshll.u32 %v810_v54, 8  ;;  %vm547_vm12 = vc.u32 %v5145_v30, %v5137_v26  ;;  %v598_v44 = vshrl.u32 %v597_v19, 23 }
  0xc4   : > { %v761_v35 = vshll.u32 %v5147_v2, 30  ;;  %v549_v48 = vsel %vm547_vm12, %v548_v37, %v5138_v27  ;;  %v815_v47 = vshrl.u32 %v814_v31, 5  ;;  %vm6748_vm10 = vcmp.lt.s32.totalorder %v5048_v20, 0 }
  0xc5   : > { %v817_v38 = vsub.s32 32, %v816_v32  ;;  %v819_v40 = vshll.u32 %v6701_v56, %v816_v32  ;;  %v822_v50 = vshll.u32 %v6697_v58, %v816_v32  ;;  %v825_v53 = vshll.u32 %v6699_v60, %v816_v32 }
  0xc6   : > { %v5160_v45 = vsub.s32 %v758_v11, %v761_v35  ;;  %v550_v55 = vadd.s32 %v549_v48, %v545_v36  ;;  %v828_v61 = vshll.u32 %v6706_v62, %v816_v32  ;;  %v831_v49 = vshll.u32 %v6740_v0, %v816_v32  ;;  %v414_v48 = vpop.permute.xlu1 %413 }
  0xc7   : > { %v820_v43 = vshrl.u32 %v6697_v58, %v817_v38  ;;  %v823_v54 = vshrl.u32 %v6699_v60, %v817_v38  ;;  %v826_v59 = vshrl.u32 %v6706_v62, %v817_v38  ;;  %v829_v63 = vshrl.u32 %v6740_v0, %v817_v38 }
  0xc8   : > { %v764_v57 = vsub.s32 0, %v5160_v45  ;;  %v551_v1 = vadd.s32 536870912, %v550_v55  ;;  %v832_v52 = vshrl.u32 %v6693_v8, %v817_v38  ;;  %v818_v10 = vshrl.u32 %v6701_v56, %v817_v38 }
  0xc9   : > { %v821_v3 = vor.u32 %v820_v43, %v819_v40  ;;  %v824_v4 = vor.u32 %v823_v54, %v822_v50  ;;  %v827_v6 = vor.u32 %v826_v59, %v825_v53  ;;  %v830_v7 = vor.u32 %v829_v63, %v828_v61 }
  0xca   : > { %v4255_v5 = vmin.u32 %v764_v57, %v5160_v45  ;;  %v5174_v9 = vshrl.u32 %v551_v1, 30  ;;  %vm834_vm13 = vcmp.lt.s32.totalorder %v815_v47, 1  ;;  %v4250_v11 = vadd.s32 4294967169, %v598_v44 }
  0xcb   : > { %v833_v13 = vor.u32 %v832_v52, %v831_v49  ;;  %vm835_vm14 = vcmp.lt.s32.totalorder %v815_v47, 2  ;;  %vm837_vm15 = vcmp.lt.s32.totalorder %v815_v47, 4  ;;  %vm836_vm0 = vcmp.lt.s32.totalorder %v815_v47, 3 }
  0xcc   : > { %v766_v12 = vclz %v4255_v5  ;;  %v553_v14 = vshll.u32 %v5174_v9, 30  ;;  %v842_v16 = vsel %vm834_vm13, %v821_v3, %v824_v4  ;;  %v843_v17 = vsel %vm837_vm15, %v830_v7, 920167782 }
  0xcd   : > { %v839_v19 = vsel %vm837_vm15, %v827_v6, 2102212464  ;;  %v844_v22 = vsel %vm836_vm0, %v827_v6, %v843_v17  ;;  %v846_v24 = vsel %vm834_vm13, %v824_v4, %v827_v6  ;;  %v838_v28 = vsel %vm834_vm13, %v818_v10, %v821_v3 }
  0xce   : > { %v4256_v18 = vadd.s32 4294967294, %v766_v12  ;;  %v5179_v27 = vsub.s32 %v550_v55, %v553_v14  ;;  %v845_v29 = vsel %vm835_vm14, %v842_v16, %v844_v22  ;;  %v847_v31 = vsel %vm837_vm15, %v833_v13, 1326507024 }
  0xcf   : > { %v848_v32 = vsel %vm836_vm0, %v830_v7, %v847_v31  ;;  %v5184_v35 = vmul.u32.u64.low %v5155_v51, %v845_v29  ;;  %v5185_v36 = vmul.u32.u64.high %v5155_v51, %v845_v29, %v5184_v35  ;;  %v840_v40 = vsel %vm836_vm0, %v824_v4, %v839_v19 }
  0xd0   : > { %vm4257_vm1 = vcmp.lt.s32.totalorder %v4256_v18, 0  ;;  %v556_v38 = vsub.s32 0, %v5179_v27  ;;  %v849_v44 = vsel %vm835_vm14, %v846_v24, %v848_v32  ;;  %v601_v55 = vand.u32 8388607, %v594_v33 }
  0xd1   : > { %v769_v37 = vsel %vm4257_vm1, 0, %v4256_v18  ;;  %v5195_v54 = vmul.u32.u64.low %v5155_v51, %v849_v44  ;;  %v5196_v57 = vmul.u32.u64.high %v5155_v51, %v849_v44, %v5195_v54  ;;  %v604_v59 = vadd.s32 1, %v4250_v11 }
  0xd2   : > { %v770_v50 = vsub.s32 32, %v769_v37  ;;  %v774_v53 = vsub.s32 4294967266, %v769_v37  ;;  %v4247_v43 = vmin.u32 %v556_v38, %v5179_v27  ;;  %v754_v61 = vadd.s32 %v5111_v42, %v5108_v41 }
  0xd3   : > { %v841_v63 = vsel %vm835_vm14, %v838_v28, %v840_v40  ;;  %v860_v1 = vadd.s32 1, %v5185_v36  ;;  %v467_v3 = vmul.f32 %v5044_v15, %v414_v48  ;;  %vm605_vm2 = vcmp.gt.s32.totalorder %v604_v59, 0 }
  0xd4   : > { %v775_v4 = vadd.s32 127, %v774_v53  ;;  %v558_v49 = vclz %v4247_v43  ;;  %v772_v5 = vshrl.u32 %v754_v61, %v770_v50  ;;  %v606_v6 = vsel %vm605_vm2, %v604_v59, 0 }
  0xd5   : > { %v857_v52 = vmul.u32 %v5155_v51, %v841_v63  ;;  %vm859_vm3 = vc.u32 %v5196_v57, %v5184_v35  ;;  %v602_v10 = vor.u32 8388608, %v601_v55  ;;  %v771_v41 = vshll.u32 %v5160_v45, %v769_v37 }
  0xd6   : > { %v4248_v7 = vadd.s32 4294967294, %v558_v49  ;;  %v861_v42 = vsel %vm859_vm3, %v860_v1, %v5185_v36  ;;  %v608_v47 = vand.u32 31, %v606_v6  ;;  %v5208_v11 = vmul.f32 6.2831855, %v467_v3 }
  0xd7   : > { %v776_v12 = vshll.u32 %v775_v4, 23  ;;  %v862_v13 = vadd.s32 %v861_v42, %v857_v52  ;;  %v773_v14 = vor.u32 %v772_v5, %v771_v41  ;;  %v546_v16 = vadd.s32 %v5137_v26, %v5145_v30 }
  0xd8   : > { %6769 = vst [vmem:[#allocation5_spill] sm:$0xff] %v5208_v11  ;;  %vm4249_vm4 = vcmp.lt.s32.totalorder %v4248_v7, 0  ;;  %v609_v51 = vsub.s32 32, %v608_v47  ;;  %v5212_v24 = vshll.u32 %v602_v10, 8  ;;  %v5214_v45 = vshrl.u32 %v606_v6, 5 }
  0xd9   : > { %v561_v17 = vsel %vm4249_vm4, 0, %v4248_v7  ;;  %v863_v22 = vadd.s32 536870912, %v862_v13  ;;  %v1010_v29 = vand.u32 2147483647, %v5208_v11  ;;  %v1013_v31 = vand.u32 2139095040, %v5208_v11 }
  0xda   : > { %v562_v18 = vsub.s32 32, %v561_v17  ;;  %v566_v19 = vsub.s32 4294967266, %v561_v17  ;;  %v612_v28 = vshrl.u32 %v6697_v58, %v609_v51  ;;  %v777_v32 = vor.u32 4788187, %v776_v12 }
  0xdb   : > { %v5219_v37 = vshrl.u32 %v863_v22, 30  ;;  %v615_v26 = vshrl.u32 %v6699_v60, %v609_v51  ;;  %v780_v30 = vcvt.s32.f32 %v773_v14  ;;  %v611_v38 = vshll.u32 %v6701_v56, %v608_v47 }
  0xdc   : > { %v567_v36 = vadd.s32 127, %v566_v19  ;;  %v614_v40 = vshll.u32 %v6697_v58, %v608_v47  ;;  %v618_v44 = vshrl.u32 %v6706_v62, %v609_v51  ;;  %v564_v48 = vshrl.u32 %v546_v16, %v562_v18  ;;  %v409_v18 = vpop.permute.xlu0 %408 }
  0xdd   : > { %v865_v53 = vshll.u32 %v5219_v37, 30  ;;  %v617_v55 = vshll.u32 %v6699_v60, %v608_v47  ;;  %v613_v43 = vor.u32 %v612_v28, %v611_v38  ;;  %v620_v59 = vshll.u32 %v6706_v62, %v608_v47 }
  0xde   : > { %v568_v50 = vshll.u32 %v567_v36, 23  ;;  %v616_v54 = vor.u32 %v615_v26, %v614_v40  ;;  %v621_v61 = vshrl.u32 %v6740_v0, %v609_v51  ;;  %v778_v63 = vand.u32 2147483647, %v777_v32 }
  0xdf   : > { %v5229_v1 = vsub.s32 %v862_v13, %v865_v53  ;;  %v619_v3 = vor.u32 %v618_v44, %v617_v55  ;;  %vm626_vm5 = vcmp.lt.s32.totalorder %v5214_v45, 1  ;;  %v563_v4 = vshll.u32 %v5179_v27, %v561_v17 }
  0xe0   : > { %v622_v49 = vor.u32 %v621_v61, %v620_v59  ;;  %v623_v5 = vshll.u32 %v6740_v0, %v608_v47  ;;  %v624_v6 = vshrl.u32 %v6693_v8, %v609_v51  ;;  %v569_v7 = vor.u32 4788187, %v568_v50 }
  0xe1   : > { %v868_v52 = vsub.s32 0, %v5229_v1  ;;  %v610_v10 = vshrl.u32 %v6701_v56, %v609_v51  ;;  %vm627_vm6 = vcmp.lt.s32.totalorder %v5214_v45, 2  ;;  %v565_v41 = vor.u32 %v564_v48, %v563_v4 }
  0xe2   : > { %v625_v42 = vor.u32 %v624_v6, %v623_v5  ;;  %vm629_vm7 = vcmp.lt.s32.totalorder %v5214_v45, 4  ;;  %v634_v12 = vsel %vm626_vm5, %v613_v43, %v616_v54  ;;  %vm628_vm8 = vcmp.lt.s32.totalorder %v5214_v45, 3 }
  0xe3   : > { %v4259_v27 = vmin.u32 %v868_v52, %v5229_v1  ;;  %v631_v47 = vsel %vm629_vm7, %v619_v3, 2102212464  ;;  %v635_v13 = vsel %vm629_vm7, %v622_v49, 920167782  ;;  %v781_v14 = vmul.f32 %v780_v30, %v778_v63 }
  0xe4   : > { %v636_v16 = vsel %vm628_vm8, %v619_v3, %v635_v13  ;;  %v638_v17 = vsel %vm626_vm5, %v616_v54, %v619_v3  ;;  %v639_v51 = vsel %vm629_vm7, %v625_v42, 1326507024  ;;  %v570_v19 = vand.u32 2147483647, %v569_v7 }
  0xe5   : > { %v870_v22 = vclz %v4259_v27  ;;  %v630_v28 = vsel %vm626_vm5, %v610_v10, %v613_v43  ;;  %v637_v32 = vsel %vm627_vm6, %v634_v12, %v636_v16  ;;  %v632_v36 = vsel %vm628_vm8, %v616_v54, %v631_v47 }
  0xe6   : > { %v640_v26 = vsel %vm628_vm8, %v622_v49, %v639_v51  ;;  %v5250_v38 = vmul.u32.u64.low %v5212_v24, %v637_v32  ;;  %v5251_v40 = vmul.u32.u64.high %v5212_v24, %v637_v32, %v5250_v38  ;;  %v572_v30 = vcvt.s32.f32 %v565_v41 }
  0xe7   : > { %v4260_v44 = vadd.s32 4294967294, %v870_v22  ;;  %v641_v48 = vsel %vm627_vm6, %v638_v17, %v640_v26  ;;  %v466_v50 = vmul.f32 %v5044_v15, %v409_v18  ;;  %v1014_v43 = vshrl.u32 %v1013_v31, 23 }
  0xe8   : > { %v5258_v53 = vmul.u32.u64.low %v5212_v24, %v641_v48  ;;  %v5259_v55 = vmul.u32.u64.high %v5212_v24, %v641_v48, %v5258_v53  ;;  %v573_v59 = vmul.f32 %v572_v30, %v570_v19  ;;  %v633_v54 = vsel %vm627_vm6, %v630_v28, %v632_v36 }
  0xe9   : > { %vm4261_vm9 = vcmp.lt.s32.totalorder %v4260_v44, 0  ;;  %v1017_v61 = vand.u32 8388607, %v1010_v29  ;;  %v782_v63 = vxor.u32 2147483648, %v781_v14  ;;  %v652_v4 = vadd.s32 1, %v5251_v40 }
  0xea   : > { %v873_v3 = vsel %vm4261_vm9, 0, %v4260_v44  ;;  %v4266_v49 = vadd.s32 4294967169, %v1014_v43  ;;  %v5267_v7 = vmul.f32 6.2831855, %v466_v50  ;;  %v858_v31 = vadd.s32 %v5184_v35, %v5196_v57 }
  0xeb   : > { %v874_v5 = vsub.s32 32, %v873_v3  ;;  %v878_v6 = vsub.s32 4294967266, %v873_v3  ;;  %v649_v45 = vmul.u32 %v5212_v24, %v633_v54  ;;  %vm651_vm11 = vc.u32 %v5259_v55, %v5250_v38 }
  0xec   : > { %6770 = vst [vmem:[#allocation6_spill] sm:$0xff] %v5267_v7  ;;  %v1020_v52 = vadd.s32 1, %v4266_v49  ;;  %v574_v10 = vxor.u32 2147483648, %v573_v59  ;;  %v653_v42 = vsel %vm651_vm11, %v652_v4, %v5251_v40  ;;  %v1018_v12 = vor.u32 8388608, %v1017_v61 }
  0xed   : > { %v879_v41 = vadd.s32 127, %v878_v6  ;;  %v783_v27 = vsel %vm6748_vm10, %v782_v63, %v781_v14  ;;  %v876_v47 = vshrl.u32 %v858_v31, %v874_v5  ;;  %v654_v13 = vadd.s32 %v653_v42, %v649_v45 }
  0xee   : > { %vm1021_vm12 = vcmp.gt.s32.totalorder %v1020_v52, 0  ;;  %vm492_vm13 = vcmp.lt.s32.totalorder %v5050_v21, 0  ;;  %vm5280_vm14 = vcmp.le.f32.partialorder %v698_v23, 0.7853982  ;;  %v875_v16 = vshll.u32 %v5229_v1, %v873_v3 }
  0xef   : > { %v880_v35 = vshll.u32 %v879_v41, 23  ;;  %v1022_v57 = vsel %vm1021_vm12, %v1020_v52, 0  ;;  %v655_v17 = vadd.s32 536870912, %v654_v13  ;;  %v5288_v14 = vsel %vm5280_vm14, %v5048_v20, %v783_v27 }
  0xf0   : > { %v1024_v51 = vand.u32 31, %v1022_v57  ;;  %v575_v18 = vsel %vm492_vm13, %v574_v10, %v573_v59  ;;  %v5292_v19 = vshll.u32 %v1018_v12, 8  ;;  %v6692_v22 = vand.u32 2147483647, %v5267_v7 }
  0xf1   : > { %v877_v23 = vor.u32 %v876_v47, %v875_v16  ;;  %v5295_v28 = vshrl.u32 %v655_v17, 30  ;;  %v909_v1 = vand.u32 2139095040, %v5267_v7  ;;  %v881_v36 = vor.u32 4788187, %v880_v35 }
  0xf2   : > { %v1025_v32 = vsub.s32 32, %v1024_v51  ;;  %v1023_v26 = vshrl.u32 %v1022_v57, 5  ;;  %v1027_v40 = vshll.u32 %v6701_v56, %v1024_v51  ;;  %v1030_v30 = vshll.u32 %v6697_v58, %v1024_v51 }
  0xf3   : > { %v657_v44 = vshll.u32 %v5295_v28, 30  ;;  %v1033_v53 = vshll.u32 %v6699_v60, %v1024_v51  ;;  %v1036_v59 = vshll.u32 %v6706_v62, %v1024_v51  ;;  %vm5310_vm15 = vcmp.le.f32.partialorder %v490_v25, 0.7853982 }
  0xf4   : > { %v1028_v48 = vshrl.u32 %v6697_v58, %v1025_v32  ;;  %v1031_v50 = vshrl.u32 %v6699_v60, %v1025_v32  ;;  %v1034_v43 = vshrl.u32 %v6706_v62, %v1025_v32  ;;  %v1037_v54 = vshrl.u32 %v6740_v0, %v1025_v32 }
  0xf5   : > { %v1040_v61 = vshrl.u32 %v6693_v8, %v1025_v32  ;;  %v5314_v3 = vsub.s32 %v654_v13, %v657_v44  ;;  %v1039_v5 = vshll.u32 %v6740_v0, %v1024_v51  ;;  %v882_v6 = vand.u32 2147483647, %v881_v36 }
  0xf6   : > { %v1029_v4 = vor.u32 %v1028_v48, %v1027_v40  ;;  %v1032_v49 = vor.u32 %v1031_v50, %v1030_v30  ;;  %v1035_v31 = vor.u32 %v1034_v43, %v1033_v53  ;;  %v1038_v45 = vor.u32 %v1037_v54, %v1036_v59 }
  0xf7   : > { %v913_v52 = vand.u32 8388607, %v6692_v22  ;;  %v660_v10 = vsub.s32 0, %v5314_v3  ;;  %v1041_v41 = vor.u32 %v1040_v61, %v1039_v5  ;;  %vm1042_vm0 = vcmp.lt.s32.totalorder %v1023_v26, 1  ;;  %v424_v61 = vpop.permute.xlu1 %423 }
  0xf8   : > { %v910_v25 = vshrl.u32 %v909_v1, 23  ;;  %v884_v42 = vcvt.s32.f32 %v877_v23  ;;  %v1026_v12 = vshrl.u32 %v6701_v56, %v1025_v32  ;;  %vm1045_vm1 = vcmp.lt.s32.totalorder %v1023_v26, 4 }
  0xf9   : > { %v1050_v27 = vsel %vm1042_vm0, %v1029_v4, %v1032_v49  ;;  %v4251_v47 = vmin.u32 %v660_v10, %v5314_v3  ;;  %vm1044_vm2 = vcmp.lt.s32.totalorder %v1023_v26, 3  ;;  %v1047_v13 = vsel %vm1045_vm1, %v1035_v31, 2102212464 }
  0xfa   : > { %v1051_v35 = vsel %vm1045_vm1, %v1038_v45, 920167782  ;;  %v885_v57 = vmul.f32 %v884_v42, %v882_v6  ;;  %vm1043_vm3 = vcmp.lt.s32.totalorder %v1023_v26, 2  ;;  %v1054_v17 = vsel %vm1042_vm0, %v1032_v49, %v1035_v31 }
  0xfb   : > { %v1052_v16 = vsel %vm1044_vm2, %v1035_v31, %v1051_v35  ;;  %v662_v51 = vclz %v4251_v47  ;;  %v1046_v36 = vsel %vm1042_vm0, %v1026_v12, %v1029_v4  ;;  %v1055_v30 = vsel %vm1045_vm1, %v1041_v41, 1326507024 }
  0xfc   : > { %v1053_v40 = vsel %vm1043_vm3, %v1050_v27, %v1052_v16  ;;  %v1048_v1 = vsel %vm1044_vm2, %v1032_v49, %v1047_v13  ;;  %v1056_v23 = vsel %vm1044_vm2, %v1038_v45, %v1055_v30  ;;  %vm6728_vm4 = vcmp.lt.s32.totalorder %v5061_v34, 0 }
  0xfd   : > { %v5324_v32 = vmul.u32.u64.low %v5292_v19, %v1053_v40  ;;  %v5325_v44 = vmul.u32.u64.high %v5292_v19, %v1053_v40, %v5324_v32  ;;  %v4252_v48 = vadd.s32 4294967294, %v662_v51  ;;  %v1057_v50 = vsel %vm1043_vm3, %v1054_v17, %v1056_v23 }
  0xfe   : > { %v4262_v53 = vadd.s32 4294967169, %v910_v25  ;;  %4744 = vcosq.f32 %v5288_v14  ;;  %v5334_v43 = vsel %vm5310_vm15, %v5050_v21, %v575_v18  ;;  %v650_v4 = vadd.s32 %v5250_v38, %v5259_v55 }
  0xff   : > { %v5337_v59 = vmul.u32.u64.low %v5292_v19, %v1057_v50  ;;  %v5338_v54 = vmul.u32.u64.high %v5292_v19, %v1057_v50, %v5337_v59  ;;  %vm4253_vm5 = vcmp.lt.s32.totalorder %v4252_v48, 0  ;;  %v1049_v49 = vsel %vm1043_vm3, %v1046_v36, %v1048_v1 }
 0x100   : > { %v916_v5 = vadd.s32 1, %v4262_v53  ;;  %v886_v6 = vxor.u32 2147483648, %v885_v57  ;;  %v665_v31 = vsel %vm4253_vm5, 0, %v4252_v48  ;;  %v1068_v45 = vadd.s32 1, %v5325_v44 }
 0x101   : > { %v914_v10 = vor.u32 8388608, %v913_v52  ;;  %v666_v41 = vsub.s32 32, %v665_v31  ;;  %v670_v18 = vsub.s32 4294967266, %v665_v31  ;;  %v469_v25 = vmul.f32 %v5044_v15, %v424_v61 }
 0x102   : > { %vm917_vm6 = vcmp.gt.s32.totalorder %v916_v5, 0  ;;  %4746 = vsinq.f32 %v5288_v14  ;;  %v1065_v42 = vmul.u32 %v5292_v19, %v1049_v49  ;;  %vm1067_vm7 = vc.u32 %v5338_v54, %v5324_v32 }
 0x103   : > { %v918_v38 = vsel %vm917_vm6, %v916_v5, 0  ;;  %v667_v55 = vshll.u32 %v5314_v3, %v665_v31  ;;  %v668_v26 = vshrl.u32 %v650_v4, %v666_v41  ;;  %v671_v12 = vadd.s32 127, %v670_v18 }
 0x104   : > { %v1069_v27 = vsel %vm1067_vm7, %v1068_v45, %v5325_v44  ;;  %4748 = vcosq.f32 %v5334_v43  ;;  %v887_v52 = vsel %vm6728_vm4, %v886_v6, %v885_v57  ;;  %v920_v13 = vand.u32 31, %v918_v38 }
 0x105   : > { %v1070_v47 = vadd.s32 %v1069_v27, %v1065_v42  ;;  %v669_v14 = vor.u32 %v668_v26, %v667_v55  ;;  %v672_v35 = vshll.u32 %v671_v12, 23  ;;  %v5354_v19 = vshll.u32 %v914_v10, 8 }
 0x106   : > { %v5356_v16 = vmul.f32 6.2831855, %v469_v25  ;;  %v919_v51 = vshrl.u32 %v918_v38, 5  ;;  %v921_v3 = vsub.s32 32, %v920_v13  ;;  %v923_v36 = vshll.u32 %v6701_v56, %v920_v13 }
 0x107   : > { %v1071_v17 = vadd.s32 536870912, %v1070_v47  ;;  %v673_v40 = vor.u32 4788187, %v672_v35  ;;  %v676_v30 = vcvt.s32.f32 %v669_v14  ;;  %v926_v1 = vshll.u32 %v6697_v58, %v920_v13 }
 0x108   : > { %6775 = vst [vmem:[#allocation7_spill] sm:$0xff] %v5356_v16  ;;  %v929_v23 = vshll.u32 %v6699_v60, %v920_v13  ;;  %v5361_v57 = vpop.eup %4744  ;;  %vm5365_vm8 = vcmp.le.f32.partialorder %v802_v39, 0.7853982  ;;  %v924_v50 = vshrl.u32 %v6697_v58, %v921_v3  ;;  %v927_v53 = vshrl.u32 %v6699_v60, %v921_v3 }
 0x109   : > { %6776 = vst [vmem:[#allocation8_spill] sm:$0xff] %v5361_v57  ;;  %v5369_v48 = vshrl.u32 %v1071_v17, 30  ;;  %v932_v59 = vshll.u32 %v6706_v62, %v920_v13  ;;  %v674_v61 = vand.u32 2147483647, %v673_v40  ;;  %v930_v4 = vshrl.u32 %v6706_v62, %v921_v3 }
 0x10a   : > { %v933_v49 = vshrl.u32 %v6740_v0, %v921_v3  ;;  %v935_v5 = vshll.u32 %v6740_v0, %v920_v13  ;;  %v925_v6 = vor.u32 %v924_v50, %v923_v36  ;;  %v928_v31 = vor.u32 %v927_v53, %v926_v1  ;;  %v419_v53 = vpop.permute.xlu0 %418 }
 0x10b   : > { %6779 = vst [vmem:[#allocation9_spill] sm:$0xff] %v5369_v48  ;;  %v1073_v39 = vshll.u32 %v5369_v48, 30  ;;  %v936_v45 = vshrl.u32 %v6693_v8, %v921_v3  ;;  %vm6755_vm9 = vcmp.lt.s32.totalorder %v5070_v46, 0  ;;  %v922_v10 = vshrl.u32 %v6701_v56, %v921_v3 }
 0x10c   : > { %v931_v41 = vor.u32 %v930_v4, %v929_v23  ;;  %v934_v18 = vor.u32 %v933_v49, %v932_v59  ;;  %vm938_vm11 = vcmp.lt.s32.totalorder %v919_v51, 1  ;;  %v5381_v25 = vpop.eup %4746  ;;  %v677_v42 = vmul.f32 %v676_v30, %v674_v61 }
 0x10d   : > { %v5383_v38 = vsub.s32 %v1070_v47, %v1073_v39  ;;  %v937_v55 = vor.u32 %v936_v45, %v935_v5  ;;  %vm941_vm12 = vcmp.lt.s32.totalorder %v919_v51, 4  ;;  %vm940_vm0 = vcmp.lt.s32.totalorder %v919_v51, 3  ;;  %v434_v45 = vpop.permute.xlu1 %433 }
 0x10e   : > { %v943_v26 = vsel %vm941_vm12, %v931_v41, 2102212464  ;;  %v946_v12 = vsel %vm938_vm11, %v925_v6, %v928_v31  ;;  %v947_v27 = vsel %vm941_vm12, %v934_v18, 920167782  ;;  %v5385_v13 = vpop.eup %4748  ;;  %vm939_vm1 = vcmp.lt.s32.totalorder %v919_v51, 2 }
 0x10f   : > { %v1076_v14 = vsub.s32 0, %v5383_v38  ;;  %v948_v35 = vsel %vm940_vm0, %v931_v41, %v947_v27  ;;  %v950_v17 = vsel %vm938_vm11, %v928_v31, %v931_v41  ;;  %v942_v3 = vsel %vm938_vm11, %v922_v10, %v925_v6 }
 0x110   : > { %v949_v36 = vsel %vm939_vm1, %v946_v12, %v948_v35  ;;  %v951_v40 = vsel %vm941_vm12, %v937_v55, 1326507024  ;;  %v1221_v47 = vand.u32 2139095040, %v5356_v16  ;;  %v678_v30 = vxor.u32 2147483648, %v677_v42  ;;  %v6853_v24 = vld [vmem:[#allocation8_spill] sm:$0xff] }
 0x111   : > { %v4267_v1 = vmin.u32 %v1076_v14, %v5383_v38  ;;  %v944_v23 = vsel %vm940_vm0, %v928_v31, %v943_v26  ;;  %v952_v50 = vsel %vm940_vm0, %v934_v18, %v951_v40  ;;  %v890_v59 = vsel %vm5365_vm8, %v5061_v34, %v887_v52  ;;  %v429_v14 = vpop.permute.xlu0 %428 }
 0x112   : > { %v953_v61 = vsel %vm939_vm1, %v950_v17, %v952_v50  ;;  %v5399_v4 = vmul.u32.u64.low %v5354_v19, %v949_v36  ;;  %v5400_v49 = vmul.u32.u64.high %v5354_v19, %v949_v36, %v5399_v4  ;;  %v6691_v31 = vand.u32 2147483647, %v5356_v16 }
 0x113   : > { %v1078_v5 = vclz %v4267_v1  ;;  %v5404_v39 = vmul.u32.u64.low %v5354_v19, %v953_v61  ;;  %v5405_v6 = vmul.u32.u64.high %v5354_v19, %v953_v61, %v5404_v39  ;;  %4750 = vsinq.f32 %v5334_v43 }
 0x114   : > { %vm5411_vm2 = vcmp.le.f32.partialorder %v594_v33, 0.7853982  ;;  %v945_v10 = vsel %vm939_vm1, %v942_v3, %v944_v23  ;;  %v1222_v41 = vshrl.u32 %v1221_v47, 23  ;;  %4752 = vcosq.f32 %v890_v59 }
 0x115   : > { %v679_v18 = vsel %vm6755_vm9, %v678_v30, %v677_v42  ;;  %v4268_v55 = vadd.s32 4294967294, %v1078_v5  ;;  %v468_v26 = vmul.f32 %v5044_v15, %v419_v53  ;;  %v1066_v12 = vadd.s32 %v5324_v32, %v5338_v54 }
 0x116   : > { %v964_v43 = vadd.s32 1, %v5400_v49  ;;  %v4274_v27 = vadd.s32 4294967169, %v1222_v41  ;;  %v471_v33 = vmul.f32 %v5044_v15, %v434_v45  ;;  %v961_v51 = vmul.u32 %v5354_v19, %v945_v10 }
 0x117   : > { %vm4269_vm3 = vcmp.lt.s32.totalorder %v4268_v55, 0  ;;  %vm963_vm5 = vc.u32 %v5405_v6, %v5399_v4  ;;  %v5428_v42 = vand.u32 8388607, %v6691_v31  ;;  %v5433_v32 = vsel %vm5411_vm2, %v5070_v46, %v679_v18 }
 0x118   : > { %v1081_v54 = vsel %vm4269_vm3, 0, %v4268_v55  ;;  %v965_v35 = vsel %vm963_vm5, %v964_v43, %v5400_v49  ;;  %v1228_v17 = vadd.s32 1, %v4274_v27  ;;  %v5436_v40 = vmul.f32 6.2831855, %v468_v26 }
 0x119   : > { %v1082_v3 = vsub.s32 32, %v1081_v54  ;;  %v1086_v36 = vsub.s32 4294967266, %v1081_v54  ;;  %v966_v19 = vadd.s32 %v965_v35, %v961_v51  ;;  %4754 = vsinq.f32 %v890_v59 }
 0x11a   : > { %6782 = vst [vmem:[#allocation10_spill] sm:$0xff] %v5436_v40  ;;  %v1083_v47 = vshll.u32 %v5383_v38, %v1081_v54  ;;  %vm1229_vm6 = vcmp.gt.s32.totalorder %v1228_v17, 0  ;;  %v5440_v30 = vmul.f32 %v5044_v15, %v429_v14  ;;  %4756 = vcosq.f32 %v5433_v32 }
 0x11b   : > { %v1084_v1 = vshrl.u32 %v1066_v12, %v1082_v3  ;;  %v1087_v23 = vadd.s32 127, %v1086_v36  ;;  %v967_v50 = vadd.s32 536870912, %v966_v19  ;;  %v1230_v53 = vsel %vm1229_vm6, %v1228_v17, 0 }
 0x11c   : > { %v1226_v61 = vor.u32 8388608, %v5428_v42  ;;  %v1232_v49 = vand.u32 31, %v1230_v53  ;;  %v5444_v5 = vmul.f32 6.2831855, %v471_v33  ;;  %v1117_v38 = vand.u32 2139095040, %v5436_v40 }
 0x11d   : > { %v1085_v39 = vor.u32 %v1084_v1, %v1083_v47  ;;  %v1088_v45 = vshll.u32 %v1087_v23, 23  ;;  %v5446_v59 = vshrl.u32 %v967_v50, 30  ;;  %v5449_v10 = vpop.eup %4750  ;;  %v1231_v15 = vshrl.u32 %v1230_v53, 5 }
 0x11e   : > { %6783 = vst [vmem:[#allocation11_spill] sm:$0xff] %v5444_v5  ;;  %v1233_v41 = vsub.s32 32, %v1232_v49  ;;  %v1235_v18 = vshll.u32 %v6701_v56, %v1232_v49  ;;  %v1238_v55 = vshll.u32 %v6697_v58, %v1232_v49  ;;  %v5453_v26 = vpop.eup %4752  ;;  %v1241_v33 = vshll.u32 %v6699_v60, %v1232_v49 }
 0x11f   : > { %6784 = vst [vmem:[#allocation12_spill] sm:$0xff] %v5446_v59  ;;  %6785 = vst [vmem:[#allocation13_spill] sm:$0xff] %v5453_v26  ;;  %v1089_v12 = vor.u32 4788187, %v1088_v45  ;;  %v1092_v43 = vcvt.s32.f32 %v1085_v39  ;;  %v969_v27 = vshll.u32 %v5446_v59, 30  ;;  %v1244_v54 = vshll.u32 %v6706_v62, %v1232_v49 }
 0x120   : > { %v1236_v51 = vshrl.u32 %v6697_v58, %v1233_v41  ;;  %v1239_v42 = vshrl.u32 %v6699_v60, %v1233_v41  ;;  %v1242_v14 = vshrl.u32 %v6706_v62, %v1233_v41  ;;  %v1245_v3 = vshrl.u32 %v6740_v0, %v1233_v41 }
 0x121   : > { %v1090_v35 = vand.u32 2147483647, %v1089_v12  ;;  %v5461_v17 = vsub.s32 %v966_v19, %v969_v27  ;;  %v1247_v36 = vshll.u32 %v6740_v0, %v1232_v49  ;;  %v1248_v50 = vshrl.u32 %v6693_v8, %v1233_v41 }
 0x122   : > { %v1237_v47 = vor.u32 %v1236_v51, %v1235_v18  ;;  %v1240_v1 = vor.u32 %v1239_v42, %v1238_v55  ;;  %v1243_v23 = vor.u32 %v1242_v14, %v1241_v33  ;;  %v1246_v39 = vor.u32 %v1245_v3, %v1244_v54 }
 0x123   : > { %v972_v53 = vsub.s32 0, %v5461_v17  ;;  %v6696_v45 = vand.u32 2147483647, %v5436_v40  ;;  %v1118_v31 = vshrl.u32 %v1117_v38, 23  ;;  %v5468_v22 = vpop.eup %4754  ;;  %vm6726_vm7 = vcmp.lt.s32.totalorder %v5208_v11, 0 }
 0x124   : > { %6786 = vst [vmem:[#allocation14_spill] sm:$0xff] %v5468_v22  ;;  %v1093_v19 = vmul.f32 %v1092_v43, %v1090_v35  ;;  %v1234_v12 = vshrl.u32 %v6701_v56, %v1233_v41  ;;  %v1249_v27 = vor.u32 %v1248_v50, %v1247_v36  ;;  %vm1253_vm11 = vcmp.lt.s32.totalorder %v1231_v15, 4  ;;  %v5474_v55 = vpop.eup %4756 }
 0x125   : > { %v4263_v49 = vmin.u32 %v972_v53, %v5461_v17  ;;  %vm1250_vm12 = vcmp.lt.s32.totalorder %v1231_v15, 1  ;;  %vm1251_vm0 = vcmp.lt.s32.totalorder %v1231_v15, 2  ;;  %v1255_v18 = vsel %vm1253_vm11, %v1243_v23, 2102212464 }
 0x126   : > { %vm1252_vm1 = vcmp.lt.s32.totalorder %v1231_v15, 3  ;;  %v1254_v33 = vsel %vm1250_vm12, %v1234_v12, %v1237_v47  ;;  %v1258_v38 = vsel %vm1250_vm12, %v1237_v47, %v1240_v1  ;;  %v1259_v51 = vsel %vm1253_vm11, %v1246_v39, 920167782 }
 0x127   : > { %vm5479_vm3 = vcmp.le.f32.partialorder %v1010_v29, 0.7853982  ;;  %v6787_v43 = vmov 0  ;;  %v974_v41 = vclz %v4263_v49  ;;  %v1256_v42 = vsel %vm1252_vm1, %v1240_v1, %v1255_v18 }
 0x128   : > { %v6788_v43 = vsel %vm5479_vm3, 4294967295, %v6787_v43  ;;  %v1260_v14 = vsel %vm1252_vm1, %v1243_v23, %v1259_v51  ;;  %v1262_v54 = vsel %vm1250_vm12, %v1240_v1, %v1243_v23  ;;  %v1263_v3 = vsel %vm1253_vm11, %v1249_v27, 1326507024 }
 0x129   : > { %6789 = vst [vmem:[#allocation15_spill] sm:$0xff] %v6788_v43  ;;  %v1261_v35 = vsel %vm1251_vm0, %v1258_v38, %v1260_v14  ;;  %v1266_v36 = vshll.u32 %v1226_v61, 8  ;;  %v5487_v47 = vand.u32 8388607, %v6696_v45  ;;  %v1094_v50 = vxor.u32 2147483648, %v1093_v19 }
 0x12a   : > { %v4264_v53 = vadd.s32 4294967294, %v974_v41  ;;  %v1264_v12 = vsel %vm1252_vm1, %v1246_v39, %v1263_v3  ;;  %v4270_v29 = vadd.s32 4294967169, %v1118_v31  ;;  %v1257_v8 = vsel %vm1251_vm0, %v1254_v33, %v1256_v42 }
 0x12b   : > { %v1265_v49 = vsel %vm1251_vm0, %v1262_v54, %v1264_v12  ;;  %v5491_v18 = vmul.u32.u64.low %v1266_v36, %v1261_v35  ;;  %v5492_v51 = vmul.u32.u64.high %v1266_v36, %v1261_v35, %v5491_v18  ;;  %v962_v27 = vadd.s32 %v5399_v4, %v5405_v6 }
 0x12c   : > { %vm4265_vm5 = vcmp.lt.s32.totalorder %v4264_v53, 0  ;;  %v5495_v1 = vmul.u32.u64.low %v1266_v36, %v1265_v49  ;;  %v5496_v23 = vmul.u32.u64.high %v1266_v36, %v1265_v49, %v5495_v1  ;;  %v1124_v61 = vadd.s32 1, %v4270_v29 }
 0x12d   : > { %v977_v38 = vsel %vm4265_vm5, 0, %v4264_v53  ;;  %v6695_v39 = vand.u32 2147483647, %v5444_v5  ;;  %v1429_v31 = vand.u32 2139095040, %v5444_v5  ;;  %v1095_v15 = vsel %vm6726_vm7, %v1094_v50, %v1093_v19 }
 0x12e   : > { %v978_v33 = vsub.s32 32, %v977_v38  ;;  %v982_v41 = vsub.s32 4294967266, %v977_v38  ;;  %vm1125_vm6 = vcmp.gt.s32.totalorder %v1124_v61, 0  ;;  %v1273_v42 = vmul.u32 %v1266_v36, %v1257_v8 }
 0x12f   : > { %v1276_v14 = vadd.s32 1, %v5492_v51  ;;  %v1122_v54 = vor.u32 8388608, %v5487_v47  ;;  %v1126_v35 = vsel %vm1125_vm6, %v1124_v61, 0  ;;  %v979_v3 = vshll.u32 %v5461_v17, %v977_v38 }
 0x130   : > { %v980_v4 = vshrl.u32 %v962_v27, %v978_v33  ;;  %v983_v6 = vadd.s32 127, %v982_v41  ;;  %vm1275_vm11 = vc.u32 %v5496_v23, %v5491_v18  ;;  %v5512_v19 = vsel %vm5479_vm3, %v5208_v11, %v1095_v15 }
 0x131   : > { %v1277_v50 = vsel %vm1275_vm11, %v1276_v14, %v5492_v51  ;;  %v1128_v8 = vand.u32 31, %v1126_v35  ;;  %v1430_v36 = vshrl.u32 %v1429_v31, 23  ;;  %v5517_v17 = vand.u32 8388607, %v6695_v39 }
 0x132   : > { %v981_v53 = vor.u32 %v980_v4, %v979_v3  ;;  %v984_v12 = vshll.u32 %v983_v6, 23  ;;  %v1278_v47 = vadd.s32 %v1277_v50, %v1273_v42  ;;  %v1127_v29 = vshrl.u32 %v1126_v35, 5 }
 0x133   : > { %v1129_v49 = vsub.s32 32, %v1128_v8  ;;  %v1131_v1 = vshll.u32 %v6701_v56, %v1128_v8  ;;  %v1134_v61 = vshll.u32 %v6697_v58, %v1128_v8  ;;  %v1137_v51 = vshll.u32 %v6699_v60, %v1128_v8 }
 0x134   : > { %v985_v27 = vor.u32 4788187, %v984_v12  ;;  %v988_v38 = vcvt.s32.f32 %v981_v53  ;;  %v1279_v15 = vadd.s32 536870912, %v1278_v47  ;;  %vm6727_vm12 = vcmp.lt.s32.totalorder %v5267_v7, 0 }
 0x135   : > { %v1132_v31 = vshrl.u32 %v6697_v58, %v1129_v49  ;;  %v1135_v33 = vshrl.u32 %v6699_v60, %v1129_v49  ;;  %v1138_v41 = vshrl.u32 %v6706_v62, %v1129_v49  ;;  %v1140_v42 = vshll.u32 %v6706_v62, %v1128_v8 }
 0x136   : > { %v986_v14 = vand.u32 2147483647, %v985_v27  ;;  %v5527_v35 = vshrl.u32 %v1279_v15, 30  ;;  %v1141_v3 = vshrl.u32 %v6740_v0, %v1129_v49  ;;  %v1143_v4 = vshll.u32 %v6740_v0, %v1128_v8 }
 0x137   : > { %v1133_v6 = vor.u32 %v1132_v31, %v1131_v1  ;;  %v1136_v50 = vor.u32 %v1135_v33, %v1134_v61  ;;  %v1139_v53 = vor.u32 %v1138_v41, %v1137_v51  ;;  %v6791_v12 = vmov 1326507024  }
 0x138   : > { %6790 = vst [vmem:[#allocation16_spill] sm:$0xff] %v5527_v35  ;;  %v1144_v39 = vshrl.u32 %v6791_v12, %v1129_v49  ;;  %v989_v45 = vmul.f32 %v988_v38, %v986_v14  ;;  %v1281_v58 = vshll.u32 %v5527_v35, 30  ;;  %v1142_v60 = vor.u32 %v1141_v3, %v1140_v42 }
 0x139   : > { %v4282_v56 = vadd.s32 4294967169, %v1430_v36  ;;  %v6792_v43 = vmov 683565275   ;;  %vm1146_vm0 = vcmp.lt.s32.totalorder %v1127_v29, 1  ;;  %vm1149_vm1 = vcmp.lt.s32.totalorder %v1127_v29, 4 }
 0x13a   : > { %v1130_v11 = vshrl.u32 %v6792_v43, %v1129_v49  ;;  %v1145_v62 = vor.u32 %v1144_v39, %v1143_v4  ;;  %v990_v27 = vxor.u32 2147483648, %v989_v45  ;;  %v5534_v15 = vsub.s32 %v1278_v47, %v1281_v58 }
 0x13b   : > { %vm1147_vm5 = vcmp.lt.s32.totalorder %v1127_v29, 2  ;;  %v1151_v8 = vsel %vm1149_vm1, %v1139_v53, 2102212464  ;;  %vm1148_vm6 = vcmp.lt.s32.totalorder %v1127_v29, 3  ;;  %v1154_v61 = vsel %vm1146_vm0, %v1133_v6, %v1136_v50 }
 0x13c   : > { %v1150_v1 = vsel %vm1146_vm0, %v1130_v11, %v1133_v6  ;;  %v1155_v51 = vsel %vm1149_vm1, %v1142_v60, 920167782  ;;  %v1284_v38 = vsub.s32 0, %v5534_v15  ;;  %v1152_v31 = vsel %vm1148_vm6, %v1136_v50, %v1151_v8 }
 0x13d   : > { %v1156_v33 = vsel %vm1148_vm6, %v1139_v53, %v1155_v51  ;;  %v1158_v41 = vsel %vm1146_vm0, %v1136_v50, %v1139_v53  ;;  %v1159_v49 = vsel %vm1149_vm1, %v1145_v62, 1326507024  ;;  %v1162_v39 = vshll.u32 %v1122_v54, 8  ;;  %v444_v50 = vpop.permute.xlu1 %443 }
 0x13e   : > { %v1157_v36 = vsel %vm1147_vm5, %v1154_v61, %v1156_v33  ;;  %v1434_v42 = vor.u32 8388608, %v5517_v17  ;;  %v991_v58 = vsel %vm6727_vm12, %v990_v27, %v989_v45  ;;  %v4275_v47 = vmin.u32 %v1284_v38, %v5534_v15 }
 0x13f   : > { %v1160_v14 = vsel %vm1148_vm6, %v1142_v60, %v1159_v49  ;;  %v1436_v11 = vadd.s32 1, %v4282_v56  ;;  %v1153_v3 = vsel %vm1147_vm5, %v1150_v1, %v1152_v31  ;;  %4758 = vsinq.f32 %v5433_v32  ;;  %v5565_v1 = vld [vmem:[%s6683_s2] ss:$0 sm:$0xff] }
 0x140   : > { %v1161_v4 = vsel %vm1147_vm5, %v1158_v41, %v1160_v14  ;;  %v5544_v6 = vmul.u32.u64.low %v1162_v39, %v1157_v36  ;;  %v5545_v8 = vmul.u32.u64.high %v1162_v39, %v1157_v36, %v5544_v6  ;;  %v1286_v62 = vclz %v4275_v47 }
 0x141   : > { %v5548_v54 = vmul.u32.u64.low %v1162_v39, %v1161_v4  ;;  %v5549_v53 = vmul.u32.u64.high %v1162_v39, %v1161_v4, %v5548_v54  ;;  %vm1437_vm11 = vcmp.gt.s32.totalorder %v1436_v11, 0  ;;  %v6793_v45 = vand.u32 2147483647, %v5267_v7 }
 0x142   : > { %v6794_v56 = vmov 0  ;;  %v1438_v60 = vsel %vm1437_vm11, %v1436_v11, 0  ;;  %v5559_v17 = vmul.f32 6.2831855, %v5440_v30  ;;  %4760 = vcosq.f32 %v5512_v19 }
 0x143   : > { %vm5554_vm0 = vcmp.le.f32.partialorder %v6793_v45, 0.7853982  ;;  %v4276_v29 = vadd.s32 4294967294, %v1286_v62  ;;  %v1440_v27 = vand.u32 31, %v1438_v60  ;;  %v5568_v32 = vmul.f32 %v5565_v1, %v444_v50 }
 0x144   : > { %v6795_v56 = vsel %vm5554_vm0, 4294967295, %v6794_v56  ;;  %v5573_v61 = vsel %vm5554_vm0, %v5267_v7, %v991_v58  ;;  %v1274_v30 = vadd.s32 %v5491_v18, %v5496_v23  ;;  %v1169_v51 = vmul.u32 %v1162_v39, %v1153_v3 }
 0x145   : > { %6796 = vst [vmem:[#allocation17_spill] sm:$0xff] %v6795_v56  ;;  %v1172_v38 = vadd.s32 1, %v5545_v8  ;;  %vm4277_vm1 = vcmp.lt.s32.totalorder %v4276_v29, 0  ;;  %vm1171_vm5 = vc.u32 %v5549_v53, %v5544_v6  ;;  %v1441_v31 = vsub.s32 32, %v1440_v27 }
 0x146   : > { %v5580_v33 = vshll.u32 %v1434_v42, 8  ;;  %v1289_v41 = vsel %vm4277_vm1, 0, %v4276_v29  ;;  %v5583_v49 = vshrl.u32 %v1438_v60, 5  ;;  %v1325_v23 = vand.u32 2139095040, %v5559_v17 }
 0x147   : > { %v1173_v36 = vsel %vm1171_vm5, %v1172_v38, %v5545_v8  ;;  %v1290_v47 = vsub.s32 32, %v1289_v41  ;;  %v1294_v14 = vsub.s32 4294967266, %v1289_v41  ;;  %v1443_v39 = vshll.u32 %v6792_v43, %v1440_v27 }
 0x148   : > { %v1174_v18 = vadd.s32 %v1173_v36, %v1169_v51  ;;  %v6797_v11 = vmov 2475754826   ;;  %v6798_v42 = vmov 2131351028   ;;  %v6799_v45 = vmov 2102212464  }
 0x149   : > { %v1444_v3 = vshrl.u32 %v6797_v11, %v1441_v31  ;;  %v1446_v4 = vshll.u32 %v6797_v11, %v1440_v27  ;;  %v1447_v50 = vshrl.u32 %v6798_v42, %v1441_v31  ;;  %v1292_v62 = vshrl.u32 %v1274_v30, %v1290_v47  ;;  %v5598_v7 = vpop.eup %4758 }
 0x14a   : > { %v1295_v54 = vadd.s32 127, %v1294_v14  ;;  %v1175_v8 = vadd.s32 536870912, %v1174_v18  ;;  %v1450_v60 = vshrl.u32 %v6799_v45, %v1441_v31  ;;  %v1291_v29 = vshll.u32 %v5534_v15, %v1289_v41 }
 0x14b   : > { %v1449_v38 = vshll.u32 %v6798_v42, %v1440_v27  ;;  %v1452_v51 = vshll.u32 %v6799_v45, %v1440_v27  ;;  %v1453_v36 = vshrl.u32 %v6740_v0, %v1441_v31  ;;  %v1445_v48 = vor.u32 %v1444_v3, %v1443_v39 }
 0x14c   : > { %v1296_v58 = vshll.u32 %v1295_v54, 23  ;;  %v5596_v35 = vshrl.u32 %v1175_v8, 30  ;;  %v1448_v56 = vor.u32 %v1447_v50, %v1446_v4  ;;  %v1455_v14 = vshll.u32 %v6740_v0, %v1440_v27  ;;  %v5602_v15 = vpop.eup %4760 }
 0x14d   : > { %v1451_v30 = vor.u32 %v1450_v60, %v1449_v38  ;;  %v1454_v47 = vor.u32 %v1453_v36, %v1452_v51  ;;  %v1456_v59 = vshrl.u32 %v6791_v12, %v1441_v31  ;;  %6801 = vst [vmem:[#allocation19_spill] sm:$0xff] %v5602_v15  ;;  %v1293_v41 = vor.u32 %v1292_v62, %v1291_v29 }
 0x14e   : > { %6800 = vst [vmem:[#allocation18_spill] sm:$0xff] %v5596_v35  ;;  %v1297_v26 = vor.u32 4788187, %v1296_v58  ;;  %v1177_v22 = vshll.u32 %v5596_v35, 30  ;;  %v6802_v54 = vand.u32 2147483647, %v5559_v17  ;;  %v1442_v39 = vshrl.u32 %v6792_v43, %v1441_v31 }
 0x14f   : > { %v1457_v3 = vor.u32 %v1456_v59, %v1455_v14  ;;  %vm1458_vm6 = vcmp.lt.s32.totalorder %v5583_v49, 1  ;;  %vm1460_vm11 = vcmp.lt.s32.totalorder %v5583_v49, 3  ;;  %vm1461_vm1 = vcmp.lt.s32.totalorder %v5583_v49, 4 }
 0x150   : > { %v1329_v8 = vand.u32 8388607, %v6802_v54  ;;  %v1298_v4 = vand.u32 2147483647, %v1297_v26  ;;  %v5610_v27 = vsub.s32 %v1174_v18, %v1177_v22  ;;  %v1466_v50 = vsel %vm1458_vm6, %v1445_v48, %v1448_v56 }
 0x151   : > { %v1463_v62 = vsel %vm1461_vm1, %v1451_v30, 2102212464  ;;  %v1467_v58 = vsel %vm1461_vm1, %v1454_v47, 920167782  ;;  %v1470_v60 = vsel %vm1458_vm6, %v1448_v56, %v1451_v30  ;;  %v1471_v29 = vsel %vm1461_vm1, %v1457_v3, 1326507024  ;;  %v439_v3 = vpop.permute.xlu0 %438 }
 0x152   : > { %v1300_v38 = vcvt.s32.f32 %v1293_v41  ;;  %v1180_v51 = vsub.s32 0, %v5610_v27  ;;  %vm1459_vm5 = vcmp.lt.s32.totalorder %v5583_v49, 2  ;;  %v1468_v59 = vsel %vm1460_vm11, %v1451_v30, %v1467_v58 }
 0x153   : > { %v1462_v31 = vsel %vm1458_vm6, %v1442_v39, %v1445_v48  ;;  %v1469_v22 = vsel %vm1459_vm5, %v1466_v50, %v1468_v59  ;;  %v1472_v26 = vsel %vm1460_vm11, %v1454_v47, %v1471_v29  ;;  %v1326_v18 = vshrl.u32 %v1325_v23, 23 }
 0x154   : > { %v1301_v36 = vmul.f32 %v1300_v38, %v1298_v4  ;;  %v4271_v14 = vmin.u32 %v1180_v51, %v5610_v27  ;;  %v1464_v41 = vsel %vm1460_vm11, %v1448_v56, %v1463_v62  ;;  %v1473_v54 = vsel %vm1459_vm5, %v1470_v60, %v1472_v26  ;;  %v454_v56 = vpop.permute.xlu1 %453 }
 0x155   : > { %v5627_v30 = vmul.u32.u64.low %v5580_v33, %v1473_v54  ;;  %v5628_v48 = vmul.u32.u64.high %v5580_v33, %v1473_v54, %v5627_v30  ;;  %v5631_v39 = vmul.u32.u64.low %v5580_v33, %v1469_v22  ;;  %v5632_v50 = vmul.u32.u64.high %v5580_v33, %v1469_v22, %v5631_v39 }
 0x156   : > { %4762 = vsinq.f32 %v5512_v19  ;;  %vm6725_vm6 = vcmp.lt.s32.totalorder %v5356_v16, 0  ;;  %v1182_v23 = vclz %v4271_v14  ;;  %v4278_v47 = vadd.s32 4294967169, %v1326_v18 }
 0x157   : > { %4764 = vcosq.f32 %v5573_v61  ;;  %v1465_v4 = vsel %vm1459_vm5, %v1462_v31, %v1464_v41  ;;  %v5641_v62 = vmul.f32 6.2831855, %v5568_v32  ;;  %v5644_v58 = vmul.f32 %v5565_v1, %v439_v3 }
 0x158   : > { %4766 = vsinq.f32 %v5573_v61  ;;  %v1302_v60 = vxor.u32 2147483648, %v1301_v36  ;;  %v4272_v19 = vadd.s32 4294967294, %v1182_v23  ;;  %v1332_v29 = vadd.s32 1, %v4278_v47 }
 0x159   : > { %vm1483_vm11 = vc.u32 %v5628_v48, %v5631_v39  ;;  %v1484_v38 = vadd.s32 1, %v5632_v50  ;;  %v1330_v51 = vor.u32 8388608, %v1329_v8  ;;  %v5651_v49 = vmul.f32 %v5565_v1, %v454_v56 }
 0x15a   : > { %v1170_v32 = vadd.s32 %v5544_v6, %v5549_v53  ;;  %vm4273_vm1 = vcmp.lt.s32.totalorder %v4272_v19, 0  ;;  %v1481_v59 = vmul.u32 %v5580_v33, %v1465_v4  ;;  %vm1333_vm5 = vcmp.gt.s32.totalorder %v1332_v29, 0 }
 0x15b   : > { %v1185_v61 = vsel %vm4273_vm1, 0, %v4272_v19  ;;  %v1485_v31 = vsel %vm1483_vm11, %v1484_v38, %v5632_v50  ;;  %v1334_v22 = vsel %vm1333_vm5, %v1332_v29, 0  ;;  %v1637_v26 = vand.u32 2139095040, %v5641_v62 }
 0x15c   : > { %v5660_v18 = vsel %vm6725_vm6, %v1302_v60, %v1301_v36  ;;  %v1186_v8 = vsub.s32 32, %v1185_v61  ;;  %v1190_v14 = vsub.s32 4294967266, %v1185_v61  ;;  %v1486_v41 = vadd.s32 %v1485_v31, %v1481_v59 }
 0x15d   : > { %v1187_v54 = vshll.u32 %v5610_v27, %v1185_v61  ;;  %v1336_v6 = vand.u32 31, %v1334_v22  ;;  %v5663_v53 = vshll.u32 %v1330_v51, 8  ;;  %v1335_v23 = vshrl.u32 %v1334_v22, 5 }
 0x15e   : > { %v1188_v3 = vshrl.u32 %v1170_v32, %v1186_v8  ;;  %v1191_v30 = vadd.s32 127, %v1190_v14  ;;  %v1487_v50 = vadd.s32 536870912, %v1486_v41  ;;  %v1638_v4 = vshrl.u32 %v1637_v26, 23 }
 0x15f   : > { %v1337_v47 = vsub.s32 32, %v1336_v6  ;;  %v1339_v56 = vshll.u32 %v6792_v43, %v1336_v6  ;;  %v1342_v36 = vshll.u32 %v6797_v11, %v1336_v6  ;;  %v1345_v38 = vshll.u32 %v6798_v42, %v1336_v6 }
 0x160   : > { %v5668_v60 = vpop.eup %4762  ;;  %v1189_v19 = vor.u32 %v1188_v3, %v1187_v54  ;;  %v1192_v29 = vshll.u32 %v1191_v30, 23  ;;  %v5670_v27 = vshrl.u32 %v1487_v50, 30  ;;  %v6806_v32 = vand.u32 2147483647, %v5356_v16 }
 0x161   : > { %6803 = vst [vmem:[#allocation20_spill] sm:$0xff] %v5668_v60  ;;  %v5673_v51 = vpop.eup %4764  ;;  %v6807_v59 = vmov 0  ;;  %v1340_v61 = vshrl.u32 %v6797_v11, %v1337_v47  ;;  %v1343_v31 = vshrl.u32 %v6798_v42, %v1337_v47  ;;  %v1346_v22 = vshrl.u32 %v6799_v45, %v1337_v47 }
 0x162   : > { %6804 = vst [vmem:[#allocation21_spill] sm:$0xff] %v5670_v27  ;;  %6805 = vst [vmem:[#allocation22_spill] sm:$0xff] %v5673_v51  ;;  %vm5677_vm11 = vcmp.le.f32.partialorder %v6806_v32, 0.7853982  ;;  %v1348_v26 = vshll.u32 %v6799_v45, %v1336_v6  ;;  %v5685_v8 = vpop.eup %4766  ;;  %v1193_v14 = vor.u32 4788187, %v1192_v29  ;;  %v1196_v54 = vcvt.s32.f32 %v1189_v19 }
 0x163   : > { %v6808_v59 = vsel %vm5677_vm11, 4294967295, %v6807_v59  ;;  %v1489_v3 = vshll.u32 %v5670_v27, 30  ;;  %v1349_v30 = vshrl.u32 %v6740_v0, %v1337_v47  ;;  %v1341_v50 = vor.u32 %v1340_v61, %v1339_v56 }
 0x164   : > { %6809 = vst [vmem:[#allocation23_spill] sm:$0xff] %v6808_v59  ;;  %v1344_v32 = vor.u32 %v1343_v31, %v1342_v36  ;;  %v1347_v33 = vor.u32 %v1346_v22, %v1345_v38  ;;  %v1351_v35 = vshll.u32 %v6740_v0, %v1336_v6  ;;  %vm6736_vm1 = vcmp.lt.s32.totalorder %v5436_v40, 0 }
 0x165   : > { %v1194_v15 = vand.u32 2147483647, %v1193_v14  ;;  %v5691_v60 = vsub.s32 %v1486_v41, %v1489_v3  ;;  %v1350_v51 = vor.u32 %v1349_v30, %v1348_v26  ;;  %v1352_v57 = vshrl.u32 %v6791_v12, %v1337_v47 }
 0x166   : > { %v1338_v29 = vshrl.u32 %v6792_v43, %v1337_v47  ;;  %vm1354_vm5 = vcmp.lt.s32.totalorder %v1335_v23, 1  ;;  %vm1355_vm6 = vcmp.lt.s32.totalorder %v1335_v23, 2  ;;  %vm1356_vm7 = vcmp.lt.s32.totalorder %v1335_v23, 3 }
 0x167   : > { %v1197_v19 = vmul.f32 %v1196_v54, %v1194_v15  ;;  %v1492_v56 = vsub.s32 0, %v5691_v60  ;;  %v1353_v36 = vor.u32 %v1352_v57, %v1351_v35  ;;  %vm1357_vm12 = vcmp.lt.s32.totalorder %v1335_v23, 4 }
 0x168   : > { %v6810_v6 = vand.u32 2147483647, %v5436_v40  ;;  %v6811_v38 = vmov 0  ;;  %v1358_v41 = vsel %vm1354_vm5, %v1338_v29, %v1341_v50  ;;  %v1359_v61 = vsel %vm1357_vm12, %v1347_v33, 2102212464 }
 0x169   : > { %v1362_v31 = vsel %vm1354_vm5, %v1341_v50, %v1344_v32  ;;  %v1363_v22 = vsel %vm1357_vm12, %v1350_v51, 920167782  ;;  %v1198_v26 = vxor.u32 2147483648, %v1197_v19  ;;  %v4283_v47 = vmin.u32 %v1492_v56, %v5691_v60 }
 0x16a   : > { %vm5698_vm4 = vcmp.le.f32.partialorder %v6810_v6, 0.7853982  ;;  %v1364_v14 = vsel %vm1356_vm7, %v1347_v33, %v1363_v22  ;;  %v1366_v15 = vsel %vm1354_vm5, %v1344_v32, %v1347_v33  ;;  %v1360_v54 = vsel %vm1356_vm7, %v1344_v32, %v1359_v61 }
 0x16b   : > { %v6812_v38 = vsel %vm5698_vm4, 4294967295, %v6811_v38  ;;  %v1365_v57 = vsel %vm1355_vm6, %v1362_v31, %v1364_v14  ;;  %v1367_v35 = vsel %vm1357_vm12, %v1353_v36, 1326507024  ;;  %v4290_v3 = vadd.s32 4294967169, %v1638_v4  ;;  %v449_v36 = vpop.permute.xlu0 %448 }
 0x16c   : > { %6813 = vst [vmem:[#allocation24_spill] sm:$0xff] %v6812_v38  ;;  %v1306_v30 = vsel %vm5677_vm11, %v5356_v16, %v5660_v18  ;;  %v1494_v29 = vclz %v4283_v47  ;;  %v1368_v50 = vsel %vm1356_vm7, %v1350_v51, %v1367_v35  ;;  %v5712_v6 = vmul.f32 6.2831855, %v5644_v58 }
 0x16d   : > { %v1369_v56 = vsel %vm1355_vm6, %v1366_v15, %v1368_v50  ;;  %v5716_v33 = vmul.u32.u64.low %v5663_v53, %v1365_v57  ;;  %v5717_v32 = vmul.u32.u64.high %v5663_v53, %v1365_v57, %v5716_v33  ;;  %v5721_v4 = vmul.f32 6.2831855, %v5651_v49 }
 0x16e   : > { %v4284_v61 = vadd.s32 4294967294, %v1494_v29  ;;  %v1361_v18 = vsel %vm1355_vm6, %v1358_v41, %v1360_v54  ;;  %v5725_v31 = vmul.u32.u64.low %v5663_v53, %v1369_v56  ;;  %v5726_v51 = vmul.u32.u64.high %v5663_v53, %v1369_v56, %v5725_v31 }
 0x16f   : > { %4768 = vcosq.f32 %v1306_v30  ;;  %v1199_v58 = vsel %vm6736_vm1, %v1198_v26, %v1197_v19  ;;  %v6814_v22 = vand.u32 2147483647, %v5641_v62  ;;  %v1644_v14 = vadd.s32 1, %v4290_v3 }
 0x170   : > { %4770 = vsinq.f32 %v1306_v30  ;;  %v1482_v49 = vadd.s32 %v5631_v39, %v5628_v48  ;;  %vm4285_vm7 = vcmp.lt.s32.totalorder %v4284_v61, 0  ;;  %v5737_v23 = vmul.f32 %v5565_v1, %v449_v36 }
 0x171   : > { %v5732_v47 = vand.u32 8388607, %v6814_v22  ;;  %v1497_v41 = vsel %vm4285_vm7, 0, %v4284_v61  ;;  %v1377_v15 = vmul.u32 %v5663_v53, %v1361_v18  ;;  %v1380_v54 = vadd.s32 1, %v5717_v32 }
 0x172   : > { %vm1645_vm12 = vcmp.gt.s32.totalorder %v1644_v14, 0  ;;  %v5744_v19 = vsel %vm5698_vm4, %v5436_v40, %v1199_v58  ;;  %v1498_v26 = vsub.s32 32, %v1497_v41  ;;  %v1502_v57 = vsub.s32 4294967266, %v1497_v41 }
 0x173   : > { %v1533_v35 = vand.u32 2139095040, %v5712_v6  ;;  %v1499_v48 = vshll.u32 %v5691_v60, %v1497_v41  ;;  %vm1379_vm6 = vc.u32 %v5726_v51, %v5716_v33  ;;  %v1642_v1 = vor.u32 8388608, %v5732_v47 }
 0x174   : > { %v1646_v39 = vsel %vm1645_vm12, %v1644_v14, 0  ;;  %v1500_v53 = vshrl.u32 %v1482_v49, %v1498_v26  ;;  %v1503_v3 = vadd.s32 127, %v1502_v57  ;;  %v1381_v30 = vsel %vm1379_vm6, %v1380_v54, %v5717_v32 }
 0x175   : > { %v1647_v29 = vshrl.u32 %v1646_v39, 5  ;;  %v1382_v50 = vadd.s32 %v1381_v30, %v1377_v15  ;;  %v1648_v56 = vand.u32 31, %v1646_v39  ;;  %v1534_v60 = vshrl.u32 %v1533_v35, 23 }
 0x176   : > { %v1501_v18 = vor.u32 %v1500_v53, %v1499_v48  ;;  %v1504_v31 = vshll.u32 %v1503_v3, 23  ;;  %vm6747_vm12 = vcmp.lt.s32.totalorder %v5444_v5, 0  ;;  %4772 = vcosq.f32 %v5744_v19 }
 0x177   : > { %vm1666_vm5 = vcmp.lt.s32.totalorder %v1647_v29, 1  ;;  %v1383_v58 = vadd.s32 536870912, %v1382_v50  ;;  %v1649_v22 = vsub.s32 32, %v1648_v56  ;;  %v1651_v47 = vshll.u32 %v6792_v43, %v1648_v56 }
 0x178   : > { %v1654_v14 = vshll.u32 %v6797_v11, %v1648_v56  ;;  %vm1667_vm7 = vcmp.lt.s32.totalorder %v1647_v29, 2  ;;  %v1505_v32 = vor.u32 4788187, %v1504_v31  ;;  %v1508_v49 = vcvt.s32.f32 %v1501_v18 }
 0x179   : > { %v1657_v41 = vshll.u32 %v6798_v42, %v1648_v56  ;;  %v1660_v15 = vshll.u32 %v6799_v45, %v1648_v56  ;;  %v5759_v54 = vpop.eup %4768  ;;  %v5761_v26 = vshrl.u32 %v1383_v58, 30  ;;  %v1650_v57 = vshrl.u32 %v6792_v43, %v1649_v22 }
 0x17a   : > { %6815 = vst [vmem:[#allocation25_spill] sm:$0xff] %v5759_v54  ;;  %v1652_v35 = vshrl.u32 %v6797_v11, %v1649_v22  ;;  %v1655_v48 = vshrl.u32 %v6798_v42, %v1649_v22  ;;  %v5766_v39 = vpop.eup %4770  ;;  %v1506_v53 = vand.u32 2147483647, %v1505_v32  ;;  %v1658_v3 = vshrl.u32 %v6799_v45, %v1649_v22 }
 0x17b   : > { %6816 = vst [vmem:[#allocation26_spill] sm:$0xff] %v5761_v26  ;;  %6817 = vst [vmem:[#allocation27_spill] sm:$0xff] %v5766_v39  ;;  %v1661_v30 = vshrl.u32 %v6740_v0, %v1649_v22  ;;  %v1663_v18 = vshll.u32 %v6740_v0, %v1648_v56  ;;  %v1385_v31 = vshll.u32 %v5761_v26, 30  ;;  %v1664_v36 = vshrl.u32 %v6791_v12, %v1649_v22 }
 0x17c   : > { %v1653_v61 = vor.u32 %v1652_v35, %v1651_v47  ;;  %v1656_v58 = vor.u32 %v1655_v48, %v1654_v14  ;;  %v1509_v27 = vmul.f32 %v1508_v49, %v1506_v53  ;;  %v1659_v59 = vor.u32 %v1658_v3, %v1657_v41 }
 0x17d   : > { %v1662_v16 = vor.u32 %v1661_v30, %v1660_v15  ;;  %vm1668_vm6 = vcmp.lt.s32.totalorder %v1647_v29, 3  ;;  %v5773_v54 = vsub.s32 %v1382_v50, %v1385_v31  ;;  %v1665_v39 = vor.u32 %v1664_v36, %v1663_v18 }
 0x17e   : > { %vm1669_vm1 = vcmp.lt.s32.totalorder %v1647_v29, 4  ;;  %v1670_v32 = vsel %vm1666_vm5, %v1650_v57, %v1653_v61  ;;  %v1510_v38 = vxor.u32 2147483648, %v1509_v27  ;;  %v1674_v56 = vsel %vm1666_vm5, %v1653_v61, %v1656_v58 }
 0x17f   : > { %v1671_v40 = vsel %vm1669_vm1, %v1659_v59, 2102212464  ;;  %v1675_v0 = vsel %vm1669_vm1, %v1662_v16, 920167782  ;;  %v1388_v47 = vsub.s32 0, %v5773_v54  ;;  %v1678_v49 = vsel %vm1666_vm5, %v1656_v58, %v1659_v59 }
 0x180   : > { %v1672_v14 = vsel %vm1668_vm6, %v1656_v58, %v1671_v40  ;;  %v1676_v22 = vsel %vm1668_vm6, %v1659_v59, %v1675_v0  ;;  %v1679_v41 = vsel %vm1669_vm1, %v1665_v39, 1326507024  ;;  %v1682_v36 = vshll.u32 %v1642_v1, 8 }
 0x181   : > { %v1677_v50 = vsel %vm1667_vm7, %v1674_v56, %v1676_v22  ;;  %v4286_v15 = vadd.s32 4294967169, %v1534_v60  ;;  %v1511_v57 = vsel %vm6747_vm12, %v1510_v38, %v1509_v27  ;;  %v4279_v35 = vmin.u32 %v1388_v47, %v5773_v54 }
 0x182   : > { %v1680_v61 = vsel %vm1668_vm6, %v1662_v16, %v1679_v41  ;;  %v6818_v48 = vand.u32 2147483647, %v5712_v6  ;;  %v1673_v0 = vsel %vm1667_vm7, %v1670_v32, %v1672_v14  ;;  %4774 = vsinq.f32 %v5744_v19 }
 0x183   : > { %v1681_v40 = vsel %vm1667_vm7, %v1678_v49, %v1680_v61  ;;  %v5792_v59 = vmul.u32.u64.low %v1682_v36, %v1677_v50  ;;  %v5793_v3 = vmul.u32.u64.high %v1682_v36, %v1677_v50, %v5792_v59  ;;  %v1390_v1 = vclz %v4279_v35 }
 0x184   : > { %v5788_v53 = vand.u32 8388607, %v6818_v48  ;;  %v5797_v27 = vmul.u32.u64.low %v1682_v36, %v1681_v40  ;;  %v5798_v38 = vmul.u32.u64.high %v1682_v36, %v1681_v40, %v5797_v27  ;;  %v6819_v16 = vand.u32 2147483647, %v5444_v5 }
 0x185   : > { %v6820_v60 = vmov 0  ;;  %v1378_v29 = vadd.s32 %v5716_v33, %v5726_v51  ;;  %v1540_v39 = vadd.s32 1, %v4286_v15  ;;  %v4280_v18 = vadd.s32 4294967294, %v1390_v1 }
 0x186   : > { %vm5803_vm1 = vcmp.le.f32.partialorder %v6819_v16, 0.7853982  ;;  %v1689_v31 = vmul.u32 %v1682_v36, %v1673_v0  ;;  %v1692_v19 = vadd.s32 1, %v5793_v3  ;;  %v6823_v56 = vand.u32 2147483647, %v5721_v4 }
 0x187   : > { %v6821_v60 = vsel %vm5803_vm1, 4294967295, %v6820_v60  ;;  %v5812_v30 = vsel %vm5803_vm1, %v5444_v5, %v1511_v57  ;;  %vm1541_vm5 = vcmp.gt.s32.totalorder %v1540_v39, 0  ;;  %vm4281_vm7 = vcmp.lt.s32.totalorder %v4280_v18, 0 }
 0x188   : > { %6822 = vst [vmem:[#allocation28_spill] sm:$0xff] %v6821_v60  ;;  %v5819_v47 = vand.u32 8388607, %v6823_v56  ;;  %vm1691_vm6 = vc.u32 %v5798_v38, %v5792_v59  ;;  %v1542_v33 = vsel %vm1541_vm5, %v1540_v39, 0  ;;  %v5824_v51 = vmul.f32 6.2831855, %v5737_v23 }
 0x189   : > { %v1393_v14 = vsel %vm4281_vm7, 0, %v4280_v18  ;;  %v1693_v22 = vsel %vm1691_vm6, %v1692_v19, %v5793_v3  ;;  %v1543_v49 = vshrl.u32 %v1542_v33, 5  ;;  %v1544_v50 = vand.u32 31, %v1542_v33  ;;  %v5836_v18 = vpop.eup %4772 }
 0x18a   : > { %v1394_v41 = vsub.s32 32, %v1393_v14  ;;  %v1395_v36 = vshll.u32 %v5773_v54, %v1393_v14  ;;  %v1398_v15 = vsub.s32 4294967266, %v1393_v14  ;;  %v1694_v57 = vadd.s32 %v1693_v22, %v1689_v31 }
 0x18b   : > { %v1545_v35 = vsub.s32 32, %v1544_v50  ;;  %v1547_v61 = vshll.u32 %v6792_v43, %v1544_v50  ;;  %v1550_v48 = vshll.u32 %v6797_v11, %v1544_v50  ;;  %v1553_v0 = vshll.u32 %v6798_v42, %v1544_v50 }
 0x18c   : > { %v1396_v40 = vshrl.u32 %v1378_v29, %v1394_v41  ;;  %v1399_v23 = vadd.s32 127, %v1398_v15  ;;  %v1695_v1 = vadd.s32 536870912, %v1694_v57  ;;  %v1556_v27 = vshll.u32 %v6799_v45, %v1544_v50  ;;  %v5841_v14 = vpop.eup %4774 }
 0x18d   : > { %v1546_v3 = vshrl.u32 %v6792_v43, %v1545_v35  ;;  %v1548_v16 = vshrl.u32 %v6797_v11, %v1545_v35  ;;  %v1551_v54 = vshrl.u32 %v6798_v42, %v1545_v35  ;;  %v1554_v39 = vshrl.u32 %v6799_v45, %v1545_v35 }
 0x18e   : > { %v1397_v31 = vor.u32 %v1396_v40, %v1395_v36  ;;  %v1400_v19 = vshll.u32 %v1399_v23, 23  ;;  %v5838_v56 = vshrl.u32 %v1695_v1, 30  ;;  %v6825_v33 = vmov 920167782  }
 0x18f   : > { %v1557_v29 = vshrl.u32 %v6825_v33, %v1545_v35  ;;  %vm6754_vm5 = vcmp.lt.s32.totalorder %v5559_v17, 0  ;;  %v1549_v22 = vor.u32 %v1548_v16, %v1547_v61  ;;  %v1552_v41 = vor.u32 %v1551_v54, %v1550_v48 }
 0x190   : > { %6824 = vst [vmem:[#allocation29_spill] sm:$0xff] %v5838_v56  ;;  %v1555_v15 = vor.u32 %v1554_v39, %v1553_v0  ;;  %v1559_v32 = vshll.u32 %v6825_v33, %v1544_v50  ;;  %v1401_v58 = vor.u32 4788187, %v1400_v19  ;;  %v1404_v60 = vcvt.s32.f32 %v1397_v31 }
 0x191   : > { %v1697_v5 = vshll.u32 %v5838_v56, 30  ;;  %v1558_v26 = vor.u32 %v1557_v29, %v1556_v27  ;;  %v1560_v36 = vshrl.u32 %v6791_v12, %v1545_v35  ;;  %vm1562_vm7 = vcmp.lt.s32.totalorder %v1543_v49, 1 }
 0x192   : > { %vm1563_vm6 = vcmp.lt.s32.totalorder %v1543_v49, 2  ;;  %vm1564_vm12 = vcmp.lt.s32.totalorder %v1543_v49, 3  ;;  %v1402_v40 = vand.u32 2147483647, %v1401_v58  ;;  %vm1565_vm10 = vcmp.lt.s32.totalorder %v1543_v49, 4 }
 0x193   : > { %v5847_v23 = vsub.s32 %v1694_v57, %v1697_v5  ;;  %v1566_v61 = vsel %vm1562_vm7, %v1546_v3, %v1549_v22  ;;  %v1561_v48 = vor.u32 %v1560_v36, %v1559_v32  ;;  %v1567_v0 = vsel %vm1565_vm10, %v1555_v15, 2102212464 }
 0x194   : > { %v1570_v50 = vsel %vm1562_vm7, %v1549_v22, %v1552_v41  ;;  %v1571_v1 = vsel %vm1565_vm10, %v1558_v26, 920167782  ;;  %v1405_v16 = vmul.f32 %v1404_v60, %v1402_v40  ;;  %v1568_v27 = vsel %vm1564_vm12, %v1552_v41, %v1567_v0 }
 0x195   : > { %v1700_v54 = vsub.s32 0, %v5847_v23  ;;  %v1572_v35 = vsel %vm1564_vm12, %v1555_v15, %v1571_v1  ;;  %v1574_v5 = vsel %vm1562_vm7, %v1552_v41, %v1555_v15  ;;  %v1575_v58 = vsel %vm1565_vm10, %v1561_v48, 1326507024 }
 0x196   : > { %v1573_v39 = vsel %vm1563_vm6, %v1570_v50, %v1572_v35  ;;  %v6826_v57 = vor.u32 8388608, %v5788_v53  ;;  %v1406_v32 = vxor.u32 2147483648, %v1405_v16  ;;  %v1569_v19 = vsel %vm1563_vm6, %v1566_v61, %v1568_v27 }
 0x197   : > { %v4291_v31 = vmin.u32 %v1700_v54, %v5847_v23  ;;  %v1576_v60 = vsel %vm1564_vm12, %v1558_v26, %v1575_v58  ;;  %v6827_v40 = vand.u32 2139095040, %v5721_v4  ;;  %4776 = vcosq.f32 %v5812_v30 }
 0x198   : > { %v1578_v3 = vshll.u32 %v6826_v57, 8  ;;  %v1577_v29 = vsel %vm1563_vm6, %v1574_v5, %v1576_v60  ;;  %v1407_v41 = vsel %vm6754_vm5, %v1406_v32, %v1405_v16  ;;  %v6828_v61 = vand.u32 2147483647, %v5559_v17 }
 0x199   : > { %v1846_v0 = vshrl.u32 %v6827_v40, 23  ;;  %v1702_v53 = vclz %v4291_v31  ;;  %4778 = vsinq.f32 %v5812_v30  ;;  %v1690_v50 = vadd.s32 %v5792_v59, %v5798_v38 }
 0x19a   : > { %v5862_v22 = vmul.u32.u64.low %v1578_v3, %v1573_v39  ;;  %v5863_v36 = vmul.u32.u64.high %v1578_v3, %v1573_v39, %v5862_v22  ;;  %v5869_v15 = vmul.u32.u64.low %v1578_v3, %v1577_v29  ;;  %v5870_v48 = vmul.u32.u64.high %v1578_v3, %v1577_v29, %v5869_v15 }
 0x19b   : > { %vm5875_vm10 = vcmp.le.f32.partialorder %v6828_v61, 0.7853982  ;;  %v4298_v49 = vadd.s32 4294967169, %v1846_v0  ;;  %v4292_v1 = vadd.s32 4294967294, %v1702_v53  ;;  %v1741_v16 = vand.u32 2139095040, %v5824_v51 }
 0x19c   : > { %v1410_v54 = vsel %vm5875_vm10, %v5559_v17, %v1407_v41  ;;  %v1585_v27 = vmul.u32 %v1578_v3, %v1569_v19  ;;  %v1588_v35 = vadd.s32 1, %v5863_v36  ;;  %vm1587_vm7 = vc.u32 %v5870_v48, %v5862_v22 }
 0x19d   : > { %v1852_v39 = vadd.s32 1, %v4298_v49  ;;  %vm4293_vm12 = vcmp.lt.s32.totalorder %v4292_v1, 0  ;;  %v1850_v5 = vor.u32 8388608, %v5819_v47  ;;  %v6749_v30 = vand.u32 2147483647, %v5824_v51 }
 0x19e   : > { %v1705_v58 = vsel %vm4293_vm12, 0, %v4292_v1  ;;  %v1589_v59 = vsel %vm1587_vm7, %v1588_v35, %v5863_v36  ;;  %v1742_v38 = vshrl.u32 %v1741_v16, 23  ;;  %4780 = vcosq.f32 %v1410_v54 }
 0x19f   : > { %vm1853_vm6 = vcmp.gt.s32.totalorder %v1852_v39, 0  ;;  %v1706_v57 = vsub.s32 32, %v1705_v58  ;;  %v1710_v32 = vsub.s32 4294967266, %v1705_v58  ;;  %v1590_v31 = vadd.s32 %v1589_v59, %v1585_v27 }
 0x1a0   : > { %4782 = vsinq.f32 %v1410_v54  ;;  %v1854_v3 = vsel %vm1853_vm6, %v1852_v39, 0  ;;  %v4294_v19 = vadd.s32 4294967169, %v1742_v38  ;;  %v1707_v29 = vshll.u32 %v5847_v23, %v1705_v58 }
 0x1a1   : > { %v1708_v40 = vshrl.u32 %v1690_v50, %v1706_v57  ;;  %v1711_v47 = vadd.s32 127, %v1710_v32  ;;  %v1591_v0 = vadd.s32 536870912, %v1590_v31  ;;  %v5894_v41 = vadd.s32 %v5862_v22, %v5870_v48  ;;  %v5904_v54 = vpop.eup %4776 }
 0x1a2   : > { %v1856_v36 = vand.u32 31, %v1854_v3  ;;  %v5896_v53 = vshll.u32 %v1850_v5, 8  ;;  %v5900_v15 = vand.u32 8388607, %v6749_v30  ;;  %v1855_v16 = vshrl.u32 %v1854_v3, 5  ;;  %6832 = vst [vmem:[#allocation31_spill] sm:$0xff] %v5904_v54 }
 0x1a3   : > { %v1709_v61 = vor.u32 %v1708_v40, %v1707_v29  ;;  %v1712_v49 = vshll.u32 %v1711_v47, 23  ;;  %v5902_v1 = vshrl.u32 %v1591_v0, 30  ;;  %v1748_v48 = vadd.s32 1, %v4294_v19  ;;  %v5908_v27 = vpop.eup %4778 }
 0x1a4   : > { %v1857_v23 = vsub.s32 32, %v1856_v36  ;;  %v1859_v50 = vshll.u32 %v6792_v43, %v1856_v36  ;;  %v1862_v22 = vshll.u32 %v6797_v11, %v1856_v36  ;;  %6833 = vst [vmem:[#allocation32_spill] sm:$0xff] %v5908_v27  ;;  %v1865_v58 = vshll.u32 %v6798_v42, %v1856_v36 }
 0x1a5   : > { %6831 = vst [vmem:[#allocation30_spill] sm:$0xff] %v5902_v1  ;;  %v1713_v35 = vor.u32 4788187, %v1712_v49  ;;  %v1716_v39 = vcvt.s32.f32 %v1709_v61  ;;  %v1593_v5 = vshll.u32 %v5902_v1, 30  ;;  %v1868_v32 = vshll.u32 %v6799_v45, %v1856_v36 }
 0x1a6   : > { %v1860_v59 = vshrl.u32 %v6797_v11, %v1857_v23  ;;  %v1863_v38 = vshrl.u32 %v6798_v42, %v1857_v23  ;;  %v1866_v57 = vshrl.u32 %v6799_v45, %v1857_v23  ;;  %v1869_v29 = vshrl.u32 %v6825_v33, %v1857_v23 }
 0x1a7   : > { %v1714_v3 = vand.u32 2147483647, %v1713_v35  ;;  %v5917_v19 = vsub.s32 %v1590_v31, %v1593_v5  ;;  %v1871_v40 = vshll.u32 %v6825_v33, %v1856_v36  ;;  %v1872_v49 = vshrl.u32 %v6791_v12, %v1857_v23 }
 0x1a8   : > { %v1861_v47 = vor.u32 %v1860_v59, %v1859_v50  ;;  %v1864_v0 = vor.u32 %v1863_v38, %v1862_v22  ;;  %v1867_v61 = vor.u32 %v1866_v57, %v1865_v58  ;;  %v5922_v30 = vpop.eup %4780  ;;  %v6835_v60 = vand.u32 2147483647, %v5641_v62 }
 0x1a9   : > { %6834 = vst [vmem:[#allocation33_spill] sm:$0xff] %v5922_v30  ;;  %v6836_v56 = vmov 0  ;;  %v1717_v35 = vmul.f32 %v1716_v39, %v1714_v3  ;;  %v1596_v31 = vsub.s32 0, %v5917_v19  ;;  %v1870_v5 = vor.u32 %v1869_v29, %v1868_v32 }
 0x1aa   : > { %vm5926_vm7 = vcmp.le.f32.partialorder %v6835_v60, 0.7853982  ;;  %vm1874_vm6 = vcmp.lt.s32.totalorder %v1855_v16, 1  ;;  %v5931_v1 = vpop.eup %4782  ;;  %v1858_v36 = vshrl.u32 %v6792_v43, %v1857_v23  ;;  %v1873_v50 = vor.u32 %v1872_v49, %v1871_v40 }
 0x1ab   : > { %v6837_v56 = vsel %vm5926_vm7, 4294967295, %v6836_v56  ;;  %6838 = vst [vmem:[#allocation34_spill] sm:$0xff] %v5931_v1  ;;  %vm1875_vm5 = vcmp.lt.s32.totalorder %v1855_v16, 2  ;;  %vm1877_vm9 = vcmp.lt.s32.totalorder %v1855_v16, 4  ;;  %v1718_v22 = vxor.u32 2147483648, %v1717_v35 }
 0x1ac   : > { %v4287_v58 = vmin.u32 %v1596_v31, %v5917_v19  ;;  %v1879_v59 = vsel %vm1877_vm9, %v1867_v61, 2102212464  ;;  %v1882_v60 = vsel %vm1874_vm6, %v1861_v47, %v1864_v0  ;;  %vm1876_vm12 = vcmp.lt.s32.totalorder %v1855_v16, 3 }
 0x1ad   : > { %v1883_v38 = vsel %vm1877_vm9, %v1870_v5, 920167782  ;;  %v1886_v57 = vsel %vm1874_vm6, %v1864_v0, %v1867_v61  ;;  %v1887_v39 = vsel %vm1877_vm9, %v1873_v50, 1326507024  ;;  %v1878_v54 = vsel %vm1874_vm6, %v1858_v36, %v1861_v47 }
 0x1ae   : > { %v1598_v3 = vclz %v4287_v58  ;;  %v1880_v32 = vsel %vm1876_vm12, %v1864_v0, %v1879_v59  ;;  %v1884_v29 = vsel %vm1876_vm12, %v1867_v61, %v1883_v38  ;;  %v1888_v30 = vsel %vm1876_vm12, %v1870_v5, %v1887_v39 }
 0x1af   : > { %v1885_v27 = vsel %vm1875_vm5, %v1882_v60, %v1884_v29  ;;  %v1746_v23 = vor.u32 8388608, %v5900_v15  ;;  %v6839_v40 = vsub.s32 4, %v5174_v9  ;;  %vm6840_vm1 = vcmp.lt.s32.totalorder %v5641_v62, 0 }
 0x1b0   : > { %v1719_v31 = vsel %vm6840_vm1, %v1718_v22, %v1717_v35  ;;  %v4288_v1 = vadd.s32 4294967294, %v1598_v3  ;;  %v1889_v50 = vsel %vm1875_vm5, %v1886_v57, %v1888_v30  ;;  %vm1749_vm9 = vcmp.gt.s32.totalorder %v1748_v48, 0 }
 0x1b1   : > { %v577_v49 = vsel %vm492_vm13, %v6839_v40, %v5174_v9  ;;  %v1881_v47 = vsel %vm1875_vm5, %v1878_v54, %v1880_v32  ;;  %v5947_v0 = vmul.u32.u64.low %v5896_v53, %v1889_v50  ;;  %v5948_v61 = vmul.u32.u64.high %v5896_v53, %v1889_v50, %v5947_v0 }
 0x1b2   : > { %v1750_v15 = vsel %vm1749_vm9, %v1748_v48, 0  ;;  %vm4289_vm12 = vcmp.lt.s32.totalorder %v4288_v1, 0  ;;  %v5951_v5 = vmul.u32.u64.low %v5896_v53, %v1885_v27  ;;  %v5952_v36 = vmul.u32.u64.high %v5896_v53, %v1885_v27, %v5951_v5 }
 0x1b3   : > { %v5955_v9 = vshrl.u32 %v1750_v15, 5  ;;  %v5960_v30 = vsel %vm5926_vm7, %v5641_v62, %v1719_v31  ;;  %v1601_v16 = vsel %vm4289_vm12, 0, %v4288_v1  ;;  %v1752_v54 = vand.u32 31, %v1750_v15 }
 0x1b4   : > { %v5964_v35 = vsel %vm5310_vm15, 0, %v577_v49  ;;  %v1602_v48 = vsub.s32 32, %v1601_v16  ;;  %v1606_v22 = vsub.s32 4294967266, %v1601_v16  ;;  %v1897_v58 = vmul.u32 %v5896_v53, %v1881_v47 }
 0x1b5   : > { %v5967_v27 = vshll.u32 %v1746_v23, 8  ;;  %v1603_v59 = vshll.u32 %v5917_v19, %v1601_v16  ;;  %vm1899_vm13 = vc.u32 %v5948_v61, %v5951_v5  ;;  %v1753_v60 = vsub.s32 32, %v1752_v54 }
 0x1b6   : > { %vm1770_vm1 = vcmp.lt.s32.totalorder %v5955_v9, 1  ;;  %v1604_v1 = vshrl.u32 %v5894_v41, %v1602_v48  ;;  %v1607_v38 = vadd.s32 127, %v1606_v22  ;;  %v1900_v63 = vadd.s32 1, %v5952_v36 }
 0x1b7   : > { %v1755_v57 = vshll.u32 %v6792_v43, %v1752_v54  ;;  %v1756_v39 = vshrl.u32 %v6797_v11, %v1753_v60  ;;  %v1758_v53 = vshll.u32 %v6797_v11, %v1752_v54  ;;  %v1759_v3 = vshrl.u32 %v6798_v42, %v1753_v60 }
 0x1b8   : > { %v1761_v19 = vshll.u32 %v6798_v42, %v1752_v54  ;;  %v1605_v32 = vor.u32 %v1604_v1, %v1603_v59  ;;  %v1608_v29 = vshll.u32 %v1607_v38, 23  ;;  %v1901_v23 = vsel %vm1899_vm13, %v1900_v63, %v5952_v36 }
 0x1b9   : > { %v1762_v40 = vshrl.u32 %v6799_v45, %v1753_v60  ;;  %vm6761_vm15 = vcmp.lt.s32.totalorder %v5712_v6, 0  ;;  %v1902_v41 = vadd.s32 %v1901_v23, %v1897_v58  ;;  %v1754_v49 = vshrl.u32 %v6792_v43, %v1753_v60 }
 0x1ba   : > { %v1757_v31 = vor.u32 %v1756_v39, %v1755_v57  ;;  %v1760_v50 = vor.u32 %v1759_v3, %v1758_v53  ;;  %v1609_v47 = vor.u32 4788187, %v1608_v29  ;;  %v1764_v11 = vshll.u32 %v6799_v45, %v1752_v54 }
 0x1bb   : > { %v1763_v0 = vor.u32 %v1762_v40, %v1761_v19  ;;  %v1765_v15 = vshrl.u32 %v6825_v33, %v1753_v60  ;;  %v1612_v42 = vcvt.s32.f32 %v1605_v32  ;;  %v1903_v16 = vadd.s32 536870912, %v1902_v41 }
 0x1bc   : > { %v1767_v48 = vshll.u32 %v6825_v33, %v1752_v54  ;;  %v1768_v36 = vshrl.u32 %v6791_v12, %v1753_v60  ;;  %v1610_v22 = vand.u32 2147483647, %v1609_v47  ;;  %vm1771_vm5 = vcmp.lt.s32.totalorder %v5955_v9, 2 }
 0x1bd   : > { %v1766_v59 = vor.u32 %v1765_v15, %v1764_v11  ;;  %vm1773_vm6 = vcmp.lt.s32.totalorder %v5955_v9, 4  ;;  %v6841_v43 = vand.u32 2147483647, %v5712_v6  ;;  %v6842_v58 = vmov 0 }
 0x1be   : > { %v5996_v45 = vshrl.u32 %v1903_v16, 30  ;;  %v1769_v1 = vor.u32 %v1768_v36, %v1767_v48  ;;  %vm1772_vm12 = vcmp.lt.s32.totalorder %v5955_v9, 3  ;;  %v1775_v12 = vsel %vm1773_vm6, %v1763_v0, 2102212464 }
 0x1bf   : > { %vm5992_vm9 = vcmp.le.f32.partialorder %v6841_v43, 0.7853982  ;;  %v1613_v33 = vmul.f32 %v1612_v42, %v1610_v22  ;;  %v1774_v54 = vsel %vm1770_vm1, %v1754_v49, %v1757_v31  ;;  %v1778_v60 = vsel %vm1770_vm1, %v1757_v31, %v1760_v50 }
 0x1c0   : > { %v6843_v58 = vsel %vm5992_vm9, 4294967295, %v6842_v58  ;;  %v1779_v38 = vsel %vm1773_vm6, %v1766_v59, 920167782  ;;  %v1905_v63 = vshll.u32 %v5996_v45, 30  ;;  %v1776_v57 = vsel %vm1772_vm12, %v1760_v50, %v1775_v12 }
 0x1c1   : > { %v1780_v39 = vsel %vm1772_vm12, %v1763_v0, %v1779_v38  ;;  %v1782_v53 = vsel %vm1770_vm1, %v1760_v50, %v1763_v0  ;;  %4784 = vcosq.f32 %v5960_v30  ;;  %v1614_v3 = vxor.u32 2147483648, %v1613_v33 }
 0x1c2   : > { %v1781_v19 = vsel %vm1771_vm5, %v1778_v60, %v1780_v39  ;;  %v1783_v32 = vsel %vm1773_vm6, %v1769_v1, 1326507024  ;;  %v6015_v29 = vsub.s32 %v1902_v41, %v1905_v63  ;;  %v1777_v50 = vsel %vm1771_vm5, %v1774_v54, %v1776_v57  ;;  %v371_v54 = vld [vmem:[%s6043_s17] sm:$0xff]  ;;  %v372_v60 = vld [vmem:[%s6043_s17 + $0x8] sm:$0xff] }
 0x1c3   : > { %v1784_v23 = vsel %vm1772_vm12, %v1766_v59, %v1783_v32  ;;  %v6018_v40 = vmul.u32.u64.low %v5967_v27, %v1781_v19  ;;  %v6019_v49 = vmul.u32.u64.high %v5967_v27, %v1781_v19, %v6018_v40  ;;  %v1615_v31 = vsel %vm6761_vm15, %v1614_v3, %v1613_v33 }
 0x1c4   : > { %v1785_v47 = vsel %vm1771_vm5, %v1782_v53, %v1784_v23  ;;  %v583_v0 = vadd.s32 3, %v5964_v35  ;;  %v1908_v41 = vsub.s32 0, %v6015_v29  ;;  %v587_v42 = vxor.u32 2147483648, %v5449_v10 }
 0x1c5   : > { %v6031_v11 = vmul.u32.u64.low %v5967_v27, %v1785_v47  ;;  %v6032_v15 = vmul.u32.u64.high %v5967_v27, %v1785_v47, %v6031_v11  ;;  %4786 = vsinq.f32 %v5960_v30  ;;  %v590_v48 = vxor.u32 2147483648, %v5385_v13 }
 0x1c6   : > { %v584_v16 = vand.u32 3, %v583_v0  ;;  %v680_v36 = vsub.s32 4, %v5295_v28  ;;  %v1898_v9 = vadd.s32 %v5951_v5, %v5948_v61  ;;  %v4299_v22 = vmin.u32 %v1908_v41, %v6015_v29 }
 0x1c7   : > { %v1796_v30 = vadd.s32 1, %v6019_v49  ;;  %vm6762_vm13 = vweird.f32 %v5050_v21  ;;  %v6053_v59 = vsel %vm5992_vm9, %v5712_v6, %v1615_v31  ;;  %v1793_v43 = vmul.u32 %v5967_v27, %v1777_v50 }
 0x1c8   : > { %vm586_vm1 = vcmp.eq.s32.totalorder %v584_v16, 0  ;;  %vm6844_vm5 = vcmp.lt.s32.totalorder %v5070_v46, 0  ;;  %v1910_v5 = vclz %v4299_v22  ;;  %vm1795_vm6 = vc.u32 %v6032_v15, %v6018_v40 }
 0x1c9   : > { %v681_v61 = vsel %vm6844_vm5, %v680_v36, %v5295_v28  ;;  %v588_v1 = vsel %vm586_vm1, %v5385_v13, %v587_v42  ;;  %vm589_vm12 = vcmp.eq.s32.totalorder %v584_v16, 2  ;;  %v1797_v12 = vsel %vm1795_vm6, %v1796_v30, %v6019_v49 }
 0x1ca   : > { %vm585_vm15 = vcmp.lt.s32.totalorder %v584_v16, 2  ;;  %v591_v33 = vsel %vm589_vm12, %v590_v48, %v5449_v10  ;;  %v683_v27 = vsel %vm5411_vm2, 0, %v681_v61  ;;  %v4300_v38 = vadd.s32 4294967294, %v1910_v5 }
 0x1cb   : > { %v1798_v63 = vadd.s32 %v1797_v12, %v1793_v43  ;;  %v592_v28 = vsel %vm585_vm15, %v588_v1, %v591_v33  ;;  %v687_v57 = vadd.s32 3, %v683_v27  ;;  %v6068_v39 = vpop.eup %4784  ;;  %v691_v3 = vxor.u32 2147483648, %v5598_v7 }
 0x1cc   : > { %v6072_v53 = vsel %vm6762_vm13, nan, %v592_v28  ;;  %v694_v19 = vxor.u32 2147483648, %v5474_v55  ;;  %v2039_v32 = vand.u32 3, %v5964_v35  ;;  %vm4301_vm1 = vcmp.lt.s32.totalorder %v4300_v38, 0 }
 0x1cd   : > { %v1799_v52 = vadd.s32 536870912, %v1798_v63  ;;  %v688_v23 = vand.u32 3, %v687_v57  ;;  %v4662_v49 = vpack.i.bf16 %v372_v60, %v371_v54  ;;  %v1913_v31 = vsel %vm4301_vm1, 0, %v4300_v38 }
 0x1ce   : > { %vm2040_vm15 = vcmp.lt.s32.totalorder %v2039_v32, 2  ;;  %vm2041_vm5 = vcmp.eq.s32.totalorder %v2039_v32, 0  ;;  %v2142_v50 = vand.u32 3, %v683_v27  ;;  %v1914_v47 = vsub.s32 32, %v1913_v31 }
 0x1cf   : > { %v1918_v0 = vsub.s32 4294967266, %v1913_v31  ;;  %v6078_v41 = vshrl.u32 %v1799_v52, 30  ;;  %vm2044_vm6 = vcmp.eq.s32.totalorder %v2039_v32, 2  ;;  %4663 = vrot.lane.b32.xlu1 %v4662_v49, %s4928_s21  ;;  %v6081_v11 = vpop.eup %4786  ;;  %v1915_v35 = vshll.u32 %v6015_v29, %v1913_v31  ;;  %v373_v31 = vld [vmem:[%s6043_s17 + $0x10] sm:$0xff] }
 0x1d0   : > { %vm689_vm12 = vcmp.lt.s32.totalorder %v688_v23, 2  ;;  %vm690_vm2 = vcmp.eq.s32.totalorder %v688_v23, 0  ;;  %v2043_v16 = vsel %vm2041_vm5, %v5385_v13, %v587_v42  ;;  %v1916_v36 = vshrl.u32 %v1898_v9, %v1914_v47 }
 0x1d1   : > { %v1919_v22 = vadd.s32 127, %v1918_v0  ;;  %v1801_v30 = vshll.u32 %v6078_v41, 30  ;;  %v2046_v43 = vsel %vm2044_vm6, %v590_v48, %v5449_v10  ;;  %vm693_vm1 = vcmp.eq.s32.totalorder %v688_v23, 2 }
 0x1d2   : > { %v2047_v61 = vsel %vm2040_vm15, %v2043_v16, %v2046_v43  ;;  %vm2143_vm13 = vcmp.lt.s32.totalorder %v2142_v50, 2  ;;  %vm2144_vm7 = vcmp.eq.s32.totalorder %v2142_v50, 0  ;;  %v1917_v5 = vor.u32 %v1916_v36, %v1915_v35 }
 0x1d3   : > { %v1920_v1 = vshll.u32 %v1919_v22, 23  ;;  %v6088_v12 = vsub.s32 %v1798_v63, %v1801_v30  ;;  %vm2147_vm9 = vcmp.eq.s32.totalorder %v2142_v50, 2  ;;  %v2146_v29 = vsel %vm2144_vm7, %v5474_v55, %v691_v3  ;;  %v374_v50 = vld [vmem:[%s6043_s17 + $0x18] sm:$0xff] }
 0x1d4   : > { %v2149_v13 = vsel %vm2147_vm9, %v694_v19, %v5598_v7  ;;  %v692_v42 = vsel %vm690_vm2, %v5474_v55, %v691_v3  ;;  %v695_v9 = vsel %vm693_vm1, %v694_v19, %v5598_v7  ;;  %vm6845_vm15 = vweird.f32 %v5050_v21 }
 0x1d5   : > { %v1921_v10 = vor.u32 4788187, %v1920_v1  ;;  %v1804_v48 = vsub.s32 0, %v6088_v12  ;;  %v2048_v33 = vsel %vm6845_vm15, nan, %v2047_v61  ;;  %v2150_v27 = vsel %vm2143_vm13, %v2146_v29, %v2149_v13  ;;  %v6855_v29 = vld [vmem:[#allocation13_spill] sm:$0xff] }
 0x1d6   : > { %v6846_v54 = vand.u32 2147483647, %v5721_v4  ;;  %v1924_v38 = vcvt.s32.f32 %v1917_v5  ;;  %vm6849_vm7 = vweird.f32 %v5070_v46  ;;  %v696_v55 = vsel %vm689_vm12, %v692_v42, %v695_v9  ;;  %v6854_v5 = vld [vmem:[#allocation14_spill] sm:$0xff] }
 0x1d7   : > { %v2151_v63 = vsel %vm6849_vm7, nan, %v2150_v27  ;;  %v784_v7 = vsub.s32 4, %v5147_v2  ;;  %v1922_v28 = vand.u32 2147483647, %v1921_v10  ;;  %v4295_v21 = vmin.u32 %v1804_v48, %v6088_v12  ;;  %vm6850_vm9 = vmmov %vm6849_vm7 }
 0x1d8   : > { %vm6100_vm5 = vcmp.le.f32.partialorder %v6846_v54, 0.7853982  ;;  %v4657_v57 = vpack.i.bf16 %v2151_v63, %v2048_v33  ;;  %v6111_v3 = vsel %vm6850_vm9, nan, %v696_v55  ;;  %4788 = vcosq.f32 %v6053_v59 }
 0x1d9   : > { %vm6765_vm13 = vcmp.lt.s32.totalorder %v5721_v4, 0  ;;  %vm6851_vm2 = vcmp.lt.s32.totalorder %v5048_v20, 0  ;;  %v888_v32 = vsub.s32 4, %v5219_v37  ;;  %v1925_v52 = vmul.f32 %v1924_v38, %v1922_v28 }
 0x1da   : > { %v785_v19 = vsel %vm6851_vm2, %v784_v7, %v5147_v2  ;;  %v1794_v23 = vadd.s32 %v6018_v40, %v6032_v15  ;;  %v1806_v49 = vclz %v4295_v21  ;;  %4658 = vrot.lane.b32.xlu0 %v4657_v57, %s4929_s22  ;;  %vm790_vm6 = vweird.f32 %v5048_v20 }
 0x1db   : > { %v787_v46 = vsel %vm5280_vm14, 0, %v785_v19  ;;  %v795_v2 = vxor.u32 2147483648, %v5381_v25  ;;  %vm6852_vm12 = vcmp.lt.s32.totalorder %v5061_v34, 0  ;;  %v1926_v35 = vxor.u32 2147483648, %v1925_v52 }
 0x1dc   : > { %v791_v47 = vadd.s32 3, %v787_v46  ;;  %v889_v0 = vsel %vm6852_vm12, %v888_v32, %v5219_v37  ;;  %v4296_v40 = vadd.s32 4294967294, %v1806_v49  ;;  %v2245_v16 = vand.u32 3, %v787_v46 }
 0x1dd   : > { %v891_v15 = vsel %vm5365_vm8, 0, %v889_v0  ;;  %v798_v22 = vxor.u32 2147483648, %v6853_v24  ;;  %v4672_v43 = vpack.i.bf16 %v374_v50, %v373_v31  ;;  %v1927_v61 = vsel %vm6765_vm13, %v1926_v35, %v1925_v52  ;;  %v6857_v0 = vld [vmem:[#allocation12_spill] sm:$0xff] }
 0x1de   : > { %v792_v36 = vand.u32 3, %v791_v47  ;;  %v895_v30 = vadd.s32 3, %v891_v15  ;;  %vm4297_vm14 = vcmp.lt.s32.totalorder %v4296_v40, 0  ;;  %v899_v1 = vxor.u32 2147483648, %v6854_v5 }
 0x1df   : > { %v902_v13 = vxor.u32 2147483648, %v6855_v29  ;;  %v1809_v37 = vsel %vm4297_vm14, 0, %v4296_v40  ;;  %vm2247_vm15 = vcmp.eq.s32.totalorder %v2245_v16, 0  ;;  %v2348_v42 = vand.u32 3, %v891_v15  ;;  %4673 = vrot.lane.b32.xlu1 %v4672_v43, %s4928_s21  ;;  %v375_v43 = vld [vmem:[%s6043_s17 + $0x20] sm:$0xff] }
 0x1e0   : > { %v1930_v44 = vsel %vm6100_vm5, %v5721_v4, %v1927_v61  ;;  %v1810_v9 = vsub.s32 32, %v1809_v37  ;;  %v1814_v10 = vsub.s32 4294967266, %v1809_v37  ;;  %vm794_vm8 = vcmp.eq.s32.totalorder %v792_v36, 0  ;;  %v376_v61 = vld [vmem:[%s6043_s17 + $0x28] sm:$0xff] }
 0x1e1   : > { %vm793_vm9 = vcmp.lt.s32.totalorder %v792_v36, 2  ;;  %v796_v48 = vsel %vm794_vm8, %v6853_v24, %v795_v2  ;;  %vm797_vm2 = vcmp.eq.s32.totalorder %v792_v36, 2  ;;  %v896_v33 = vand.u32 3, %v895_v30 }
 0x1e2   : > { %v1811_v27 = vshll.u32 %v6088_v12, %v1809_v37  ;;  %v1812_v54 = vshrl.u32 %v1794_v23, %v1810_v9  ;;  %v1815_v38 = vadd.s32 127, %v1814_v10  ;;  %v799_v63 = vsel %vm797_vm2, %v798_v22, %v5381_v25  ;;  %v6146_v55 = vpop.eup %4788  ;;  %v6865_v10 = vld [vmem:[#allocation5_spill] sm:$0xff] }
 0x1e3   : > { %v800_v7 = vsel %vm793_vm9, %v796_v48, %v799_v63  ;;  %vm897_vm12 = vcmp.lt.s32.totalorder %v896_v33, 2  ;;  %vm898_vm14 = vcmp.eq.s32.totalorder %v896_v33, 0  ;;  %v2249_v28 = vsel %vm2247_vm15, %v6853_v24, %v795_v2 }
 0x1e4   : > { %v1813_v21 = vor.u32 %v1812_v54, %v1811_v27  ;;  %v1816_v57 = vshll.u32 %v1815_v38, 23  ;;  %v6152_v19 = vsel %vm790_vm6, nan, %v800_v7  ;;  %vm2250_vm8 = vcmp.eq.s32.totalorder %v2245_v16, 2  ;;  %v6871_v7 = vld [vmem:[#allocation20_spill] sm:$0xff] }
 0x1e5   : > { %vm901_vm13 = vcmp.eq.s32.totalorder %v896_v33, 2  ;;  %v2252_v12 = vsel %vm2250_vm8, %v798_v22, %v5381_v25  ;;  %vm2349_vm7 = vcmp.lt.s32.totalorder %v2348_v42, 2  ;;  %vm2350_vm2 = vcmp.eq.s32.totalorder %v2348_v42, 0  ;;  %v6860_v22 = vld [vmem:[#allocation6_spill] sm:$0xff] }
 0x1e6   : > { %vm6766_vm1 = vcmp.lt.s32.totalorder %v5824_v51, 0  ;;  %v1817_v32 = vor.u32 4788187, %v1816_v57  ;;  %vm6856_vm9 = vcmp.lt.s32.totalorder %v2245_v16, 2  ;;  %v2352_v23 = vsel %vm2350_vm2, %v6855_v29, %v899_v1 }
 0x1e7   : > { %v2253_v52 = vsel %vm6856_vm9, %v2249_v28, %v2252_v12  ;;  %vm2353_vm15 = vcmp.eq.s32.totalorder %v2348_v42, 2  ;;  %v1820_v49 = vcvt.s32.f32 %v1813_v21  ;;  %v900_v31 = vsel %vm898_vm14, %v6855_v29, %v899_v1  ;;  %v6864_v42 = vld [vmem:[#allocation22_spill] sm:$0xff]  ;;  %v6872_v21 = vld [vmem:[#allocation19_spill] sm:$0xff] }
 0x1e8   : > { %v2355_v46 = vsel %vm2353_vm15, %v902_v13, %v6854_v5  ;;  %v903_v25 = vsel %vm901_vm13, %v902_v13, %v6854_v5  ;;  %v1818_v50 = vand.u32 2147483647, %v1817_v32  ;;  %v992_v35 = vsub.s32 4, %v6857_v0  ;;  %v6863_v5 = vld [vmem:[#allocation9_spill] sm:$0xff] }
 0x1e9   : > { %v2356_v47 = vsel %vm2349_vm7, %v2352_v23, %v2355_v46  ;;  %v904_v2 = vsel %vm897_vm12, %v900_v31, %v903_v25  ;;  %4790 = vsinq.f32 %v6053_v59  ;;  %v2254_v40 = vsel %vm790_vm6, nan, %v2253_v52  ;;  %v6873_v52 = vld [vmem:[#allocation18_spill] sm:$0xff] }
 0x1ea   : > { %vm6858_vm8 = vweird.f32 %v5061_v34  ;;  %4792 = vcosq.f32 %v1930_v44  ;;  %v1821_v36 = vmul.f32 %v1820_v49, %v1818_v50  ;;  %vm6861_vm13 = vcmp.lt.s32.totalorder %v6860_v22, 0 }
 0x1eb   : > { %v2357_v15 = vsel %vm6858_vm8, nan, %v2356_v47  ;;  %vm6859_vm2 = vmmov %vm6858_vm8  ;;  %v993_v30 = vsel %vm6861_vm13, %v992_v35, %v6857_v0  ;;  %4794 = vsinq.f32 %v1930_v44  ;;  %vm998_vm6 = vweird.f32 %v6860_v22  ;;  %v377_v22 = vld [vmem:[%s6043_s17 + $0x30] sm:$0xff] }
 0x1ec   : > { %v6171_v16 = vsel %vm6859_vm2, nan, %v904_v2  ;;  %v4667_v24 = vpack.i.bf16 %v2357_v15, %v2254_v40  ;;  %v995_v20 = vsel %vm5554_vm0, 0, %v993_v30  ;;  %v1096_v1 = vsub.s32 4, %v6863_v5 }
 0x1ed   : > { %v1822_v34 = vxor.u32 2147483648, %v1821_v36  ;;  %v999_v29 = vadd.s32 3, %v995_v20  ;;  %v1003_v13 = vxor.u32 2147483648, %v5685_v8  ;;  %v2451_v37 = vand.u32 3, %v995_v20 }
 0x1ee   : > { %4668 = vrot.lane.b32.xlu0 %v4667_v24, %s4929_s22  ;;  %v1006_v9 = vxor.u32 2147483648, %v6864_v42  ;;  %vm6866_vm7 = vcmp.lt.s32.totalorder %v6865_v10, 0  ;;  %vm1102_vm12 = vweird.f32 %v6865_v10  ;;  %v4682_v48 = vpack.i.bf16 %v376_v61, %v375_v43 }
 0x1ef   : > { %v1097_v44 = vsel %vm6866_vm7, %v1096_v1, %v6863_v5  ;;  %v6867_v33 = vand.u32 2147483647, %v5824_v51  ;;  %v1000_v54 = vand.u32 3, %v999_v29  ;;  %v1107_v28 = vxor.u32 2147483648, %v6871_v7  ;;  %v6874_v5 = vld [vmem:[#allocation10_spill] sm:$0xff] }
 0x1f0   : > { %v1099_v63 = vsel %vm5479_vm3, 0, %v1097_v44  ;;  %v1110_v57 = vxor.u32 2147483648, %v6872_v21  ;;  %v1823_v12 = vsel %vm6766_vm1, %v1822_v34, %v1821_v36  ;;  %vm2452_vm14 = vcmp.lt.s32.totalorder %v2451_v37, 2  ;;  %4683 = vrot.lane.b32.xlu1 %v4682_v48, %s4928_s21 }
 0x1f1   : > { %vm6191_vm0 = vcmp.le.f32.partialorder %v6867_v33, 0.7853982  ;;  %v1103_v32 = vadd.s32 3, %v1099_v63  ;;  %v1200_v23 = vsub.s32 4, %v6873_v52  ;;  %vm1001_vm9 = vcmp.lt.s32.totalorder %v1000_v54, 2 }
 0x1f2   : > { %vm1002_vm15 = vcmp.eq.s32.totalorder %v1000_v54, 0  ;;  %vm2453_vm8 = vcmp.eq.s32.totalorder %v2451_v37, 0  ;;  %vm2456_vm2 = vcmp.eq.s32.totalorder %v2451_v37, 2  ;;  %vm1005_vm13 = vcmp.eq.s32.totalorder %v1000_v54, 2  ;;  %v6877_v54 = vld [vmem:[#allocation16_spill] sm:$0xff] }
 0x1f3   : > { %v1104_v49 = vand.u32 3, %v1103_v32  ;;  %v2455_v46 = vsel %vm2453_vm8, %v6864_v42, %v1003_v13  ;;  %v2458_v31 = vsel %vm2456_vm2, %v1006_v9, %v5685_v8  ;;  %v2554_v50 = vand.u32 3, %v1099_v63  ;;  %v6207_v0 = vpop.eup %4790 }
 0x1f4   : > { %v2459_v25 = vsel %vm2452_vm14, %v2455_v46, %v2458_v31  ;;  %v1004_v47 = vsel %vm1002_vm15, %v6864_v42, %v1003_v13  ;;  %v1007_v2 = vsel %vm1005_vm13, %v1006_v9, %v5685_v8  ;;  %v6211_v40 = vpop.eup %4792  ;;  %vm1206_vm2 = vweird.f32 %v6874_v5  ;;  %v378_v9 = vld [vmem:[%s6043_s17 + $0x38] sm:$0xff] }
 0x1f5   : > { %vm1105_vm3 = vcmp.lt.s32.totalorder %v1104_v49, 2  ;;  %vm1106_vm7 = vcmp.eq.s32.totalorder %v1104_v49, 0  ;;  %vm1109_vm1 = vcmp.eq.s32.totalorder %v1104_v49, 2  ;;  %v2460_v35 = vsel %vm998_vm6, nan, %v2459_v25  ;;  %v6215_v24 = vpop.eup %4794  ;;  %v6882_v49 = vld [vmem:[#allocation26_spill] sm:$0xff] }
 0x1f6   : > { %v1108_v15 = vsel %vm1106_vm7, %v6872_v21, %v1107_v28  ;;  %v1111_v36 = vsel %vm1109_vm1, %v1110_v57, %v6871_v7  ;;  %vm2555_vm14 = vcmp.lt.s32.totalorder %v2554_v50, 2  ;;  %vm2556_vm8 = vcmp.eq.s32.totalorder %v2554_v50, 0 }
 0x1f7   : > { %v1112_v8 = vsel %vm1105_vm3, %v1108_v15, %v1111_v36  ;;  %v2558_v30 = vsel %vm2556_vm8, %v6872_v21, %v1107_v28  ;;  %vm2559_vm15 = vcmp.eq.s32.totalorder %v2554_v50, 2  ;;  %v1008_v43 = vsel %vm1001_vm9, %v1004_v47, %v1007_v2  ;;  %v6879_v21 = vld [vmem:[#allocation25_spill] sm:$0xff] }
 0x1f8   : > { %v6221_v61 = vsel %vm1102_vm12, nan, %v1112_v8  ;;  %v2561_v59 = vsel %vm2559_vm15, %v1110_v57, %v6871_v7  ;;  %v6226_v20 = vsel %vm998_vm6, nan, %v1008_v43  ;;  %vm6875_vm1 = vcmp.lt.s32.totalorder %v6874_v5, 0  ;;  %v6878_v7 = vld [vmem:[#allocation27_spill] sm:$0xff]  ;;  %v6885_v5 = vld [vmem:[#allocation34_spill] sm:$0xff] }
 0x1f9   : > { %v1201_v1 = vsel %vm6875_vm1, %v1200_v23, %v6873_v52  ;;  %v6235_v34 = vsel %vm6191_vm0, %v5824_v51, %v1823_v12  ;;  %v2562_v29 = vsel %vm2555_vm14, %v2558_v30, %v2561_v59  ;;  %v1211_v42 = vxor.u32 2147483648, %v5841_v14  ;;  %v6880_v52 = vld [vmem:[#allocation7_spill] sm:$0xff] }
 0x1fa   : > { %v1203_v37 = vsel %vm5698_vm4, 0, %v1201_v1  ;;  %v2563_v44 = vsel %vm1102_vm12, nan, %v2562_v29  ;;  %v1214_v33 = vxor.u32 2147483648, %v5836_v18  ;;  %v1304_v38 = vsub.s32 4, %v6877_v54 }
 0x1fb   : > { %v1207_v48 = vadd.s32 3, %v1203_v37  ;;  %v4677_v63 = vpack.i.bf16 %v2563_v44, %v2460_v35  ;;  %v1315_v28 = vxor.u32 2147483648, %v6878_v7  ;;  %v1318_v57 = vxor.u32 2147483648, %v6879_v21 }
 0x1fc   : > { %v2657_v12 = vand.u32 3, %v1203_v37  ;;  %vm6881_vm4 = vcmp.lt.s32.totalorder %v6880_v52, 0  ;;  %vm1310_vm6 = vweird.f32 %v6880_v52  ;;  %v4692_v10 = vpack.i.bf16 %v378_v9, %v377_v22  ;;  %v6890_v52 = vld [vmem:[#allocation11_spill] sm:$0xff] }
 0x1fd   : > { %v1208_v32 = vand.u32 3, %v1207_v48  ;;  %v1305_v23 = vsel %vm6881_vm4, %v1304_v38, %v6877_v54  ;;  %v1408_v46 = vsub.s32 4, %v6882_v49  ;;  %4678 = vrot.lane.b32.xlu0 %v4677_v63, %s4929_s22  ;;  %4796 = vcosq.f32 %v6235_v34  ;;  %v379_v54 = vld [vmem:[%s6043_s17 + $0x40] sm:$0xff]  ;;  %v380_v38 = vld [vmem:[%s6043_s17 + $0x48] sm:$0xff] }
 0x1fe   : > { %v1307_v25 = vsel %vm5677_vm11, 0, %v1305_v23  ;;  %vm2658_vm12 = vcmp.lt.s32.totalorder %v2657_v12, 2  ;;  %vm2659_vm9 = vcmp.eq.s32.totalorder %v2657_v12, 0  ;;  %vm2662_vm13 = vcmp.eq.s32.totalorder %v2657_v12, 2  ;;  %4693 = vrot.lane.b32.xlu1 %v4692_v10, %s4928_s21  ;;  %v6889_v10 = vld [vmem:[#allocation31_spill] sm:$0xff] }
 0x1ff   : > { %vm1209_vm3 = vcmp.lt.s32.totalorder %v1208_v32, 2  ;;  %vm1210_vm7 = vcmp.eq.s32.totalorder %v1208_v32, 0  ;;  %vm1213_vm14 = vcmp.eq.s32.totalorder %v1208_v32, 2  ;;  %v1311_v50 = vadd.s32 3, %v1307_v25  ;;  %v6888_v32 = vld [vmem:[#allocation32_spill] sm:$0xff] }
 0x200   : > { %v2661_v47 = vsel %vm2659_vm9, %v5836_v18, %v1211_v42  ;;  %v2664_v2 = vsel %vm2662_vm13, %v1214_v33, %v5841_v14  ;;  %v2760_v35 = vand.u32 3, %v1307_v25  ;;  %v1212_v15 = vsel %vm1210_vm7, %v5836_v18, %v1211_v42 }
 0x201   : > { %v1312_v36 = vand.u32 3, %v1311_v50  ;;  %v2665_v8 = vsel %vm2658_vm12, %v2661_v47, %v2664_v2  ;;  %v1215_v30 = vsel %vm1213_vm14, %v1214_v33, %v5841_v14  ;;  %vm6884_vm11 = vcmp.lt.s32.totalorder %v5559_v17, 0  ;;  %v6892_v50 = vld [vmem:[#allocation30_spill] sm:$0xff]  ;;  %v6893_v2 = vld [vmem:[#allocation28_spill] sm:$0xff] }
 0x202   : > { %v1409_v43 = vsel %vm6884_vm11, %v1408_v46, %v6882_v49  ;;  %v2666_v59 = vsel %vm1206_vm2, nan, %v2665_v8  ;;  %vm2761_vm8 = vcmp.lt.s32.totalorder %v2760_v35, 2  ;;  %vm2762_vm15 = vcmp.eq.s32.totalorder %v2760_v35, 0 }
 0x203   : > { %vm2765_vm1 = vcmp.eq.s32.totalorder %v2760_v35, 2  ;;  %vm1313_vm4 = vcmp.lt.s32.totalorder %v1312_v36, 2  ;;  %vm1314_vm9 = vcmp.eq.s32.totalorder %v1312_v36, 0  ;;  %vm1317_vm13 = vcmp.eq.s32.totalorder %v1312_v36, 2 }
 0x204   : > { %v2764_v18 = vsel %vm2762_vm15, %v6879_v21, %v1315_v28  ;;  %v1316_v1 = vsel %vm1314_vm9, %v6879_v21, %v1315_v28  ;;  %v1319_v14 = vsel %vm1317_vm13, %v1318_v57, %v6878_v7  ;;  %v2767_v29 = vsel %vm2765_vm1, %v1318_v57, %v6878_v7  ;;  %v6886_v28 = vld [vmem:[#allocation21_spill] sm:$0xff] }
 0x205   : > { %v1216_v13 = vsel %vm1209_vm3, %v1212_v15, %v1215_v30  ;;  %v1320_v37 = vsel %vm1313_vm4, %v1316_v1, %v1319_v14  ;;  %v2768_v42 = vsel %vm2761_vm8, %v2764_v18, %v2767_v29  ;;  %v1411_v9 = vsel %vm5875_vm10, 0, %v1409_v43  ;;  %v6887_v57 = vld [vmem:[#allocation33_spill] sm:$0xff] }
 0x206   : > { %v6273_v22 = vsel %vm1206_vm2, nan, %v1216_v13  ;;  %v6280_v44 = vsel %vm1310_vm6, nan, %v1320_v37  ;;  %v2769_v48 = vsel %vm1310_vm6, nan, %v2768_v42  ;;  %v1415_v33 = vadd.s32 3, %v1411_v9 }
 0x207   : > { %v4687_v63 = vpack.i.bf16 %v2769_v48, %v2666_v59  ;;  %vm1414_vm12 = vweird.f32 %v5559_v17  ;;  %v1419_v7 = vxor.u32 2147483648, %v6885_v5  ;;  %v1512_v26 = vsub.s32 4, %v6886_v28  ;;  %v6311_v37 = vpop.eup %4796 }
 0x208   : > { %v1416_v21 = vand.u32 3, %v1415_v33  ;;  %v1422_v12 = vxor.u32 2147483648, %v6887_v57  ;;  %v1523_v23 = vxor.u32 2147483648, %v6888_v32  ;;  %v1526_v49 = vxor.u32 2147483648, %v6889_v10 }
 0x209   : > { %4688 = vrot.lane.b32.xlu0 %v4687_v63, %s4929_s22  ;;  %vm6891_vm10 = vcmp.lt.s32.totalorder %v6890_v52, 0  ;;  %vm1518_vm2 = vweird.f32 %v6890_v52  ;;  %v2863_v31 = vand.u32 3, %v1411_v9  ;;  %v4702_v25 = vpack.i.bf16 %v380_v38, %v379_v54 }
 0x20a   : > { %v1513_v46 = vsel %vm6891_vm10, %v1512_v26, %v6886_v28  ;;  %v1616_v47 = vsub.s32 4, %v6892_v50  ;;  %vm1417_vm6 = vcmp.lt.s32.totalorder %v1416_v21, 2  ;;  %vm1418_vm3 = vcmp.eq.s32.totalorder %v1416_v21, 0 }
 0x20b   : > { %vm1421_vm7 = vcmp.eq.s32.totalorder %v1416_v21, 2  ;;  %vm6894_vm14 = vnez %v6893_v2  ;;  %vm2864_vm11 = vcmp.lt.s32.totalorder %v2863_v31, 2  ;;  %vm2865_vm8 = vcmp.eq.s32.totalorder %v2863_v31, 0  ;;  %4703 = vrot.lane.b32.xlu1 %v4702_v25, %s4928_s21  ;;  %v381_v21 = vld [vmem:[%s6043_s17 + $0x50] sm:$0xff] }
 0x20c   : > { %v1515_v35 = vsel %vm6894_vm14, 0, %v1513_v46  ;;  %vm2868_vm15 = vcmp.eq.s32.totalorder %v2863_v31, 2  ;;  %v2867_v36 = vsel %vm2865_vm8, %v6887_v57, %v1419_v7  ;;  %v1420_v43 = vsel %vm1418_vm3, %v6887_v57, %v1419_v7  ;;  %v382_v57 = vld [vmem:[%s6043_s17 + $0x58] sm:$0xff] }
 0x20d   : > { %v1519_v15 = vadd.s32 3, %v1515_v35  ;;  %v2870_v8 = vsel %vm2868_vm15, %v1422_v12, %v6885_v5  ;;  %v2966_v30 = vand.u32 3, %v1515_v35  ;;  %v1423_v1 = vsel %vm1421_vm7, %v1422_v12, %v6885_v5 }
 0x20e   : > { %v2871_v18 = vsel %vm2864_vm11, %v2867_v36, %v2870_v8  ;;  %vm6895_vm1 = vcmp.lt.s32.totalorder %v5712_v6, 0  ;;  %v1424_v33 = vsel %vm1417_vm6, %v1420_v43, %v1423_v1  ;;  %vm6896_vm3 = vnez %v6843_v58 }
 0x20f   : > { %v1520_v59 = vand.u32 3, %v1519_v15  ;;  %v1617_v14 = vsel %vm6895_vm1, %v1616_v47, %v6892_v50  ;;  %v2872_v29 = vsel %vm1414_vm12, nan, %v2871_v18  ;;  %vm2967_vm4 = vcmp.lt.s32.totalorder %v2966_v30, 2 }
 0x210   : > { %vm2968_vm9 = vcmp.eq.s32.totalorder %v2966_v30, 0  ;;  %vm2971_vm13 = vcmp.eq.s32.totalorder %v2966_v30, 2  ;;  %v6319_v63 = vsel %vm1414_vm12, nan, %v1424_v33  ;;  %v1619_v5 = vsel %vm6896_vm3, 0, %v1617_v14 }
 0x211   : > { %vm1521_vm10 = vcmp.lt.s32.totalorder %v1520_v59, 2  ;;  %vm1522_vm14 = vcmp.eq.s32.totalorder %v1520_v59, 0  ;;  %vm1525_vm8 = vcmp.eq.s32.totalorder %v1520_v59, 2  ;;  %v2970_v13 = vsel %vm2968_vm9, %v6889_v10, %v1523_v23 }
 0x212   : > { %v1524_v42 = vsel %vm1522_vm14, %v6889_v10, %v1523_v23  ;;  %v1527_v9 = vsel %vm1525_vm8, %v1526_v49, %v6888_v32  ;;  %v2973_v48 = vsel %vm2971_vm13, %v1526_v49, %v6888_v32  ;;  %4798 = vsinq.f32 %v6235_v34  ;;  %v6897_v32 = vld [vmem:[#allocation29_spill] sm:$0xff] }
 0x213   : > { %v1528_v54 = vsel %vm1521_vm10, %v1524_v42, %v1527_v9  ;;  %v2974_v38 = vsel %vm2967_vm4, %v2970_v13, %v2973_v48  ;;  %v1623_v26 = vadd.s32 3, %v1619_v5  ;;  %vm1622_vm6 = vweird.f32 %v5712_v6 }
 0x214   : > { %v6326_v7 = vsel %vm1518_vm2, nan, %v1528_v54  ;;  %v2975_v28 = vsel %vm1518_vm2, nan, %v2974_v38  ;;  %v1627_v17 = vxor.u32 2147483648, %v6207_v0  ;;  %v1720_v58 = vsub.s32 4, %v6897_v32  ;;  %v384_v54 = vld [vmem:[%s6043_s17 + $0x68] sm:$0xff] }
 0x215   : > { %v4697_v12 = vpack.i.bf16 %v2975_v28, %v2872_v29  ;;  %v1624_v23 = vand.u32 3, %v1623_v26  ;;  %v1630_v34 = vxor.u32 2147483648, %v6146_v55  ;;  %v1731_v10 = vxor.u32 2147483648, %v6081_v11 }
 0x216   : > { %v1734_v49 = vxor.u32 2147483648, %v6068_v39  ;;  %vm6898_vm12 = vcmp.lt.s32.totalorder %v5641_v62, 0  ;;  %vm1726_vm2 = vweird.f32 %v5641_v62  ;;  %v3069_v46 = vand.u32 3, %v1619_v5 }
 0x217   : > { %4698 = vrot.lane.b32.xlu0 %v4697_v12, %s4929_s22  ;;  %v1721_v52 = vsel %vm6898_vm12, %v1720_v58, %v6897_v32  ;;  %v4712_v31 = vpack.i.bf16 %v382_v57, %v381_v21  ;;  %v1824_v25 = vsub.s32 4, %v6078_v41  ;;  %vm1625_vm7 = vcmp.lt.s32.totalorder %v1624_v23, 2 }
 0x218   : > { %vm1626_vm11 = vcmp.eq.s32.totalorder %v1624_v23, 0  ;;  %vm1629_vm15 = vcmp.eq.s32.totalorder %v1624_v23, 2  ;;  %vm6899_vm1 = vnez %v6837_v56  ;;  %vm3070_vm4 = vcmp.lt.s32.totalorder %v3069_v46, 2 }
 0x219   : > { %v1723_v50 = vsel %vm6899_vm1, 0, %v1721_v52  ;;  %vm3071_vm9 = vcmp.eq.s32.totalorder %v3069_v46, 0  ;;  %vm3074_vm13 = vcmp.eq.s32.totalorder %v3069_v46, 2  ;;  %4713 = vrot.lane.b32.xlu1 %v4712_v31, %s4928_s21  ;;  %v1628_v36 = vsel %vm1626_vm11, %v6146_v55, %v1627_v17  ;;  %v4727_v31 = vld [vmem:[%s6684_s3] sm:$0xff]  }
 0x21a   : > { %v1727_v47 = vadd.s32 3, %v1723_v50  ;;  %v3073_v2 = vsel %vm3071_vm9, %v6146_v55, %v1627_v17  ;;  %v3076_v35 = vsel %vm3074_vm13, %v1630_v34, %v6207_v0  ;;  %v3172_v15 = vand.u32 3, %v1723_v50 }
 0x21b   : > { %v3077_v30 = vsel %vm3070_vm4, %v3073_v2, %v3076_v35  ;;  %v1631_v43 = vsel %vm1629_vm15, %v1630_v34, %v6207_v0  ;;  %vm6900_vm10 = vcmp.lt.s32.totalorder %v5824_v51, 0  ;;  %v1928_v5 = vsub.s32 4, %v5996_v45 }
 0x21c   : > { %v1728_v8 = vand.u32 3, %v1727_v47  ;;  %v1825_v56 = vsel %vm6900_vm10, %v1824_v25, %v6078_v41  ;;  %v3078_v59 = vsel %vm1622_vm6, nan, %v3077_v30  ;;  %vm3173_vm14 = vcmp.lt.s32.totalorder %v3172_v15, 2  ;;  %v4799_v18 = vpop.eup %4798 }
 0x21d   : > { %vm3174_vm8 = vcmp.eq.s32.totalorder %v3172_v15, 0  ;;  %vm3177_vm3 = vcmp.eq.s32.totalorder %v3172_v15, 2  ;;  %v1632_v14 = vsel %vm1625_vm7, %v1628_v36, %v1631_v43  ;;  %v1827_v9 = vsel %vm6191_vm0, 0, %v1825_v56 }
 0x21e   : > { %vm1729_vm12 = vcmp.lt.s32.totalorder %v1728_v8, 2  ;;  %vm1730_vm1 = vcmp.eq.s32.totalorder %v1728_v8, 0  ;;  %vm1733_vm9 = vcmp.eq.s32.totalorder %v1728_v8, 2  ;;  %v3176_v55 = vsel %vm3174_vm8, %v6068_v39, %v1731_v10 }
 0x21f   : > { %v1732_v0 = vsel %vm1730_vm1, %v6068_v39, %v1731_v10  ;;  %v1735_v1 = vsel %vm1733_vm9, %v1734_v49, %v6081_v11  ;;  %v3179_v41 = vsel %vm3177_vm3, %v1734_v49, %v6081_v11  ;;  %v6363_v42 = vsel %vm1622_vm6, nan, %v1632_v14  ;;  %v383_v11 = vld [vmem:[%s6043_s17 + $0x60] sm:$0xff]  ;;  %s6612_s17 = scalar_lea.vmem [#allocation2], %s4547_s29  ;;  %s4932_s29 = smov [#allocation2]  }
 0x220   : > { %v1736_v29 = vsel %vm1729_vm12, %v1732_v0, %v1735_v1  ;;  %v3180_v13 = vsel %vm3173_vm14, %v3176_v55, %v3179_v41  ;;  %v1831_v33 = vadd.s32 3, %v1827_v9  ;;  %vm1830_vm7 = vweird.f32 %v5824_v51  ;;  %s4165_s23 = sshll.u32 %s6612_s17, 4  ;;  %s4861_s14 = sshll.u32 %s4932_s29, 4  ;;  %s6628_s23 = int_to_ptr.vmem [resolvable:$true] %s4165_s23  ;;  %s4862_s14 = int_to_ptr.vmem [resolvable:$false] %s4861_s14 }
 0x221   : > { %v6369_v48 = vsel %vm1726_vm2, nan, %v1736_v29  ;;  %v3181_v39 = vsel %vm1726_vm2, nan, %v3180_v13  ;;  %v1835_v28 = vxor.u32 2147483648, %v4799_v18  ;;  %v1838_v27 = vxor.u32 2147483648, %v6311_v37  ;;  %s4857_s27 = scalar_lea.vmem %s6628_s23, 1792  ;;  %s4863_s16 = scalar_lea.vmem %s4862_s14, 3584 }
 0x222   : > { %v4707_v38 = vpack.i.bf16 %v3181_v39, %v3078_v59  ;;  %v1832_v6 = vand.u32 3, %v1831_v33  ;;  %vm6901_vm0 = vcmp.lt.s32.totalorder %v5721_v4, 0  ;;  %vm1934_vm6 = vweird.f32 %v5721_v4  ;;  %p4858_p11 = scmp.ne.s32.totalorder %s6628_s23, %s4857_s27  ;;  %p4864_p0 = scmp.lt.s32.totalorder %s6628_s23, %s4862_s14 }
 0x223   : > { %v1929_v26 = vsel %vm6901_vm0, %v1928_v5, %v5996_v45  ;;  %v1939_v62 = vxor.u32 2147483648, %v6215_v24  ;;  %v3275_v21 = vand.u32 3, %v1827_v9  ;;  %v4722_v57 = vpack.i.bf16 %v384_v54, %v383_v11  ;;  %p4865_p1 = scmp.lt.s32.totalorder %s4863_s16, %s4857_s27 }
 0x224   : > { %4708 = vrot.lane.b32.xlu0 %v4707_v38, %s4929_s22  ;;  %vm1834_vm2 = vcmp.eq.s32.totalorder %v1832_v6, 0  ;;  %vm1837_vm11 = vcmp.eq.s32.totalorder %v1832_v6, 2  ;;  %v1931_v12 = vsel %vm6100_vm5, 0, %v1929_v26  ;;  %v1942_v17 = vxor.u32 2147483648, %v6211_v40  ;;  %p4859_p12 = pnand %p4858_p11, %p5022_p5 }
 0x225   : > { %v1935_v32 = vadd.s32 3, %v1931_v12  ;;  %vm3276_vm15 = vcmp.lt.s32.totalorder %v3275_v21, 2  ;;  %vm3277_vm4 = vcmp.eq.s32.totalorder %v3275_v21, 0  ;;  %vm3280_vm13 = vcmp.eq.s32.totalorder %v3275_v21, 2  ;;  %4723 = vrot.lane.b32.xlu1 %v4722_v57, %s4928_s21  ;;  %p4866_p2 = por %p4865_p1, %p4864_p0 }
 0x226   : > { %v3279_v45 = vsel %vm3277_vm4, %v6311_v37, %v1835_v28  ;;  %v3282_v58 = vsel %vm3280_vm13, %v1838_v27, %v4799_v18  ;;  %v3378_v23 = vand.u32 3, %v1931_v12  ;;  %v1836_v34 = vsel %vm1834_vm2, %v6311_v37, %v1835_v28  ;;  %p4860_p13 = pneg %p4859_p12 }
 0x227   : > { %vm1833_vm10 = vcmp.lt.s32.totalorder %v1832_v6, 2  ;;  %v1936_v10 = vand.u32 3, %v1935_v32  ;;  %v3283_v49 = vsel %vm3276_vm15, %v3279_v45, %v3282_v58  ;;  %v1839_v52 = vsel %vm1837_vm11, %v1838_v27, %v4799_v18 }
 0x228   : > { %v3284_v60 = vsel %vm1830_vm7, nan, %v3283_v49  ;;  %vm3379_vm5 = vcmp.lt.s32.totalorder %v3378_v23, 2  ;;  %vm3380_vm14 = vcmp.eq.s32.totalorder %v3378_v23, 0  ;;  %vm3383_vm8 = vcmp.eq.s32.totalorder %v3378_v23, 2  ;;  %p4867_p3 = pnand %p4866_p2, %p4860_p13 }
 0x229   : > { %vm1937_vm3 = vcmp.lt.s32.totalorder %v1936_v10, 2  ;;  %vm1938_vm12 = vcmp.eq.s32.totalorder %v1936_v10, 0  ;;  %vm1941_vm1 = vcmp.eq.s32.totalorder %v1936_v10, 2  ;;  %v3382_v46 = vsel %vm3380_vm14, %v6211_v40, %v1939_v62 }
 0x22a   : > { %v1940_v37 = vsel %vm1938_vm12, %v6211_v40, %v1939_v62  ;;  %v1943_v25 = vsel %vm1941_vm1, %v1942_v17, %v6215_v24  ;;  %v3385_v50 = vsel %vm3383_vm8, %v1942_v17, %v6215_v24  ;;  %v1840_v47 = vsel %vm1833_vm10, %v1836_v34, %v1839_v52 }
 0x22b   : > { %v1944_v2 = vsel %vm1937_vm3, %v1940_v37, %v1943_v25  ;;  %v3386_v35 = vsel %vm3379_vm5, %v3382_v46, %v3385_v50  ;;  %v6402_v15 = vsel %vm1830_vm7, nan, %v1840_v47  ;;  %v4930_v40 = vmov 0.0  }
 0x22c   : > { %v6406_v36 = vsel %vm1934_vm6, nan, %v1944_v2  ;;  %v3387_v8 = vsel %vm1934_vm6, nan, %v3386_v35  ;;  %4427 = vmatprep.subr.bf16.mxu0 %v4930_v40  ;;  %4545 = vmatprep.subr.bf16.mxu1 %v4930_v40  ;;  %vm4931_vm9 = vmmov 0   ;;  %vm3500_vm7 = vcmask 31744   ;;  %v4728_v35 = vld [vmem:[%s6686_s5] sm:$0xff]  }
 0x22d   : > { %v4717_v24 = vpack.i.bf16 %v3387_v8, %v3284_v60  ;;  %4428 = vmatpush3.bf16.msra.mxu0 %v4727_v31  ;;  %4429 = vmatprep.mubr.msk.bf16.mxu0 %vm4931_vm9, %v4930_v40  ;;  %vm3515_vm0 = vcmask 64512   ;;  %vm3552_vm6 = vcmask 130048  }
 0x22e   : > { %4546 = vmatpush3.bf16.msra.mxu1 %v4727_v31  ;;  %4445 = vmatprep.mubr.msk.bf16.mxu1 %vm4931_vm9, %v4930_v40 }
 0x22f   : > { %4718 = vrot.lane.b32.xlu0 %v4717_v24, %s4929_s22  ;;  %4457 = vmatprep.subr.bf16.mxu1 %v4930_v40  ;;  %s4388_s22 = smul.u32 1792, %s5005_s13  ;;  %s6639_s13 = scalar_lea.sflag [#allocation3], %s340_s28 }
 0x230   : > { %4501 = vmatprep.subr.bf16.mxu0 %v4930_v40 }
 0x231   : > { %s6634_s26 = scalar_lea.hbm %s6690_s9, %s4388_s22 }
 0x241   : > { %v4664_v4 = vpop.permute.xlu1 %4663 }
 0x242   : > { %v4666_v30 = vunpack.i.h.bf16 %v4664_v4  ;;  %v4665_v43 = vunpack.i.l.bf16 %v4664_v4 }
 0x24c   : > { %v4659_v51 = vpop.permute.xlu0 %4658 }
 0x24d   : > { %v4661_v56 = vunpack.i.h.bf16 %v4659_v51  ;;  %v4660_v59 = vunpack.i.l.bf16 %v4659_v51 }
 0x24f   : > { %v3502_v55 = vsel %vm3500_vm7, %v6111_v3, %v4661_v56  ;;  %v3501_v18 = vsel %vm3500_vm7, %v6072_v53, %v4660_v59 }
 0x250   : > { %v3516_v0 = vsel %vm3515_vm0, %v3501_v18, %v4665_v43  ;;  %v3517_v1 = vsel %vm3515_vm0, %v3502_v55, %v4666_v30 }
 0x251   : > { %v3530_v41 = vpack.c.bf16 %v3517_v1, %v3516_v0  ;;  %v4674_v14 = vpop.permute.xlu1 %4673 }
 0x252   : > { %v4676_v13 = vunpack.i.h.bf16 %v4674_v14  ;;  %v4675_v9 = vunpack.i.l.bf16 %v4674_v14 }
 0x253   : > { %4430 = vmatmul.mubr.msk.bf16.vlgmr.msra.gmra.mrb[0].mxu0 %vm3552_vm6, %v3530_v41 }
 0x254   : > { %4433 = vmatprep.mubr.msk.bf16.mxu0 %vm4931_vm9, %v4930_v40 }
 0x260   : > { %v4669_v29 = vpop.permute.xlu0 %4668 }
 0x261   : > { %v4671_v39 = vunpack.i.h.bf16 %v4669_v29  ;;  %v4670_v3 = vunpack.i.l.bf16 %v4669_v29 }
 0x262   : > { %v4684_v5 = vpop.permute.xlu1 %4683 }
 0x263   : > { %v3504_v53 = vsel %vm3500_vm7, %v6171_v16, %v4671_v39  ;;  %v3503_v33 = vsel %vm3500_vm7, %v6152_v19, %v4670_v3  ;;  %v4686_v28 = vunpack.i.h.bf16 %v4684_v5  ;;  %v4685_v27 = vunpack.i.l.bf16 %v4684_v5  ;;  %v4736_v5 = vld [vmem:[%s6688_s7] sm:$0xff]  }
 0x264   : > { %v3518_v11 = vsel %vm3515_vm0, %v3503_v33, %v4675_v9  ;;  %v3519_v54 = vsel %vm3515_vm0, %v3504_v53, %v4676_v13  ;;  %v4730_v33 = vld [vmem:[%s6686_s5 + $0x10] sm:$0xff]   ;;  %4502 = vmatpush3.bf16.msra.mxu0 %v4736_v5 }
 0x265   : > { %v3531_v38 = vpack.c.bf16 %v3519_v54, %v3518_v11  ;;  %v4733_v11 = vld [vmem:[%s6686_s5 + $0x28] sm:$0xff]   ;;  %v4734_v54 = vld [vmem:[%s6686_s5 + $0x30] sm:$0xff]   ;;  %4503 = vmatprep.subr.bf16.mxu0 %v4930_v40 }
 0x267   : > { %4434 = vmatmul.mubr.msk.bf16.gmra.mrb[4].mxu0 %vm3552_vm6, %v3531_v38  ;;  %v4735_v38 = vld [vmem:[%s6686_s5 + $0x38] sm:$0xff]  }
 0x268   : > { %4437 = vmatprep.mubr.msk.bf16.mxu0 %vm4931_vm9, %v4930_v40 }
 0x26f   : > { %v4679_v6 = vpop.permute.xlu0 %4678 }
 0x270   : > { %v4681_v26 = vunpack.i.h.bf16 %v4679_v6  ;;  %v4680_v62 = vunpack.i.l.bf16 %v4679_v6  ;;  %v4694_v17 = vpop.permute.xlu1 %4693  ;;  %v4737_v6 = vld [vmem:[%s6688_s7 + $0x8] sm:$0xff]  }
 0x271   : > { %v4696_v45 = vunpack.i.h.bf16 %v4694_v17  ;;  %v4695_v58 = vunpack.i.l.bf16 %v4694_v17  ;;  %4504 = vmatpush3.bf16.msra.mxu0 %v4737_v6 }
 0x272   : > { %v3506_v16 = vsel %vm3500_vm7, %v6221_v61, %v4681_v26  ;;  %v3505_v19 = vsel %vm3500_vm7, %v6226_v20, %v4680_v62  ;;  %4505 = vmatprep.subr.bf16.mxu0 %v4930_v40 }
 0x273   : > { %v3520_v21 = vsel %vm3515_vm0, %v3505_v19, %v4685_v27  ;;  %v3521_v57 = vsel %vm3515_vm0, %v3506_v16, %v4686_v28  ;;  %v6524_v28 = vld [vmem:[%s6685_s4] ss:$0 sm:$0xff] }
 0x274   : > { %v3532_v12 = vpack.c.bf16 %v3521_v57, %v3520_v21 }
 0x276   : > { %4438 = vmatmul.mubr.msk.bf16.gmra.mrb[8].mxu0 %vm3552_vm6, %v3532_v12 }
 0x277   : > { %4441 = vmatprep.mubr.msk.bf16.mxu0 %vm4931_vm9, %v4930_v40 }
 0x27b   : > { %v4689_v32 = vpop.permute.xlu0 %4688 }
 0x27c   : > { %v4691_v23 = vunpack.i.h.bf16 %v4689_v32  ;;  %v4690_v34 = vunpack.i.l.bf16 %v4689_v32 }
 0x27d   : > { %v4704_v60 = vpop.permute.xlu1 %4703 }
 0x27e   : > { %v3508_v61 = vsel %vm3500_vm7, %v6280_v44, %v4691_v23  ;;  %v3507_v20 = vsel %vm3500_vm7, %v6273_v22, %v4690_v34  ;;  %v4706_v31 = vunpack.i.h.bf16 %v4704_v60  ;;  %v4705_v37 = vunpack.i.l.bf16 %v4704_v60 }
 0x27f   : > { %v3522_v10 = vsel %vm3515_vm0, %v3507_v20, %v4695_v58  ;;  %v3523_v49 = vsel %vm3515_vm0, %v3508_v61, %v4696_v45 }
 0x280   : > { %v3533_v52 = vpack.c.bf16 %v3523_v49, %v3522_v10 }
 0x282   : > { %4442 = vmatmul.mubr.msk.bf16.gmra.mrb[12].mxu0 %vm3552_vm6, %v3533_v52 }
 0x283   : > { %4517 = vmatprep.mubr.msk.bf16.mxu0 %vm4931_vm9, %v4930_v40 }
 0x289   : > { %v4699_v46 = vpop.permute.xlu0 %4698 }
 0x28a   : > { %v4701_v25 = vunpack.i.h.bf16 %v4699_v46  ;;  %v4700_v50 = vunpack.i.l.bf16 %v4699_v46 }
 0x28c   : > { %v3510_v44 = vsel %vm3500_vm7, %v6326_v7, %v4701_v25  ;;  %v3509_v22 = vsel %vm3500_vm7, %v6319_v63, %v4700_v50  ;;  %v4729_v7 = vld [vmem:[%s6686_s5 + $0x8] sm:$0xff]   ;;  %v4714_v63 = vpop.permute.xlu1 %4713 }
 0x28d   : > { %v3524_v47 = vsel %vm3515_vm0, %v3509_v22, %v4705_v37  ;;  %v3525_v2 = vsel %vm3515_vm0, %v3510_v44, %v4706_v31  ;;  %v4716_v4 = vunpack.i.h.bf16 %v4714_v63  ;;  %v4715_v51 = vunpack.i.l.bf16 %v4714_v63 }
 0x28e   : > { %v3534_v8 = vpack.c.bf16 %v3525_v2, %v3524_v47 }
 0x290   : > { %4446 = vmatmul.mubr.msk.bf16.vlgmr.msra.gmra.mrb[0].mxu1 %vm3552_vm6, %v3534_v8 }
 0x291   : > { %4449 = vmatprep.mubr.msk.bf16.mxu1 %vm4931_vm9, %v4930_v40  ;;  %4458 = vmatpush3.bf16.msra.mxu1 %v4728_v35 }
 0x292   : > { %4459 = vmatprep.subr.bf16.mxu1 %v4930_v40 }
 0x295   : > { %4460 = vmatpush3.bf16.msra.mxu1 %v4729_v7 }
 0x296   : > { %v4709_v24 = vpop.permute.xlu0 %4708  ;;  %4461 = vmatprep.subr.bf16.mxu1 %v4930_v40 }
 0x297   : > { %v4711_v30 = vunpack.i.h.bf16 %v4709_v24  ;;  %v4710_v43 = vunpack.i.l.bf16 %v4709_v24  ;;  %v4724_v1 = vpop.permute.xlu1 %4723 }
 0x298   : > { %v4726_v14 = vunpack.i.h.bf16 %v4724_v1  ;;  %v4725_v29 = vunpack.i.l.bf16 %v4724_v1 }
 0x299   : > { %v3512_v56 = vsel %vm3500_vm7, %v6369_v48, %v4711_v30  ;;  %v3511_v59 = vsel %vm3500_vm7, %v6363_v42, %v4710_v43  ;;  %4462 = vmatpush3.bf16.msra.mxu1 %v4730_v33 }
 0x29a   : > { %v3526_v55 = vsel %vm3515_vm0, %v3511_v59, %v4715_v51  ;;  %v3527_v18 = vsel %vm3515_vm0, %v3512_v56, %v4716_v4  ;;  %4463 = vmatprep.subr.bf16.mxu1 %v4930_v40 }
 0x29b   : > { %v3535_v0 = vpack.c.bf16 %v3527_v18, %v3526_v55 }
 0x29d   : > { %4450 = vmatmul.mubr.msk.bf16.gmra.mrb[4].mxu1 %vm3552_vm6, %v3535_v0 }
 0x29e   : > { %4453 = vmatprep.mubr.msk.bf16.mxu1 %vm4931_vm9, %v4930_v40 }
 0x2a1   : > { %v4719_v41 = vpop.permute.xlu0 %4718 }
 0x2a2   : > { %v4721_v13 = vunpack.i.h.bf16 %v4719_v41  ;;  %v4720_v9 = vunpack.i.l.bf16 %v4719_v41 }
 0x2a4   : > { %v3514_v48 = vsel %vm3500_vm7, %v6406_v36, %v4721_v13  ;;  %v3513_v42 = vsel %vm3500_vm7, %v6402_v15, %v4720_v9  ;;  %v4731_v36 = vld [vmem:[%s6686_s5 + $0x18] sm:$0xff]   ;;  %v4732_v15 = vld [vmem:[%s6686_s5 + $0x20] sm:$0xff]  }
 0x2a5   : > { %v3528_v39 = vsel %vm3515_vm0, %v3513_v42, %v4725_v29  ;;  %v3529_v3 = vsel %vm3515_vm0, %v3514_v48, %v4726_v14  ;;  %4464 = vmatpush3.bf16.msra.mxu1 %v4731_v36 }
 0x2a6   : > { %v3536_v53 = vpack.c.bf16 %v3529_v3, %v3528_v39  ;;  %4465 = vmatprep.subr.bf16.mxu1 %v4930_v40 }
 0x2a8   : > { %4454 = vmatmul.mubr.msk.bf16.gmra.mrb[8].mxu1 %vm3552_vm6, %v3536_v53 }
 0x2a9   : > { %4473 = vmatprep.mubr.msk.bf16.mxu1 %vm4931_vm9, %v4930_v40  ;;  %4466 = vmatpush3.bf16.msra.mxu1 %v4732_v15 }
 0x2aa   : > { %4467 = vmatprep.subr.bf16.mxu1 %v4930_v40 }
 0x2ad   : > { %4468 = vmatpush3.bf16.msra.mxu1 %v4733_v11 }
 0x2ae   : > { %4469 = vmatprep.subr.bf16.mxu1 %v4930_v40 }
 0x2b1   : > { %4470 = vmatpush3.bf16.msra.mxu1 %v4734_v54 }
 0x2b2   : > { %4471 = vmatprep.subr.bf16.mxu1 %v4930_v40 }
 0x2b5   : > { %4472 = vmatpush3.bf16.msra.mxu1 %v4735_v38 }
 0x326   : > { %v3608_v27 = vpop.f32.mrb[0].mxu0 }
 0x327   : > { %v3609_v26 = vadd.f32 %v6524_v28, %v3608_v27  ;;  %v4431_v62 = vpop.f32.mrb[1].mxu0 }
 0x328   : > { %v3611_v16 = vpop.f32.mrb[2].mxu0 }
 0x329   : > { %v3663_v19 = vmul.f32 0.5, %v3609_v26  ;;  %v3612_v21 = vadd.f32 %v6524_v28, %v3611_v16  ;;  %v4432_v57 = vpop.f32.mrb[3].mxu0 }
 0x32b   : > { %4800 = vtanh.f32 %v3663_v19  ;;  %v3664_v12 = vmul.f32 0.5, %v3612_v21 }
 0x32d   : > { %4802 = vtanh.f32 %v3664_v12 }
 0x335   : > { %v4801_v17 = vpop.eup %4800 }
 0x336   : > { %v3691_v32 = vadd.f32 1.0, %v4801_v17 }
 0x337   : > { %v4803_v45 = vpop.eup %4802 }
 0x338   : > { %v3705_v58 = vmul.f32 0.5, %v3691_v32  ;;  %v3692_v23 = vadd.f32 1.0, %v4803_v45 }
 0x33a   : > { %v3616_v34 = vpop.f32.mrb[4].mxu0  ;;  %v3706_v10 = vmul.f32 0.5, %v3692_v23  ;;  %v3719_v31 = vmul.f32 %v3705_v58, %v3609_v26 }
 0x33b   : > { %v3617_v61 = vadd.f32 %v6524_v28, %v3616_v34  ;;  %v4435_v20 = vpop.f32.mrb[5].mxu0 }
 0x33c   : > { %v3619_v49 = vpop.f32.mrb[6].mxu0  ;;  %v3720_v37 = vmul.f32 %v3706_v10, %v3612_v21 }
 0x33d   : > { %v3665_v52 = vmul.f32 0.5, %v3617_v61  ;;  %v3620_v60 = vadd.f32 %v6524_v28, %v3619_v49  ;;  %v4436_v46 = vpop.f32.mrb[7].mxu0 }
 0x33e   : > { %v3733_v50 = vpack.c.bf16 %v3720_v37, %v3719_v31 }
 0x33f   : > { %4804 = vtanh.f32 %v3665_v52  ;;  %v3666_v25 = vmul.f32 0.5, %v3620_v60 }
 0x340   : > { %4474 = vmatmul.mubr.bf16.vlgmr.msra.gmra.mrb[12].mxu1 %v3733_v50 }
 0x341   : > { %4806 = vtanh.f32 %v3666_v25  ;;  %4477 = vmatprep.mubr.msk.bf16.mxu1 %vm4931_vm9, %v4930_v40 }
 0x349   : > { %v4805_v44 = vpop.eup %4804  ;;  %v3624_v22 = vpop.f32.mrb[8].mxu0 }
 0x34a   : > { %v3693_v47 = vadd.f32 1.0, %v4805_v44  ;;  %v3625_v2 = vadd.f32 %v6524_v28, %v3624_v22  ;;  %v4439_v35 = vpop.f32.mrb[9].mxu0 }
 0x34b   : > { %v4807_v8 = vpop.eup %4806  ;;  %v3627_v7 = vpop.f32.mrb[10].mxu0 }
 0x34c   : > { %v3707_v63 = vmul.f32 0.5, %v3693_v47  ;;  %v3694_v24 = vadd.f32 1.0, %v4807_v8  ;;  %v3667_v4 = vmul.f32 0.5, %v3625_v2  ;;  %v3628_v51 = vadd.f32 %v6524_v28, %v3627_v7  ;;  %v4440_v30 = vpop.f32.mrb[11].mxu0 }
 0x34e   : > { %v3708_v43 = vmul.f32 0.5, %v3694_v24  ;;  %4808 = vtanh.f32 %v3667_v4  ;;  %v3668_v56 = vmul.f32 0.5, %v3628_v51  ;;  %v3721_v59 = vmul.f32 %v3707_v63, %v3617_v61 }
 0x350   : > { %v3722_v55 = vmul.f32 %v3708_v43, %v3620_v60  ;;  %4810 = vtanh.f32 %v3668_v56 }
 0x352   : > { %v3734_v18 = vpack.c.bf16 %v3722_v55, %v3721_v59 }
 0x354   : > { %4478 = vmatmul.mubr.bf16.gmra.mrb[16].mxu1 %v3734_v18 }
 0x355   : > { %v3632_v0 = vpop.f32.mrb[12].mxu0  ;;  %4481 = vmatprep.mubr.msk.bf16.mxu1 %vm4931_vm9, %v4930_v40 }
 0x356   : > { %v3633_v1 = vadd.f32 %v6524_v28, %v3632_v0  ;;  %v4443_v41 = vpop.f32.mrb[13].mxu0 }
 0x357   : > { %v3635_v14 = vpop.f32.mrb[14].mxu0 }
 0x358   : > { %v3669_v29 = vmul.f32 0.5, %v3633_v1  ;;  %v3636_v13 = vadd.f32 %v6524_v28, %v3635_v14  ;;  %v4444_v9 = vpop.f32.mrb[15].mxu0  ;;  %v4809_v48 = vpop.eup %4808 }
 0x359   : > { %v3695_v42 = vadd.f32 1.0, %v4809_v48 }
 0x35a   : > { %4812 = vtanh.f32 %v3669_v29  ;;  %v3670_v39 = vmul.f32 0.5, %v3636_v13  ;;  %v4811_v3 = vpop.eup %4810 }
 0x35b   : > { %v3709_v53 = vmul.f32 0.5, %v3695_v42  ;;  %v3696_v33 = vadd.f32 1.0, %v4811_v3 }
 0x35c   : > { %4814 = vtanh.f32 %v3670_v39 }
 0x35d   : > { %v3710_v36 = vmul.f32 0.5, %v3696_v33  ;;  %v3723_v15 = vmul.f32 %v3709_v53, %v3625_v2 }
 0x35f   : > { %v3724_v11 = vmul.f32 %v3710_v36, %v3628_v51 }
 0x361   : > { %v3735_v6 = vpack.c.bf16 %v3724_v11, %v3723_v15  ;;  %v4738_v15 = vld [vmem:[%s6688_s7 + $0x10] sm:$0xff]   ;;  %v4739_v11 = vld [vmem:[%s6688_s7 + $0x18] sm:$0xff]  }
 0x362   : > { %4506 = vmatpush3.bf16.msra.mxu0 %v4738_v15 }
 0x363   : > { %v3640_v54 = vpop.f32.mrb[0].mxu1  ;;  %4482 = vmatmul.mubr.bf16.gmra.mrb[20].mxu1 %v3735_v6  ;;  %4507 = vmatprep.subr.bf16.mxu0 %v4930_v40  ;;  %v4743_v6 = vld [vmem:[%s6688_s7 + $0x38] sm:$0xff]  }
 0x364   : > { %v3641_v38 = vadd.f32 %v6524_v28, %v3640_v54  ;;  %v4447_v5 = vpop.f32.mrb[1].mxu1  ;;  %v4813_v26 = vpop.eup %4812  ;;  %4485 = vmatprep.mubr.msk.bf16.mxu1 %vm4931_vm9, %v4930_v40  ;;  %v4740_v54 = vld [vmem:[%s6688_s7 + $0x20] sm:$0xff]  }
 0x365   : > { %v3643_v27 = vpop.f32.mrb[2].mxu1  ;;  %v3697_v21 = vadd.f32 1.0, %v4813_v26  ;;  %v4742_v5 = vld [vmem:[%s6688_s7 + $0x30] sm:$0xff]  }
 0x366   : > { %v3671_v62 = vmul.f32 0.5, %v3641_v38  ;;  %v3644_v16 = vadd.f32 %v6524_v28, %v3643_v27  ;;  %v4448_v19 = vpop.f32.mrb[3].mxu1  ;;  %v4815_v57 = vpop.eup %4814  ;;  %4508 = vmatpush3.bf16.msra.mxu0 %v4739_v11  ;;  %v6578_v27 = vld [vmem:[%s6687_s6] ss:$0 sm:$0xff] }
 0x367   : > { %v3711_v17 = vmul.f32 0.5, %v3697_v21  ;;  %v3698_v32 = vadd.f32 1.0, %v4815_v57  ;;  %4509 = vmatprep.subr.bf16.mxu0 %v4930_v40 }
 0x368   : > { %4816 = vtanh.f32 %v3671_v62  ;;  %v3672_v12 = vmul.f32 0.5, %v3644_v16 }
 0x369   : > { %v3712_v45 = vmul.f32 0.5, %v3698_v32  ;;  %v3725_v58 = vmul.f32 %v3711_v17, %v3633_v1 }
 0x36a   : > { %4818 = vtanh.f32 %v3672_v12  ;;  %4510 = vmatpush3.bf16.msra.mxu0 %v4740_v54 }
 0x36b   : > { %v3726_v23 = vmul.f32 %v3712_v45, %v3636_v13  ;;  %4511 = vmatprep.subr.bf16.mxu0 %v4930_v40 }
 0x36d   : > { %v3736_v61 = vpack.c.bf16 %v3726_v23, %v3725_v58 }
 0x36f   : > { %4486 = vmatmul.mubr.bf16.gmra.mrb[24].mxu1 %v3736_v61 }
 0x370   : > { %v3648_v34 = vpop.f32.mrb[4].mxu1  ;;  %4489 = vmatprep.mubr.msk.bf16.mxu1 %vm4931_vm9, %v4930_v40 }
 0x371   : > { %v3649_v20 = vadd.f32 %v6524_v28, %v3648_v34  ;;  %v4451_v10 = vpop.f32.mrb[5].mxu1 }
 0x372   : > { %v3651_v49 = vpop.f32.mrb[6].mxu1  ;;  %v4817_v52 = vpop.eup %4816 }
 0x373   : > { %v3673_v60 = vmul.f32 0.5, %v3649_v20  ;;  %v3652_v46 = vadd.f32 %v6524_v28, %v3651_v49  ;;  %v4452_v31 = vpop.f32.mrb[7].mxu1  ;;  %v3699_v37 = vadd.f32 1.0, %v4817_v52 }
 0x374   : > { %v4819_v25 = vpop.eup %4818 }
 0x375   : > { %4820 = vtanh.f32 %v3673_v60  ;;  %v3674_v50 = vmul.f32 0.5, %v3652_v46  ;;  %v3713_v44 = vmul.f32 0.5, %v3699_v37  ;;  %v3700_v22 = vadd.f32 1.0, %v4819_v25 }
 0x377   : > { %4822 = vtanh.f32 %v3674_v50  ;;  %v3714_v47 = vmul.f32 0.5, %v3700_v22  ;;  %v3727_v2 = vmul.f32 %v3713_v44, %v3641_v38  ;;  %v4741_v38 = vld [vmem:[%s6688_s7 + $0x28] sm:$0xff]  }
 0x378   : > { %4512 = vmatpush3.bf16.msra.mxu0 %v4741_v38 }
 0x379   : > { %v3728_v35 = vmul.f32 %v3714_v47, %v3644_v16  ;;  %4513 = vmatprep.subr.bf16.mxu0 %v4930_v40 }
 0x37b   : > { %v3656_v8 = vpop.f32.mrb[8].mxu1  ;;  %v3737_v7 = vpack.c.bf16 %v3728_v35, %v3727_v2 }
 0x37c   : > { %v3657_v63 = vadd.f32 %v6524_v28, %v3656_v8  ;;  %v4455_v24 = vpop.f32.mrb[9].mxu1  ;;  %4514 = vmatpush3.bf16.msra.mxu0 %v4742_v5 }
 0x37d   : > { %v3659_v4 = vpop.f32.mrb[10].mxu1  ;;  %4490 = vmatmul.mubr.bf16.gmra.mrb[28].mxu1 %v3737_v7  ;;  %4515 = vmatprep.subr.bf16.mxu0 %v4930_v40 }
 0x37e   : > { %v3675_v30 = vmul.f32 0.5, %v3657_v63  ;;  %v3660_v43 = vadd.f32 %v6524_v28, %v3659_v4  ;;  %v4456_v56 = vpop.f32.mrb[11].mxu1  ;;  %4493 = vmatprep.mubr.msk.bf16.mxu1 %vm4931_vm9, %v4930_v40 }
 0x37f   : > { %v4821_v51 = vpop.eup %4820 }
 0x380   : > { %v3701_v59 = vadd.f32 1.0, %v4821_v51  ;;  %4824 = vtanh.f32 %v3675_v30  ;;  %v3676_v18 = vmul.f32 0.5, %v3660_v43  ;;  %4516 = vmatpush3.bf16.msra.mxu0 %v4743_v6 }
 0x381   : > { %v4823_v55 = vpop.eup %4822 }
 0x382   : > { %v3715_v0 = vmul.f32 0.5, %v3701_v59  ;;  %v3702_v1 = vadd.f32 1.0, %v4823_v55  ;;  %4826 = vtanh.f32 %v3676_v18 }
 0x384   : > { %v3716_v41 = vmul.f32 0.5, %v3702_v1  ;;  %v3729_v14 = vmul.f32 %v3715_v0, %v3649_v20 }
 0x386   : > { %v3730_v29 = vmul.f32 %v3716_v41, %v3652_v46 }
 0x388   : > { %v3738_v13 = vpack.c.bf16 %v3730_v29, %v3729_v14 }
 0x38a   : > { %4494 = vmatmul.mubr.bf16.gmra.mrb[32].mxu1 %v3738_v13  ;;  %v4825_v9 = vpop.eup %4824 }
 0x38b   : > { %4497 = vmatprep.mubr.msk.bf16.mxu1 %vm4931_vm9, %v4930_v40  ;;  %v3703_v28 = vadd.f32 1.0, %v4825_v9 }
 0x38c   : > { %v4827_v48 = vpop.eup %4826 }
 0x38d   : > { %v3717_v42 = vmul.f32 0.5, %v3703_v28  ;;  %v3704_v39 = vadd.f32 1.0, %v4827_v48 }
 0x38f   : > { %v3718_v3 = vmul.f32 0.5, %v3704_v39  ;;  %v3731_v53 = vmul.f32 %v3717_v42, %v3657_v63 }
 0x391   : > { %v3732_v33 = vmul.f32 %v3718_v3, %v3660_v43 }
 0x393   : > { %v3739_v36 = vpack.c.bf16 %v3732_v33, %v3731_v53 }
 0x395   : > { %4498 = vmatmul.mubr.bf16.gmra.mrb[36].mxu1 %v3739_v36 }
 0x413   : > { %v3845_v26 = vpop.f32.mrb[12].mxu1 }
 0x414   : > { %v3846_v62 = vadd.f32 %v6578_v27, %v3845_v26  ;;  %v4475_v16 = vpop.f32.mrb[13].mxu1 }
 0x415   : > { %v3848_v19 = vpop.f32.mrb[14].mxu1 }
 0x416   : > { %v3900_v21 = vmul.f32 0.5, %v3846_v62  ;;  %v3849_v57 = vadd.f32 %v6578_v27, %v3848_v19  ;;  %v4476_v12 = vpop.f32.mrb[15].mxu1 }
 0x418   : > { %4828 = vtanh.f32 %v3900_v21  ;;  %v3901_v17 = vmul.f32 0.5, %v3849_v57 }
 0x41a   : > { %4830 = vtanh.f32 %v3901_v17 }
 0x422   : > { %v4829_v32 = vpop.eup %4828 }
 0x423   : > { %v3928_v45 = vadd.f32 1.0, %v4829_v32 }
 0x424   : > { %v4831_v58 = vpop.eup %4830 }
 0x425   : > { %v3942_v23 = vmul.f32 0.5, %v3928_v45  ;;  %v3929_v34 = vadd.f32 1.0, %v4831_v58 }
 0x427   : > { %v3853_v61 = vpop.f32.mrb[16].mxu1  ;;  %v3943_v49 = vmul.f32 0.5, %v3929_v34  ;;  %v3956_v37 = vmul.f32 %v3942_v23, %v3846_v62 }
 0x428   : > { %v3854_v20 = vadd.f32 %v6578_v27, %v3853_v61  ;;  %v4479_v10 = vpop.f32.mrb[17].mxu1 }
 0x429   : > { %v3856_v52 = vpop.f32.mrb[18].mxu1  ;;  %v3957_v25 = vmul.f32 %v3943_v49, %v3849_v57 }
 0x42a   : > { %v3902_v60 = vmul.f32 0.5, %v3854_v20  ;;  %v3857_v46 = vadd.f32 %v6578_v27, %v3856_v52  ;;  %v4480_v31 = vpop.f32.mrb[19].mxu1 }
 0x42b   : > { %v3970_v44 = vpack.c.bf16 %v3957_v25, %v3956_v37 }
 0x42c   : > { %4832 = vtanh.f32 %v3902_v60  ;;  %v3903_v50 = vmul.f32 0.5, %v3857_v46 }
 0x42d   : > { %4518 = vmatmul.mubr.bf16.vlgmr.msra.gmra.mrb[16].mxu0 %v3970_v44 }
 0x42e   : > { %4834 = vtanh.f32 %v3903_v50  ;;  %4521 = vmatprep.mubr.msk.bf16.mxu0 %vm4931_vm9, %v4930_v40 }
 0x436   : > { %v4833_v22 = vpop.eup %4832  ;;  %v3861_v47 = vpop.f32.mrb[20].mxu1 }
 0x437   : > { %v3930_v2 = vadd.f32 1.0, %v4833_v22  ;;  %v3862_v35 = vadd.f32 %v6578_v27, %v3861_v47  ;;  %v4483_v8 = vpop.f32.mrb[21].mxu1 }
 0x438   : > { %v4835_v7 = vpop.eup %4834  ;;  %v3864_v63 = vpop.f32.mrb[22].mxu1 }
 0x439   : > { %v3944_v24 = vmul.f32 0.5, %v3930_v2  ;;  %v3931_v4 = vadd.f32 1.0, %v4835_v7  ;;  %v3904_v51 = vmul.f32 0.5, %v3862_v35  ;;  %v3865_v30 = vadd.f32 %v6578_v27, %v3864_v63  ;;  %v4484_v43 = vpop.f32.mrb[23].mxu1 }
 0x43b   : > { %v3945_v56 = vmul.f32 0.5, %v3931_v4  ;;  %4836 = vtanh.f32 %v3904_v51  ;;  %v3905_v59 = vmul.f32 0.5, %v3865_v30  ;;  %v3958_v55 = vmul.f32 %v3944_v24, %v3854_v20 }
 0x43d   : > { %v3959_v18 = vmul.f32 %v3945_v56, %v3857_v46  ;;  %4838 = vtanh.f32 %v3905_v59 }
 0x43f   : > { %v3971_v0 = vpack.c.bf16 %v3959_v18, %v3958_v55 }
 0x441   : > { %4522 = vmatmul.mubr.bf16.gmra.mrb[20].mxu0 %v3971_v0 }
 0x442   : > { %v3869_v1 = vpop.f32.mrb[24].mxu1  ;;  %4525 = vmatprep.mubr.msk.bf16.mxu0 %vm4931_vm9, %v4930_v40 }
 0x443   : > { %v3870_v41 = vadd.f32 %v6578_v27, %v3869_v1  ;;  %v4487_v14 = vpop.f32.mrb[25].mxu1 }
 0x444   : > { %v3872_v29 = vpop.f32.mrb[26].mxu1 }
 0x445   : > { %v3906_v13 = vmul.f32 0.5, %v3870_v41  ;;  %v3873_v9 = vadd.f32 %v6578_v27, %v3872_v29  ;;  %v4488_v28 = vpop.f32.mrb[27].mxu1  ;;  %v4837_v48 = vpop.eup %4836 }
 0x446   : > { %v3932_v42 = vadd.f32 1.0, %v4837_v48 }
 0x447   : > { %4840 = vtanh.f32 %v3906_v13  ;;  %v3907_v39 = vmul.f32 0.5, %v3873_v9  ;;  %v4839_v3 = vpop.eup %4838 }
 0x448   : > { %v3946_v53 = vmul.f32 0.5, %v3932_v42  ;;  %v3933_v33 = vadd.f32 1.0, %v4839_v3 }
 0x449   : > { %4842 = vtanh.f32 %v3907_v39 }
 0x44a   : > { %v3947_v36 = vmul.f32 0.5, %v3933_v33  ;;  %v3960_v15 = vmul.f32 %v3946_v53, %v3862_v35 }
 0x44c   : > { %v3961_v11 = vmul.f32 %v3947_v36, %v3865_v30 }
 0x44e   : > { %v3972_v6 = vpack.c.bf16 %v3961_v11, %v3960_v15  ;;  %v4376_v15 = vld [vmem:[%s6689_s8] ss:$0 sm:$0xff] }
 0x450   : > { %v3877_v54 = vpop.f32.mrb[28].mxu1  ;;  %4526 = vmatmul.mubr.bf16.gmra.mrb[24].mxu0 %v3972_v6 }
 0x451   : > { %v3878_v38 = vadd.f32 %v6578_v27, %v3877_v54  ;;  %v4491_v5 = vpop.f32.mrb[29].mxu1  ;;  %v4841_v62 = vpop.eup %4840  ;;  %4529 = vmatprep.mubr.msk.bf16.mxu0 %vm4931_vm9, %v4930_v40 }
 0x452   : > { %v3880_v26 = vpop.f32.mrb[30].mxu1  ;;  %v3934_v57 = vadd.f32 1.0, %v4841_v62 }
 0x453   : > { %v3908_v16 = vmul.f32 0.5, %v3878_v38  ;;  %v3881_v19 = vadd.f32 %v6578_v27, %v3880_v26  ;;  %v4492_v21 = vpop.f32.mrb[31].mxu1  ;;  %v4843_v12 = vpop.eup %4842 }
 0x454   : > { %v3948_v32 = vmul.f32 0.5, %v3934_v57  ;;  %v3935_v45 = vadd.f32 1.0, %v4843_v12 }
 0x455   : > { %4844 = vtanh.f32 %v3908_v16  ;;  %v3909_v17 = vmul.f32 0.5, %v3881_v19 }
 0x456   : > { %v3949_v58 = vmul.f32 0.5, %v3935_v45  ;;  %v3962_v23 = vmul.f32 %v3948_v32, %v3870_v41 }
 0x457   : > { %4846 = vtanh.f32 %v3909_v17 }
 0x458   : > { %v3963_v34 = vmul.f32 %v3949_v58, %v3873_v9 }
 0x45a   : > { %v3973_v20 = vpack.c.bf16 %v3963_v34, %v3962_v23 }
 0x45c   : > { %4530 = vmatmul.mubr.bf16.gmra.mrb[28].mxu0 %v3973_v20 }
 0x45d   : > { %v3885_v61 = vpop.f32.mrb[32].mxu1  ;;  %4533 = vmatprep.mubr.msk.bf16.mxu0 %vm4931_vm9, %v4930_v40 }
 0x45e   : > { %v3886_v10 = vadd.f32 %v6578_v27, %v3885_v61  ;;  %v4495_v49 = vpop.f32.mrb[33].mxu1 }
 0x45f   : > { %v3888_v52 = vpop.f32.mrb[34].mxu1  ;;  %v4845_v60 = vpop.eup %4844 }
 0x460   : > { %v3910_v46 = vmul.f32 0.5, %v3886_v10  ;;  %v3889_v31 = vadd.f32 %v6578_v27, %v3888_v52  ;;  %v4496_v37 = vpop.f32.mrb[35].mxu1  ;;  %v3936_v25 = vadd.f32 1.0, %v4845_v60 }
 0x461   : > { %v4847_v50 = vpop.eup %4846 }
 0x462   : > { %4848 = vtanh.f32 %v3910_v46  ;;  %v3911_v44 = vmul.f32 0.5, %v3889_v31  ;;  %v3950_v22 = vmul.f32 0.5, %v3936_v25  ;;  %v3937_v47 = vadd.f32 1.0, %v4847_v50 }
 0x464   : > { %4850 = vtanh.f32 %v3911_v44  ;;  %v3951_v2 = vmul.f32 0.5, %v3937_v47  ;;  %v3964_v35 = vmul.f32 %v3950_v22, %v3878_v38 }
 0x466   : > { %v3965_v8 = vmul.f32 %v3951_v2, %v3881_v19 }
 0x468   : > { %v3893_v7 = vpop.f32.mrb[36].mxu1  ;;  %v3974_v63 = vpack.c.bf16 %v3965_v8, %v3964_v35 }
 0x469   : > { %v3894_v24 = vadd.f32 %v6578_v27, %v3893_v7  ;;  %v4499_v4 = vpop.f32.mrb[37].mxu1 }
 0x46a   : > { %v3896_v51 = vpop.f32.mrb[38].mxu1  ;;  %4534 = vmatmul.mubr.bf16.gmra.mrb[32].mxu0 %v3974_v63 }
 0x46b   : > { %v3912_v43 = vmul.f32 0.5, %v3894_v24  ;;  %v3897_v56 = vadd.f32 %v6578_v27, %v3896_v51  ;;  %v4500_v59 = vpop.f32.mrb[39].mxu1  ;;  %4537 = vmatprep.mubr.msk.bf16.mxu0 %vm4931_vm9, %v4930_v40 }
 0x46c   : > { %v4849_v30 = vpop.eup %4848 }
 0x46d   : > { %v3938_v55 = vadd.f32 1.0, %v4849_v30  ;;  %4852 = vtanh.f32 %v3912_v43  ;;  %v3913_v0 = vmul.f32 0.5, %v3897_v56 }
 0x46e   : > { %v4851_v18 = vpop.eup %4850 }
 0x46f   : > { %v3952_v1 = vmul.f32 0.5, %v3938_v55  ;;  %v3939_v41 = vadd.f32 1.0, %v4851_v18  ;;  %4854 = vtanh.f32 %v3913_v0 }
 0x471   : > { %v3953_v14 = vmul.f32 0.5, %v3939_v41  ;;  %v3966_v29 = vmul.f32 %v3952_v1, %v3886_v10 }
 0x473   : > { %v3967_v13 = vmul.f32 %v3953_v14, %v3889_v31 }
 0x475   : > { %v3975_v9 = vpack.c.bf16 %v3967_v13, %v3966_v29 }
 0x477   : > { %4538 = vmatmul.mubr.bf16.gmra.mrb[36].mxu0 %v3975_v9  ;;  %v4853_v28 = vpop.eup %4852 }
 0x478   : > { %4541 = vmatprep.mubr.msk.bf16.mxu0 %vm4931_vm9, %v4930_v40  ;;  %v3940_v27 = vadd.f32 1.0, %v4853_v28 }
 0x479   : > { %v4855_v48 = vpop.eup %4854 }
 0x47a   : > { %v3954_v42 = vmul.f32 0.5, %v3940_v27  ;;  %v3941_v39 = vadd.f32 1.0, %v4855_v48 }
 0x47c   : > { %v3955_v3 = vmul.f32 0.5, %v3941_v39  ;;  %v3968_v53 = vmul.f32 %v3954_v42, %v3894_v24 }
 0x47e   : > { %v3969_v33 = vmul.f32 %v3955_v3, %v3897_v56 }
 0x480   : > { %v3976_v36 = vpack.c.bf16 %v3969_v33, %v3968_v53 }
 0x482   : > { %4542 = vmatmul.mubr.bf16.gmra.mrb[40].mxu0 %v3976_v36 }
 0x500   : > { %v4082_v11 = vpop.f32.mrb[16].mxu0 }
 0x501   : > { %v4083_v54 = vadd.f32 %v4376_v15, %v4082_v11  ;;  %v4519_v38 = vpop.f32.mrb[17].mxu0 }
 0x502   : > { %v4085_v40 = vpop.f32.mrb[18].mxu0 }
 0x503   : > { %4137 = vst [vmem:[%s6612_s17] sm:$0xff] %v4083_v54  ;;  %v4086_v5 = vadd.f32 %v4376_v15, %v4085_v40  ;;  %v4520_v6 = vpop.f32.mrb[19].mxu0 }
 0x505   : > { %4138 = vst [vmem:[%s6612_s17 + $0x8] sm:$0xff] %v4086_v5 }
 0x514   : > { %v4090_v26 = vpop.f32.mrb[20].mxu0 }
 0x515   : > { %v4091_v62 = vadd.f32 %v4376_v15, %v4090_v26  ;;  %v4523_v16 = vpop.f32.mrb[21].mxu0 }
 0x516   : > { %v4093_v19 = vpop.f32.mrb[22].mxu0 }
 0x517   : > { %4139 = vst [vmem:[%s6612_s17 + $0x10] sm:$0xff] %v4091_v62  ;;  %v4094_v21 = vadd.f32 %v4376_v15, %v4093_v19  ;;  %v4524_v57 = vpop.f32.mrb[23].mxu0 }
 0x519   : > { %4140 = vst [vmem:[%s6612_s17 + $0x18] sm:$0xff] %v4094_v21 }
 0x523   : > { %v4098_v12 = vpop.f32.mrb[24].mxu0 }
 0x524   : > { %v4099_v17 = vadd.f32 %v4376_v15, %v4098_v12  ;;  %v4527_v32 = vpop.f32.mrb[25].mxu0 }
 0x525   : > { %v4101_v45 = vpop.f32.mrb[26].mxu0 }
 0x526   : > { %4141 = vst [vmem:[%s6612_s17 + $0x20] sm:$0xff] %v4099_v17  ;;  %v4102_v58 = vadd.f32 %v4376_v15, %v4101_v45  ;;  %v4528_v23 = vpop.f32.mrb[27].mxu0 }
 0x528   : > { %4142 = vst [vmem:[%s6612_s17 + $0x28] sm:$0xff] %v4102_v58 }
 0x52f   : > { %v4106_v34 = vpop.f32.mrb[28].mxu0 }
 0x530   : > { %v4107_v61 = vadd.f32 %v4376_v15, %v4106_v34  ;;  %v4531_v20 = vpop.f32.mrb[29].mxu0 }
 0x531   : > { %v4109_v10 = vpop.f32.mrb[30].mxu0 }
 0x532   : > { %4143 = vst [vmem:[%s6612_s17 + $0x30] sm:$0xff] %v4107_v61  ;;  %v4110_v49 = vadd.f32 %v4376_v15, %v4109_v10  ;;  %v4532_v52 = vpop.f32.mrb[31].mxu0 }
 0x534   : > { %4144 = vst [vmem:[%s6612_s17 + $0x38] sm:$0xff] %v4110_v49 }
 0x53d   : > { %v4114_v60 = vpop.f32.mrb[32].mxu0 }
 0x53e   : > { %v4115_v46 = vadd.f32 %v4376_v15, %v4114_v60  ;;  %v4535_v31 = vpop.f32.mrb[33].mxu0 }
 0x53f   : > { %v4117_v37 = vpop.f32.mrb[34].mxu0 }
 0x540   : > { %4145 = vst [vmem:[%s6612_s17 + $0x40] sm:$0xff] %v4115_v46  ;;  %v4118_v25 = vadd.f32 %v4376_v15, %v4117_v37  ;;  %v4536_v50 = vpop.f32.mrb[35].mxu0 }
 0x542   : > { %4146 = vst [vmem:[%s6612_s17 + $0x48] sm:$0xff] %v4118_v25 }
 0x54a   : > { %v4122_v44 = vpop.f32.mrb[36].mxu0 }
 0x54b   : > { %v4123_v22 = vadd.f32 %v4376_v15, %v4122_v44  ;;  %v4539_v47 = vpop.f32.mrb[37].mxu0 }
 0x54c   : > { %v4125_v2 = vpop.f32.mrb[38].mxu0 }
 0x54d   : > { %4147 = vst [vmem:[%s6612_s17 + $0x50] sm:$0xff] %v4123_v22  ;;  %v4126_v35 = vadd.f32 %v4376_v15, %v4125_v2  ;;  %v4540_v8 = vpop.f32.mrb[39].mxu0 }
 0x54f   : > { %4148 = vst [vmem:[%s6612_s17 + $0x58] sm:$0xff] %v4126_v35 }
 0x555   : > { %v4130_v7 = vpop.f32.mrb[40].mxu0 }
 0x556   : > { %v4131_v63 = vadd.f32 %v4376_v15, %v4130_v7  ;;  %v4543_v24 = vpop.f32.mrb[41].mxu0 }
 0x557   : > { %v4133_v4 = vpop.f32.mrb[42].mxu0 }
 0x558   : > { %4149 = vst [vmem:[%s6612_s17 + $0x60] sm:$0xff] %v4131_v63  ;;  %v4134_v51 = vadd.f32 %v4376_v15, %v4133_v4  ;;  %v4544_v30 = vpop.f32.mrb[43].mxu0 }
 0x55a   : > { %4150 = vst [vmem:[%s6612_s17 + $0x68] sm:$0xff] %v4134_v51 }
 0x55b   : > { %4870 = shalt.err (!%p4867_p3)
}
 0x55c   : > { %s4871_s28 = scalar_lea.hbm %s6634_s26, 1792  ;;  %s4875_s24 = scalar_lea.hbm %s6690_s9, 3584 }
 0x55d   : > { %p4872_p4 = scmp.ne.s32.totalorder %s6634_s26, %s4871_s28  ;;  %p4876_p9 = scmp.lt.u32.totalorder %s6634_s26, %s6690_s9 }
 0x55e   : > { %p4877_p10 = scmp.lt.u32.totalorder %s4875_s24, %s4871_s28  ;;  %p4879_p12 = scmp.lt.u32.totalorder %s4871_s28, %s6634_s26 }
 0x55f   : > { %p4873_p7 = pnand %p4872_p4, %p5022_p5 }
 0x560   : > { %p4878_p11 = por %p4877_p10, %p4876_p9 }
 0x561   : > { %p4874_p8 = pneg %p4873_p7 }
 0x562   : > { %p4880_p13 = por %p4879_p12, %p4878_p11 }
 0x564   : > { %p4881_p0 = pnand %p4880_p13, %p4874_p8 }
 0x566   : > { %4884 = shalt.err (!%p4881_p0)
}
 0x567   : > { %s4933_s27 = smov 128  }
 0x568   : > { %4604 = dma.vmem_to_hbm [thread:$0]  (%p5022_p5), %s6628_s23, 1792, %s6634_s26, %s6639_s13, %s4933_s27, %s4933_s27, %s4928_s21  }
 0x569 PF: > { %p4610_p1 = scmp.ge.s32.totalorder %s4919_s12, 2  ;;  %s4180_s14 = sand.u32 1, %s4907_s30  }
 0x56a   : > { %s4181_s16 = scalar_lea.sflag [#allocation3], %s4180_s14 }
 0x56b   : > { %p4607_p2 = pnand %p4610_p1, %p5026_p6 }
 0x56d   : > { %4902 = dma.done.wait (!%p4607_p2), %s4181_s16, 1792  }
 0x56e   : > { %4904 = vsyncadd (!%p4607_p2), %s4181_s16, 4294965504  ;;  %p19_p3 = scmp.ge.s32.totalorder %s5009_s15, 4   ;;  %s6902_s30 = smov %s4911_s10 }
 0x56f   : > { %s6903_s10 = smov %s4915_s11  ;;  %s6904_s11 = smov %s5020_s18 }
 0x570   : > { %s6905_s12 = smov %s5009_s15  ;;  %21 = sbr.rel (!%p19_p3) target bundleno = 3 (0x3), region = 94 }
 0x577   :  { %4186 = vsyncpa [#allocation3], 1 }
 0x578   :  { %4188 = vsyncpa [#allocation3 + $0x1], 1 }

</bundles_post_ra>
